<compile_context>
chip_gen: v7x
topology: tpu7x:2x2x1
jax: 0.10.0
libtpu: 0.0.40
codegen_flags: <defaults>
</compile_context>

<pallas_src>
import functools
from typing import NamedTuple

import jax
import jax.numpy as jnp
from jax.experimental import pallas as pl
from jax.experimental.pallas import tpu as pltpu

BN_EPS = 1e-5          # nn.BatchNorm1d default eps
LRELU_SLOPE = 0.2      # nn.LeakyReLU(0.2)


def _round_up(x, m):
    return (x + m - 1) // m * m


def _leaky_relu(x):
    return jnp.where(x > 0, x, LRELU_SLOPE * x)


def _batchnorm(x, mask, inv_batch, gamma, beta):
    """Training-mode BatchNorm1d folded into one scale/shift.

    Two-pass variance (subtract mean, then square) for numerical safety.
    `mask` zeroes padded batch rows so statistics are over the real batch
    (biased variance, divide by the true batch size via inv_batch).
    """
    xm = x * mask
    mean = jnp.sum(xm, axis=0, keepdims=True) * inv_batch
    d = (x - mean) * mask
    var = jnp.sum(d * d, axis=0, keepdims=True) * inv_batch
    scale = gamma * jax.lax.rsqrt(var + BN_EPS)
    shift = beta - mean * scale
    return x * scale + shift


# ---------------------------------------------------------------------------
# Kernels
# ---------------------------------------------------------------------------
def layers14_kernel(mask_ref, z_ref, rb1_ref,
                    w1_ref,
                    w2_ref, g2_ref, be2_ref,
                    w3_ref, g3_ref, be3_ref,
                    w4_ref, g4_ref, be4_ref,
                    h4_ref, *, inv_batch):
    """Layers 1-4 (Linear / BN / LeakyReLU); whole arrays resident in VMEM."""
    mask = mask_ref[...]                                       # (B_pad, 1) f32
    # Layer 1: noise @ W1_noise + per-row (embedding + b1) bias + LeakyReLU
    h = jnp.dot(z_ref[...], w1_ref[...],
                preferred_element_type=jnp.float32) + rb1_ref[...]
    h = _leaky_relu(h)
    # Layers 2-4: Linear (bias dropped: cancels in BN) + BN + LeakyReLU
    for w_ref, g_ref, be_ref in ((w2_ref, g2_ref, be2_ref),
                                 (w3_ref, g3_ref, be3_ref),
                                 (w4_ref, g4_ref, be4_ref)):
        y = jnp.dot(h.astype(jnp.bfloat16), w_ref[...],
                    preferred_element_type=jnp.float32)
        h = _leaky_relu(_batchnorm(y, mask, inv_batch,
                                   g_ref[...], be_ref[...]))
    h4_ref[...] = h.astype(jnp.bfloat16)


def layer5_kernel(h4_ref, w5_ref, b5_ref, out_ref):
    """Layer 5 column tile: Linear(1024 -> TN) + Tanh, lane-dense store."""
    y5 = jnp.dot(h4_ref[...], w5_ref[0],
                 preferred_element_type=jnp.float32) + b5_ref[...]
    out_ref[...] = jnp.tanh(y5)


# ---------------------------------------------------------------------------
# One-time parameter preparation (casts / padding / tiling hoisted out of the
# per-call forward)
# ---------------------------------------------------------------------------
class GenConfig(NamedTuple):
    channels: int
    img_size: int
    flat: int
    flat_pad: int
    tn: int
    n_tiles: int
    vmem_limit: int


def _vmem_capacity_bytes():
    try:
        info = pltpu.get_tpu_info()
        for name in ("vmem_capacity_bytes", "vmem_size_bytes", "vmem_bytes"):
            v = getattr(info, name, None)
            if v:
                return int(v)
    except Exception:
        pass
    return 64 * 1024 * 1024          # conservative (v7x per-TC VMEM)


def _select_tile(flat, batch_hint, vmem_bytes):
    """Pick the layer-5 column tile width from the VMEM budget, then pad flat
    up to a multiple of it (instead of falling back to 128-wide tiles)."""
    b_pad = _round_up(max(batch_hint, 16), 16)
    budget = vmem_bytes // 4                 # double-buffered tiles <= ~25% VMEM
    tn = 512
    for cand in (8192, 4096, 2048, 1024, 512):
        need = 2 * (1024 * cand * 2) + 2 * (b_pad * cand * 4) + 2 * (cand * 4)
        if need <= budget:
            tn = cand
            break
    tn = min(tn, _round_up(flat, 512))       # don't over-pad tiny outputs
    flat_pad = _round_up(flat, tn)
    return tn, flat_pad, flat_pad // tn


def prepare_params(params, *, classes, channels, img_size, max_batch=256):
    """One-time prep: bf16 casts, embedding fold, w5 padding + tile-major
    (n_tiles, 1024, TN) layout, generation-aware tile/VMEM choices."""
    flat = channels * img_size * img_size
    vmem_bytes = _vmem_capacity_bytes()
    tn, flat_pad, n_tiles = _select_tile(flat, max_batch, vmem_bytes)

    # Embedding fold: z = cat(emb, noise)  =>  z @ W1 = noise @ W1[classes:]
    # + emb @ W1[:classes];  the second term (+ b1) becomes a per-row bias.
    w1 = params["w1"]
    class_bias = params["emb"] @ w1[:classes] + params["b1"]   # (classes,128) f32
    w1n = w1[classes:].astype(jnp.bfloat16)                    # (latent, 128)

    # Pad final layer columns to a multiple of TN; tile-major w5 layout so
    # each grid step DMAs one contiguous (1024, TN) slab.
    w5, b5 = params["w5"], params["b5"]
    if flat_pad != flat:
        w5 = jnp.pad(w5, ((0, 0), (0, flat_pad - flat)))
        b5 = jnp.pad(b5, ((0, 0), (0, flat_pad - flat)))
    w5t = jnp.transpose(w5.reshape(1024, n_tiles, tn),
                        (1, 0, 2)).astype(jnp.bfloat16)        # (n_tiles,1024,TN)

    prep = {
        "class_bias": class_bias,
        "w1n": w1n,
        # b2/b3/b4 are intentionally unused: they cancel exactly under
        # training-mode BatchNorm (re-introduce them if BN switches to eval).
        "w2": params["w2"].astype(jnp.bfloat16), "g2": params["g2"], "be2": params["be2"],
        "w3": params["w3"].astype(jnp.bfloat16), "g3": params["g3"], "be3": params["be3"],
        "w4": params["w4"].astype(jnp.bfloat16), "g4": params["g4"], "be4": params["be4"],
        "w5t": w5t,
        "b5p": b5,                                             # (1, flat_pad) f32
    }
    cfg = GenConfig(channels=channels, img_size=img_size, flat=flat,
                    flat_pad=flat_pad, tn=tn, n_tiles=n_tiles,
                    vmem_limit=int(vmem_bytes * 3 // 4))       # 75% of physical
    return prep, cfg


# ---------------------------------------------------------------------------
# Forward
# ---------------------------------------------------------------------------
@functools.partial(jax.jit, static_argnames=("cfg",))
def generator_forward(noise, labels, prep, cfg):
    B, latent = noise.shape
    B_pad = _round_up(max(B, 16), 16)        # bf16 sublane tile is 16

    # Per-call input prep: gather folded class bias, pad batch rows.
    rb1 = prep["class_bias"][labels]                             # (B, 128) f32
    z = jnp.zeros((B_pad, latent), jnp.bfloat16).at[:B].set(
        noise.astype(jnp.bfloat16))
    rb1 = jnp.zeros((B_pad, 128), jnp.float32).at[:B].set(rb1)
    mask = (jnp.arange(B_pad) < B).astype(jnp.float32)[:, None]  # (B_pad, 1)

    # ---- Layers 1-4: one small call, whole arrays resident in VMEM --------
    h4 = pl.pallas_call(
        functools.partial(layers14_kernel, inv_batch=1.0 / B),
        out_shape=jax.ShapeDtypeStruct((B_pad, 1024), jnp.bfloat16),
    )(mask, z, rb1,
      prep["w1n"],
      prep["w2"], prep["g2"], prep["be2"],
      prep["w3"], prep["g3"], prep["be3"],
      prep["w4"], prep["g4"], prep["be4"])

    # ---- Layer 5: column-tiled, parallel grid (megacore-shardable) --------
    TN, n_tiles, flat_pad = cfg.tn, cfg.n_tiles, cfg.flat_pad
    flops = 2 * B_pad * 1024 * flat_pad
    bytes_accessed = int(B_pad * 1024 * 2 + 1024 * flat_pad * 2
                         + flat_pad * 4 + B_pad * flat_pad * 4)

    out = pl.pallas_call(
        layer5_kernel,
        out_shape=jax.ShapeDtypeStruct((B_pad, flat_pad), jnp.float32),
        grid_spec=pltpu.PrefetchScalarGridSpec(
            num_scalar_prefetch=0,
            grid=(n_tiles,),
            in_specs=[
                pl.BlockSpec((B_pad, 1024), lambda j: (0, 0)),     # h4 resident
                pl.BlockSpec((1, 1024, TN), lambda j: (j, 0, 0)),  # contiguous w5 slab
                pl.BlockSpec((1, TN), lambda j: (0, j)),           # b5 tile
            ],
            out_specs=pl.BlockSpec((B_pad, TN), lambda j: (0, j))),
        compiler_params=pltpu.CompilerParams(
            dimension_semantics=("parallel",),
            vmem_limit_bytes=cfg.vmem_limit),
        cost_estimate=pl.CostEstimate(flops=flops,
                                      transcendentals=B_pad * flat_pad,
                                      bytes_accessed=bytes_accessed),
    )(h4, prep["w5t"], prep["b5p"])

    if B_pad != B or flat_pad != cfg.flat:
        # TODO(synk): mask-store only the valid lanes of the last column tile
        # so no padding needs stripping (avoids this extra XLA copy).
        out = out[:B, :cfg.flat]
    return out.reshape(B, cfg.channels, cfg.img_size, cfg.img_size)


# ---------------------------------------------------------------------------
# Deterministic parameter initialization (PyTorch-default-style)
# ---------------------------------------------------------------------------
def init_params(key, classes, latent_dim, channels, img_size):
    flat = channels * img_size * img_size
    dims = [(latent_dim + classes, 128), (128, 256), (256, 512),
            (512, 1024), (1024, flat)]
    params = {}
    key, k_emb = jax.random.split(key)
    # nn.Embedding default: N(0, 1)
    params["emb"] = jax.random.normal(k_emb, (classes, classes), jnp.float32)

    for i, (fan_in, fan_out) in enumerate(dims, start=1):
        key, kw, kb = jax.random.split(key, 3)
        bound = 1.0 / (fan_in ** 0.5)
        # stored as (in, out) so the kernel computes x @ W directly
        params[f"w{i}"] = jax.random.uniform(
            kw, (fan_in, fan_out), jnp.float32, -bound, bound)
        params[f"b{i}"] = jax.random.uniform(
            kb, (1, fan_out), jnp.float32, -bound, bound)
        # Note: b2/b3/b4 exist for parity with the PyTorch module but are not
        # used by the kernel (they cancel under training-mode BatchNorm).

    # BatchNorm1d defaults: weight=1, bias=0 (layers 2, 3, 4)
    for i, n in zip((2, 3, 4), (256, 512, 1024)):
        params[f"g{i}"] = jnp.ones((1, n), jnp.float32)
        params[f"be{i}"] = jnp.zeros((1, n), jnp.float32)
    return params


# ---------------------------------------------------------------------------
if __name__ == "__main__":
    classes, channels, img_size, latent_dim = 4, 1, 8, 32
    batch = 2

    key = jax.random.PRNGKey(0)
    key, k_noise, k_labels, k_params = jax.random.split(key, 4)

    noise = jax.random.normal(k_noise, (batch, latent_dim), jnp.float32)
    labels = jax.random.randint(k_labels, (batch,), 0, classes, jnp.int32)
    params = init_params(k_params, classes, latent_dim, channels, img_size)

    # One-time parameter prep (casts / padding / w5 tiling) outside the
    # jitted per-call forward.
    prep, cfg = prepare_params(params, classes=classes, channels=channels,
                               img_size=img_size, max_batch=64)

    imgs = generator_forward(noise, labels, prep, cfg)
    jax.block_until_ready(imgs)

    assert imgs.shape == (batch, channels, img_size, img_size)
    assert imgs.dtype == jnp.float32
    assert bool(jnp.all(jnp.isfinite(imgs)))
    assert bool(jnp.all(jnp.abs(imgs) <= 1.0))   # tanh range
    print("KERNEL_OK")
</pallas_src>

<mosaic_0001>
module attributes {stable_mosaic.version = 11 : i64} {
  func.func @layers14_kernel(%arg0: memref<16x1xf32, #tpu.memory_space<vmem>>, %arg1: memref<16x32xbf16, #tpu.memory_space<vmem>>, %arg2: memref<16x128xf32, #tpu.memory_space<vmem>>, %arg3: memref<32x128xbf16, #tpu.memory_space<vmem>>, %arg4: memref<128x256xbf16, #tpu.memory_space<vmem>>, %arg5: memref<1x256xf32, #tpu.memory_space<vmem>>, %arg6: memref<1x256xf32, #tpu.memory_space<vmem>>, %arg7: memref<256x512xbf16, #tpu.memory_space<vmem>>, %arg8: memref<1x512xf32, #tpu.memory_space<vmem>>, %arg9: memref<1x512xf32, #tpu.memory_space<vmem>>, %arg10: memref<512x1024xbf16, #tpu.memory_space<vmem>>, %arg11: memref<1x1024xf32, #tpu.memory_space<vmem>>, %arg12: memref<1x1024xf32, #tpu.memory_space<vmem>>, %arg13: memref<16x1024xbf16, #tpu.memory_space<vmem>>) attributes {dimension_semantics = [], scalar_prefetch = 0 : i64, scratch_operands = 0 : i64, tpu.core_type = #tpu.core_type<tc>} {
    %c0 = arith.constant 0 : index
    %c0_0 = arith.constant 0 : index
    %0 = vector.load %arg0[%c0, %c0_0] : memref<16x1xf32, #tpu.memory_space<vmem>>, vector<16x1xf32>
    %c0_1 = arith.constant 0 : index
    %c0_2 = arith.constant 0 : index
    %1 = vector.load %arg1[%c0_1, %c0_2] : memref<16x32xbf16, #tpu.memory_space<vmem>>, vector<16x32xbf16>
    %c0_3 = arith.constant 0 : index
    %c0_4 = arith.constant 0 : index
    %2 = vector.load %arg3[%c0_3, %c0_4] : memref<32x128xbf16, #tpu.memory_space<vmem>>, vector<32x128xbf16>
    %cst = arith.constant dense<0.000000e+00> : vector<16x128xf32>
    %3 = tpu.matmul %1, %2, %cst {dimension_numbers = #tpu.dot_dimension_numbers<[1], [0], [0], [1], [0, 0, 1, 1], [], []>} : vector<16x32xbf16>, vector<32x128xbf16>, vector<16x128xf32> -> vector<16x128xf32>
    %c0_5 = arith.constant 0 : index
    %c0_6 = arith.constant 0 : index
    %4 = vector.load %arg2[%c0_5, %c0_6] : memref<16x128xf32, #tpu.memory_space<vmem>>, vector<16x128xf32>
    %5 = arith.addf %3, %4 : vector<16x128xf32>
    %cst_7 = arith.constant 0.000000e+00 : f32
    %6 = vector.broadcast %cst_7 : f32 to vector<16x128xf32>
    %7 = arith.cmpf ogt, %5, %6 : vector<16x128xf32>
    %cst_8 = arith.constant 2.000000e-01 : f32
    %8 = vector.broadcast %cst_8 : f32 to vector<16x128xf32>
    %9 = arith.mulf %8, %5 : vector<16x128xf32>
    %10 = arith.select %7, %5, %9 : vector<16x128xi1>, vector<16x128xf32>
    %11 = arith.truncf %10 : vector<16x128xf32> to vector<16x128xbf16>
    %c0_9 = arith.constant 0 : index
    %c0_10 = arith.constant 0 : index
    %12 = vector.load %arg4[%c0_9, %c0_10] : memref<128x256xbf16, #tpu.memory_space<vmem>>, vector<128x256xbf16>
    %cst_11 = arith.constant dense<0.000000e+00> : vector<16x256xf32>
    %13 = tpu.matmul %11, %12, %cst_11 {dimension_numbers = #tpu.dot_dimension_numbers<[1], [0], [0], [1], [0, 0, 1, 1], [], []>} : vector<16x128xbf16>, vector<128x256xbf16>, vector<16x256xf32> -> vector<16x256xf32>
    %c0_12 = arith.constant 0 : index
    %c0_13 = arith.constant 0 : index
    %14 = vector.load %arg5[%c0_12, %c0_13] : memref<1x256xf32, #tpu.memory_space<vmem>>, vector<1x256xf32>
    %c0_14 = arith.constant 0 : index
    %c0_15 = arith.constant 0 : index
    %15 = vector.load %arg6[%c0_14, %c0_15] : memref<1x256xf32, #tpu.memory_space<vmem>>, vector<1x256xf32>
    %16 = vector.broadcast %0 : vector<16x1xf32> to vector<16x256xf32>
    %17 = arith.mulf %13, %16 : vector<16x256xf32>
    %cst_16 = arith.constant dense<0.000000e+00> : vector<256xf32>
    %18 = vector.multi_reduction <add>, %17, %cst_16 [0] : vector<16x256xf32> to vector<256xf32>
    %19 = vector.shape_cast %18 : vector<256xf32> to vector<1x256xf32>
    %cst_17 = arith.constant 5.000000e-01 : f32
    %20 = vector.broadcast %cst_17 : f32 to vector<1x256xf32>
    %21 = arith.mulf %19, %20 : vector<1x256xf32>
    %22 = vector.broadcast %21 : vector<1x256xf32> to vector<16x256xf32>
    %23 = arith.subf %13, %22 : vector<16x256xf32>
    %24 = vector.broadcast %0 : vector<16x1xf32> to vector<16x256xf32>
    %25 = arith.mulf %23, %24 : vector<16x256xf32>
    %26 = arith.mulf %25, %25 : vector<16x256xf32>
    %cst_18 = arith.constant dense<0.000000e+00> : vector<256xf32>
    %27 = vector.multi_reduction <add>, %26, %cst_18 [0] : vector<16x256xf32> to vector<256xf32>
    %28 = vector.shape_cast %27 : vector<256xf32> to vector<1x256xf32>
    %cst_19 = arith.constant 5.000000e-01 : f32
    %29 = vector.broadcast %cst_19 : f32 to vector<1x256xf32>
    %30 = arith.mulf %28, %29 : vector<1x256xf32>
    %cst_20 = arith.constant 9.99999974E-6 : f32
    %31 = vector.broadcast %cst_20 : f32 to vector<1x256xf32>
    %32 = arith.addf %30, %31 : vector<1x256xf32>
    %33 = math.rsqrt %32 : vector<1x256xf32>
    %34 = arith.mulf %14, %33 : vector<1x256xf32>
    %35 = arith.mulf %21, %34 : vector<1x256xf32>
    %36 = arith.subf %15, %35 : vector<1x256xf32>
    %37 = vector.broadcast %34 : vector<1x256xf32> to vector<16x256xf32>
    %38 = arith.mulf %13, %37 : vector<16x256xf32>
    %39 = vector.broadcast %36 : vector<1x256xf32> to vector<16x256xf32>
    %40 = arith.addf %38, %39 : vector<16x256xf32>
    %cst_21 = arith.constant 0.000000e+00 : f32
    %41 = vector.broadcast %cst_21 : f32 to vector<16x256xf32>
    %42 = arith.cmpf ogt, %40, %41 : vector<16x256xf32>
    %cst_22 = arith.constant 2.000000e-01 : f32
    %43 = vector.broadcast %cst_22 : f32 to vector<16x256xf32>
    %44 = arith.mulf %43, %40 : vector<16x256xf32>
    %45 = arith.select %42, %40, %44 : vector<16x256xi1>, vector<16x256xf32>
    %46 = arith.truncf %45 : vector<16x256xf32> to vector<16x256xbf16>
    %c0_23 = arith.constant 0 : index
    %c0_24 = arith.constant 0 : index
    %47 = vector.load %arg7[%c0_23, %c0_24] : memref<256x512xbf16, #tpu.memory_space<vmem>>, vector<256x512xbf16>
    %cst_25 = arith.constant dense<0.000000e+00> : vector<16x512xf32>
    %48 = tpu.matmul %46, %47, %cst_25 {dimension_numbers = #tpu.dot_dimension_numbers<[1], [0], [0], [1], [0, 0, 1, 1], [], []>} : vector<16x256xbf16>, vector<256x512xbf16>, vector<16x512xf32> -> vector<16x512xf32>
    %c0_26 = arith.constant 0 : index
    %c0_27 = arith.constant 0 : index
    %49 = vector.load %arg8[%c0_26, %c0_27] : memref<1x512xf32, #tpu.memory_space<vmem>>, vector<1x512xf32>
    %c0_28 = arith.constant 0 : index
    %c0_29 = arith.constant 0 : index
    %50 = vector.load %arg9[%c0_28, %c0_29] : memref<1x512xf32, #tpu.memory_space<vmem>>, vector<1x512xf32>
    %51 = vector.broadcast %0 : vector<16x1xf32> to vector<16x512xf32>
    %52 = arith.mulf %48, %51 : vector<16x512xf32>
    %cst_30 = arith.constant dense<0.000000e+00> : vector<512xf32>
    %53 = vector.multi_reduction <add>, %52, %cst_30 [0] : vector<16x512xf32> to vector<512xf32>
    %54 = vector.shape_cast %53 : vector<512xf32> to vector<1x512xf32>
    %cst_31 = arith.constant 5.000000e-01 : f32
    %55 = vector.broadcast %cst_31 : f32 to vector<1x512xf32>
    %56 = arith.mulf %54, %55 : vector<1x512xf32>
    %57 = vector.broadcast %56 : vector<1x512xf32> to vector<16x512xf32>
    %58 = arith.subf %48, %57 : vector<16x512xf32>
    %59 = vector.broadcast %0 : vector<16x1xf32> to vector<16x512xf32>
    %60 = arith.mulf %58, %59 : vector<16x512xf32>
    %61 = arith.mulf %60, %60 : vector<16x512xf32>
    %cst_32 = arith.constant dense<0.000000e+00> : vector<512xf32>
    %62 = vector.multi_reduction <add>, %61, %cst_32 [0] : vector<16x512xf32> to vector<512xf32>
    %63 = vector.shape_cast %62 : vector<512xf32> to vector<1x512xf32>
    %cst_33 = arith.constant 5.000000e-01 : f32
    %64 = vector.broadcast %cst_33 : f32 to vector<1x512xf32>
    %65 = arith.mulf %63, %64 : vector<1x512xf32>
    %cst_34 = arith.constant 9.99999974E-6 : f32
    %66 = vector.broadcast %cst_34 : f32 to vector<1x512xf32>
    %67 = arith.addf %65, %66 : vector<1x512xf32>
    %68 = math.rsqrt %67 : vector<1x512xf32>
    %69 = arith.mulf %49, %68 : vector<1x512xf32>
    %70 = arith.mulf %56, %69 : vector<1x512xf32>
    %71 = arith.subf %50, %70 : vector<1x512xf32>
    %72 = vector.broadcast %69 : vector<1x512xf32> to vector<16x512xf32>
    %73 = arith.mulf %48, %72 : vector<16x512xf32>
    %74 = vector.broadcast %71 : vector<1x512xf32> to vector<16x512xf32>
    %75 = arith.addf %73, %74 : vector<16x512xf32>
    %cst_35 = arith.constant 0.000000e+00 : f32
    %76 = vector.broadcast %cst_35 : f32 to vector<16x512xf32>
    %77 = arith.cmpf ogt, %75, %76 : vector<16x512xf32>
    %cst_36 = arith.constant 2.000000e-01 : f32
    %78 = vector.broadcast %cst_36 : f32 to vector<16x512xf32>
    %79 = arith.mulf %78, %75 : vector<16x512xf32>
    %80 = arith.select %77, %75, %79 : vector<16x512xi1>, vector<16x512xf32>
    %81 = arith.truncf %80 : vector<16x512xf32> to vector<16x512xbf16>
    %c0_37 = arith.constant 0 : index
    %c0_38 = arith.constant 0 : index
    %82 = vector.load %arg10[%c0_37, %c0_38] : memref<512x1024xbf16, #tpu.memory_space<vmem>>, vector<512x1024xbf16>
    %cst_39 = arith.constant dense<0.000000e+00> : vector<16x1024xf32>
    %83 = tpu.matmul %81, %82, %cst_39 {dimension_numbers = #tpu.dot_dimension_numbers<[1], [0], [0], [1], [0, 0, 1, 1], [], []>} : vector<16x512xbf16>, vector<512x1024xbf16>, vector<16x1024xf32> -> vector<16x1024xf32>
    %c0_40 = arith.constant 0 : index
    %c0_41 = arith.constant 0 : index
    %84 = vector.load %arg11[%c0_40, %c0_41] : memref<1x1024xf32, #tpu.memory_space<vmem>>, vector<1x1024xf32>
    %c0_42 = arith.constant 0 : index
    %c0_43 = arith.constant 0 : index
    %85 = vector.load %arg12[%c0_42, %c0_43] : memref<1x1024xf32, #tpu.memory_space<vmem>>, vector<1x1024xf32>
    %86 = vector.broadcast %0 : vector<16x1xf32> to vector<16x1024xf32>
    %87 = arith.mulf %83, %86 : vector<16x1024xf32>
    %cst_44 = arith.constant dense<0.000000e+00> : vector<1024xf32>
    %88 = vector.multi_reduction <add>, %87, %cst_44 [0] : vector<16x1024xf32> to vector<1024xf32>
    %89 = vector.shape_cast %88 : vector<1024xf32> to vector<1x1024xf32>
    %cst_45 = arith.constant 5.000000e-01 : f32
    %90 = vector.broadcast %cst_45 : f32 to vector<1x1024xf32>
    %91 = arith.mulf %89, %90 : vector<1x1024xf32>
    %92 = vector.broadcast %91 : vector<1x1024xf32> to vector<16x1024xf32>
    %93 = arith.subf %83, %92 : vector<16x1024xf32>
    %94 = vector.broadcast %0 : vector<16x1xf32> to vector<16x1024xf32>
    %95 = arith.mulf %93, %94 : vector<16x1024xf32>
    %96 = arith.mulf %95, %95 : vector<16x1024xf32>
    %cst_46 = arith.constant dense<0.000000e+00> : vector<1024xf32>
    %97 = vector.multi_reduction <add>, %96, %cst_46 [0] : vector<16x1024xf32> to vector<1024xf32>
    %98 = vector.shape_cast %97 : vector<1024xf32> to vector<1x1024xf32>
    %cst_47 = arith.constant 5.000000e-01 : f32
    %99 = vector.broadcast %cst_47 : f32 to vector<1x1024xf32>
    %100 = arith.mulf %98, %99 : vector<1x1024xf32>
    %cst_48 = arith.constant 9.99999974E-6 : f32
    %101 = vector.broadcast %cst_48 : f32 to vector<1x1024xf32>
    %102 = arith.addf %100, %101 : vector<1x1024xf32>
    %103 = math.rsqrt %102 : vector<1x1024xf32>
    %104 = arith.mulf %84, %103 : vector<1x1024xf32>
    %105 = arith.mulf %91, %104 : vector<1x1024xf32>
    %106 = arith.subf %85, %105 : vector<1x1024xf32>
    %107 = vector.broadcast %104 : vector<1x1024xf32> to vector<16x1024xf32>
    %108 = arith.mulf %83, %107 : vector<16x1024xf32>
    %109 = vector.broadcast %106 : vector<1x1024xf32> to vector<16x1024xf32>
    %110 = arith.addf %108, %109 : vector<16x1024xf32>
    %cst_49 = arith.constant 0.000000e+00 : f32
    %111 = vector.broadcast %cst_49 : f32 to vector<16x1024xf32>
    %112 = arith.cmpf ogt, %110, %111 : vector<16x1024xf32>
    %cst_50 = arith.constant 2.000000e-01 : f32
    %113 = vector.broadcast %cst_50 : f32 to vector<16x1024xf32>
    %114 = arith.mulf %113, %110 : vector<16x1024xf32>
    %115 = arith.select %112, %110, %114 : vector<16x1024xi1>, vector<16x1024xf32>
    %116 = arith.truncf %115 : vector<16x1024xf32> to vector<16x1024xbf16>
    %c0_51 = arith.constant 0 : index
    %c0_52 = arith.constant 0 : index
    %117 = vector.load %arg13[%c0_51, %c0_52] : memref<16x1024xbf16, #tpu.memory_space<vmem>>, vector<16x1024xbf16>
    tpu.vector_store %arg13[%c0_51, %c0_52], %116 {strides = array<i32>} : memref<16x1024xbf16, #tpu.memory_space<vmem>>, vector<16x1024xbf16>,
    return
  }
}

module attributes {stable_mosaic.version = 11 : i64} {
  func.func @layer5_kernel(%arg0: i32, %arg1: memref<16x1024xbf16, #tpu.memory_space<vmem>>, %arg2: memref<1x1024x512xbf16, #tpu.memory_space<vmem>>, %arg3: memref<1x512xf32, #tpu.memory_space<vmem>>, %arg4: memref<16x512xf32, #tpu.memory_space<vmem>>) attributes {dimension_semantics = [#tpu.dimension_semantics<parallel>], iteration_bounds = array<i64: 1>, scalar_prefetch = 0 : i64, scratch_operands = 0 : i64, tpu.core_type = #tpu.core_type<tc>, window_params = [{pipeline_mode = #tpu.pipeline_mode<synchronous>, transform_indices = @transform_0, window_bounds = array<i64: 16, 1024>}, {transform_indices = @transform_1, window_bounds = array<i64: 1, 1024, 512>}, {transform_indices = @transform_2, window_bounds = array<i64: 1, 512>}, {transform_indices = @transform_3, window_bounds = array<i64: 16, 512>}]} {
    %c0 = arith.constant 0 : index
    %c0_0 = arith.constant 0 : index
    %0 = vector.load %arg1[%c0, %c0_0] : memref<16x1024xbf16, #tpu.memory_space<vmem>>, vector<16x1024xbf16>
    %c0_1 = arith.constant 0 : index
    %c0_2 = arith.constant 0 : index
    %c0_3 = arith.constant 0 : index
    %1 = vector.load %arg2[%c0_1, %c0_2, %c0_3] : memref<1x1024x512xbf16, #tpu.memory_space<vmem>>, vector<1x1024x512xbf16>
    %2 = vector.shape_cast %1 : vector<1x1024x512xbf16> to vector<1024x512xbf16>
    %cst = arith.constant dense<0.000000e+00> : vector<16x512xf32>
    %3 = tpu.matmul %0, %2, %cst {dimension_numbers = #tpu.dot_dimension_numbers<[1], [0], [0], [1], [0, 0, 1, 1], [], []>} : vector<16x1024xbf16>, vector<1024x512xbf16>, vector<16x512xf32> -> vector<16x512xf32>
    %c0_4 = arith.constant 0 : index
    %c0_5 = arith.constant 0 : index
    %4 = vector.load %arg3[%c0_4, %c0_5] : memref<1x512xf32, #tpu.memory_space<vmem>>, vector<1x512xf32>
    %5 = vector.broadcast %4 : vector<1x512xf32> to vector<16x512xf32>
    %6 = arith.addf %3, %5 : vector<16x512xf32>
    %7 = math.tanh %6 : vector<16x512xf32>
    %c0_6 = arith.constant 0 : index
    %c0_7 = arith.constant 0 : index
    %8 = vector.load %arg4[%c0_6, %c0_7] : memref<16x512xf32, #tpu.memory_space<vmem>>, vector<16x512xf32>
    tpu.vector_store %arg4[%c0_6, %c0_7], %7 {strides = array<i32>} : memref<16x512xf32, #tpu.memory_space<vmem>>, vector<16x512xf32>,
    return
  }
  func.func @transform_0(%arg0: i32) -> (i32, i32) {
    %c0_i32 = arith.constant 0 : i32
    %c0_i32_0 = arith.constant 0 : i32
    %c0_i32_1 = arith.constant 0 : i32
    return %c0_i32, %c0_i32_0 : i32, i32
  }
  func.func @transform_1(%arg0: i32) -> (i32, i32, i32) {
    %c0_i32 = arith.constant 0 : i32
    %c0_i32_0 = arith.constant 0 : i32
    %c0_i32_1 = arith.constant 0 : i32
    return %arg0, %c0_i32, %c0_i32_0 : i32, i32, i32
  }
  func.func @transform_2(%arg0: i32) -> (i32, i32) {
    %c0_i32 = arith.constant 0 : i32
    %c0_i32_0 = arith.constant 0 : i32
    return %c0_i32, %arg0 : i32, i32
  }
  func.func @transform_3(%arg0: i32) -> (i32, i32) {
    %c0_i32 = arith.constant 0 : i32
    %c0_i32_0 = arith.constant 0 : i32
    return %c0_i32, %arg0 : i32, i32
  }
}

</mosaic_0001>

<bundles_post_ra>
// kernel: generator_forward.3
= control target key start
LH: loop header
LB: loop body
LE: loop exit
PB: predicated region body
PF: predicated region fallthrough
CT: control target
= control target key end

     0   :  { %s3543_s1 = inlined_call_operand.vmem [shape: bf16[1,1024,512], index: 1, kind: input, shape index: {}]   ;;  %s3544_s0 = inlined_call_operand.vmem [shape: bf16[16,1024], index: 0, kind: input, shape index: {}]   ;;  %s3545_s2 = inlined_call_operand.vmem [shape: f32[1,512], index: 2, kind: input, shape index: {}]   ;;  %s3546_s3 = inlined_call_operand.vmem [shape: f32[16,512], index: 3, kind: output, shape index: {}]  }
   0x1   :  { %v2280_v0 = vld [vmem:[%s3543_s1 + $0x4] ss:$16 sps:$4 sm:$0xff]   ;;  %v2282_v1 = vld [vmem:[%s3543_s1 + $0xc] ss:$16 sps:$4 sm:$0xff]   ;;  %v2284_v2 = vld [vmem:[%s3543_s1] ss:$16 sps:$4 sm:$0xff]  }
   0x2   :  { %1620 = vmatprep.subr.bf16.mxu0 %v2280_v0  ;;  %v2285_v3 = vld [vmem:[%s3543_s1 + $0x8] ss:$16 sps:$4 sm:$0xff]   ;;  %1792 = vmatprep.subr.bf16.mxu1 %v2282_v1  ;;  %v2286_v4 = vld [vmem:[%s3543_s1 + $0x24] ss:$16 sps:$4 sm:$0xff]   ;;  %v2288_v5 = vld [vmem:[%s3543_s1 + $0x2c] ss:$16 sps:$4 sm:$0xff]  }
   0x3   :  { %1621 = vmatpush1.bf16.msra.mxu0 %v2284_v2  ;;  %1793 = vmatpush1.bf16.msra.mxu1 %v2285_v3  ;;  %v2290_v6 = vld [vmem:[%s3543_s1 + $0x20] ss:$16 sps:$4 sm:$0xff]   ;;  %v2291_v7 = vld [vmem:[%s3543_s1 + $0x28] ss:$16 sps:$4 sm:$0xff]   ;;  %v2292_v8 = vld [vmem:[%s3543_s1 + $0x44] ss:$16 sps:$4 sm:$0xff]  }
   0x4   :  { %1622 = vmatprep.subr.bf16.mxu0 %v2286_v4  ;;  %1794 = vmatprep.subr.bf16.mxu1 %v2288_v5  ;;  %v2294_v9 = vld [vmem:[%s3543_s1 + $0x4c] ss:$16 sps:$4 sm:$0xff]   ;;  %v2296_v10 = vld [vmem:[%s3543_s1 + $0x40] ss:$16 sps:$4 sm:$0xff]   ;;  %v2297_v11 = vld [vmem:[%s3543_s1 + $0x48] ss:$16 sps:$4 sm:$0xff]  }
   0x5   :  { %v2298_v12 = vld [vmem:[%s3543_s1 + $0x64] ss:$16 sps:$4 sm:$0xff]   ;;  %v2300_v13 = vld [vmem:[%s3543_s1 + $0x6c] ss:$16 sps:$4 sm:$0xff]   ;;  %v2302_v14 = vld [vmem:[%s3543_s1 + $0x60] ss:$16 sps:$4 sm:$0xff]  }
   0x6   :  { %v2303_v15 = vld [vmem:[%s3543_s1 + $0x68] ss:$16 sps:$4 sm:$0xff]   ;;  %v2304_v16 = vld [vmem:[%s3543_s1 + $0x84] ss:$16 sps:$4 sm:$0xff]   ;;  %v2306_v17 = vld [vmem:[%s3543_s1 + $0x8c] ss:$16 sps:$4 sm:$0xff]  }
   0x7   :  { %1623 = vmatpush1.bf16.msra.mxu0 %v2290_v6  ;;  %1795 = vmatpush1.bf16.msra.mxu1 %v2291_v7  ;;  %v2308_v18 = vld [vmem:[%s3543_s1 + $0x80] ss:$16 sps:$4 sm:$0xff]   ;;  %v2309_v19 = vld [vmem:[%s3543_s1 + $0x88] ss:$16 sps:$4 sm:$0xff]   ;;  %v2310_v20 = vld [vmem:[%s3543_s1 + $0xa4] ss:$16 sps:$4 sm:$0xff]  }
   0x8   :  { %1624 = vmatprep.subr.bf16.mxu0 %v2292_v8  ;;  %1796 = vmatprep.subr.bf16.mxu1 %v2294_v9  ;;  %v2312_v21 = vld [vmem:[%s3543_s1 + $0xac] ss:$16 sps:$4 sm:$0xff]   ;;  %v2314_v22 = vld [vmem:[%s3543_s1 + $0xa0] ss:$16 sps:$4 sm:$0xff]   ;;  %v2315_v23 = vld [vmem:[%s3543_s1 + $0xa8] ss:$16 sps:$4 sm:$0xff]  }
   0x9   :  { %v2316_v24 = vld [vmem:[%s3543_s1 + $0xc4] ss:$16 sps:$4 sm:$0xff]   ;;  %v2318_v25 = vld [vmem:[%s3543_s1 + $0xcc] ss:$16 sps:$4 sm:$0xff]   ;;  %v2320_v26 = vld [vmem:[%s3543_s1 + $0xc0] ss:$16 sps:$4 sm:$0xff]  }
   0xa   :  { %v2321_v27 = vld [vmem:[%s3543_s1 + $0xc8] ss:$16 sps:$4 sm:$0xff]   ;;  %v2322_v28 = vld [vmem:[%s3543_s1 + $0xe4] ss:$16 sps:$4 sm:$0xff]   ;;  %v2324_v29 = vld [vmem:[%s3543_s1 + $0xec] ss:$16 sps:$4 sm:$0xff]  }
   0xb   :  { %1625 = vmatpush1.bf16.msra.mxu0 %v2296_v10  ;;  %1797 = vmatpush1.bf16.msra.mxu1 %v2297_v11  ;;  %v2326_v30 = vld [vmem:[%s3543_s1 + $0xe0] ss:$16 sps:$4 sm:$0xff]   ;;  %v2327_v31 = vld [vmem:[%s3543_s1 + $0xe8] ss:$16 sps:$4 sm:$0xff]   ;;  %v2328_v32 = vld [vmem:[%s3543_s1 + $0x104] ss:$16 sps:$4 sm:$0xff]  }
   0xc   :  { %1626 = vmatprep.subr.bf16.mxu0 %v2298_v12  ;;  %1798 = vmatprep.subr.bf16.mxu1 %v2300_v13  ;;  %v2330_v33 = vld [vmem:[%s3543_s1 + $0x10c] ss:$16 sps:$4 sm:$0xff]   ;;  %v2332_v34 = vld [vmem:[%s3543_s1 + $0x100] ss:$16 sps:$4 sm:$0xff]   ;;  %v2333_v35 = vld [vmem:[%s3543_s1 + $0x108] ss:$16 sps:$4 sm:$0xff]  }
   0xd   :  { %v2334_v36 = vld [vmem:[%s3543_s1 + $0x124] ss:$16 sps:$4 sm:$0xff]   ;;  %v2336_v37 = vld [vmem:[%s3543_s1 + $0x12c] ss:$16 sps:$4 sm:$0xff]   ;;  %v2338_v38 = vld [vmem:[%s3543_s1 + $0x120] ss:$16 sps:$4 sm:$0xff]  }
   0xe   :  { %v2339_v39 = vld [vmem:[%s3543_s1 + $0x128] ss:$16 sps:$4 sm:$0xff]   ;;  %v2340_v40 = vld [vmem:[%s3543_s1 + $0x144] ss:$16 sps:$4 sm:$0xff]   ;;  %v2342_v41 = vld [vmem:[%s3543_s1 + $0x14c] ss:$16 sps:$4 sm:$0xff]  }
   0xf   :  { %1627 = vmatpush1.bf16.msra.mxu0 %v2302_v14  ;;  %1799 = vmatpush1.bf16.msra.mxu1 %v2303_v15  ;;  %v2344_v42 = vld [vmem:[%s3543_s1 + $0x140] ss:$16 sps:$4 sm:$0xff]   ;;  %v2345_v43 = vld [vmem:[%s3543_s1 + $0x148] ss:$16 sps:$4 sm:$0xff]   ;;  %v2346_v44 = vld [vmem:[%s3543_s1 + $0x164] ss:$16 sps:$4 sm:$0xff]  }
  0x10   :  { %1628 = vmatprep.subr.bf16.mxu0 %v2304_v16  ;;  %1800 = vmatprep.subr.bf16.mxu1 %v2306_v17  ;;  %v2348_v45 = vld [vmem:[%s3543_s1 + $0x16c] ss:$16 sps:$4 sm:$0xff]   ;;  %v14_v46 = vld [vmem:[%s3544_s0] sm:$0xff]  ;;  %v2351_v49 = vld [vmem:[%s3543_s1 + $0x168] ss:$16 sps:$4 sm:$0xff]  }
  0x11   :  { %v18_v47 = vld [vmem:[%s3544_s0 + $0x20] sm:$0xff]  ;;  %v2354_v52 = vld [vmem:[%s3543_s1 + $0x18c] ss:$16 sps:$4 sm:$0xff]   ;;  %v2357_v54 = vld [vmem:[%s3543_s1 + $0x188] ss:$16 sps:$4 sm:$0xff]  }
  0x12   :  { %v2350_v48 = vld [vmem:[%s3543_s1 + $0x160] ss:$16 sps:$4 sm:$0xff]   ;;  %v1985_v50 = vcombine.high %v14_v46, %v18_v47  ;;  %v2352_v51 = vld [vmem:[%s3543_s1 + $0x184] ss:$16 sps:$4 sm:$0xff]   ;;  %v2360_v56 = vld [vmem:[%s3543_s1 + $0x1ac] ss:$16 sps:$4 sm:$0xff]   ;;  %v1984_v5 = vcombine.low %v14_v46, %v18_v47 }
  0x13   :  { %1629 = vmatpush1.bf16.msra.mxu0 %v2308_v18  ;;  %1801 = vmatpush1.bf16.msra.mxu1 %v2309_v19  ;;  %v2356_v53 = vld [vmem:[%s3543_s1 + $0x180] ss:$16 sps:$4 sm:$0xff]   ;;  %v2358_v55 = vld [vmem:[%s3543_s1 + $0x1a4] ss:$16 sps:$4 sm:$0xff]   ;;  %v2363_v58 = vld [vmem:[%s3543_s1 + $0x1a8] ss:$16 sps:$4 sm:$0xff]  }
  0x14   :  { %1630 = vmatprep.subr.bf16.mxu0 %v2310_v20  ;;  %1802 = vmatprep.subr.bf16.mxu1 %v2312_v21  ;;  %v2362_v57 = vld [vmem:[%s3543_s1 + $0x1a0] ss:$16 sps:$4 sm:$0xff]   ;;  %v2364_v59 = vld [vmem:[%s3543_s1 + $0x1c4] ss:$16 sps:$4 sm:$0xff]   ;;  %v2366_v60 = vld [vmem:[%s3543_s1 + $0x1cc] ss:$16 sps:$4 sm:$0xff]  }
  0x15   :  { %1652 = vmatprep.mubr.bf16.mxu0 %v1985_v50  ;;  %1824 = vmatprep.mubr.bf16.mxu1 %v1985_v50  ;;  %v2368_v61 = vld [vmem:[%s3543_s1 + $0x1c0] ss:$16 sps:$4 sm:$0xff]   ;;  %v2369_v62 = vld [vmem:[%s3543_s1 + $0x1c8] ss:$16 sps:$4 sm:$0xff]   ;;  %v2370_v63 = vld [vmem:[%s3543_s1 + $0x1e4] ss:$16 sps:$4 sm:$0xff]  }
  0x16   :  { %v2372_v0 = vld [vmem:[%s3543_s1 + $0x1ec] ss:$16 sps:$4 sm:$0xff]   ;;  %v2374_v1 = vld [vmem:[%s3543_s1 + $0x1e0] ss:$16 sps:$4 sm:$0xff]   ;;  %v2375_v2 = vld [vmem:[%s3543_s1 + $0x1e8] ss:$16 sps:$4 sm:$0xff]  }
  0x17   :  { %1631 = vmatpush1.bf16.msra.mxu0 %v2314_v22  ;;  %1803 = vmatpush1.bf16.msra.mxu1 %v2315_v23  ;;  %v2378_v3 = vld [vmem:[%s3543_s1 + $0x204] ss:$16 sps:$4 sm:$0xff]   ;;  %v2381_v4 = vld [vmem:[%s3543_s1 + $0x20c] ss:$16 sps:$4 sm:$0xff]   ;;  %v2376_v6 = vld [vmem:[%s3543_s1 + $0x200] ss:$16 sps:$4 sm:$0xff]  }
  0x18   :  { %1632 = vmatprep.subr.bf16.mxu0 %v2316_v24  ;;  %1804 = vmatprep.subr.bf16.mxu1 %v2318_v25  ;;  %v2379_v7 = vld [vmem:[%s3543_s1 + $0x208] ss:$16 sps:$4 sm:$0xff]   ;;  %v2384_v8 = vld [vmem:[%s3543_s1 + $0x224] ss:$16 sps:$4 sm:$0xff]   ;;  %v2387_v9 = vld [vmem:[%s3543_s1 + $0x22c] ss:$16 sps:$4 sm:$0xff]  }
  0x19   :  { %v2382_v10 = vld [vmem:[%s3543_s1 + $0x220] ss:$16 sps:$4 sm:$0xff]   ;;  %v2385_v11 = vld [vmem:[%s3543_s1 + $0x228] ss:$16 sps:$4 sm:$0xff]   ;;  %v2390_v12 = vld [vmem:[%s3543_s1 + $0x244] ss:$16 sps:$4 sm:$0xff]  }
  0x1a   :  { %v2393_v13 = vld [vmem:[%s3543_s1 + $0x24c] ss:$16 sps:$4 sm:$0xff]   ;;  %v2388_v14 = vld [vmem:[%s3543_s1 + $0x240] ss:$16 sps:$4 sm:$0xff]   ;;  %v2391_v15 = vld [vmem:[%s3543_s1 + $0x248] ss:$16 sps:$4 sm:$0xff]  }
  0x1b   :  { %1633 = vmatpush1.bf16.msra.mxu0 %v2320_v26  ;;  %1805 = vmatpush1.bf16.msra.mxu1 %v2321_v27  ;;  %v2396_v16 = vld [vmem:[%s3543_s1 + $0x264] ss:$16 sps:$4 sm:$0xff]   ;;  %v2399_v17 = vld [vmem:[%s3543_s1 + $0x26c] ss:$16 sps:$4 sm:$0xff]   ;;  %v2394_v18 = vld [vmem:[%s3543_s1 + $0x260] ss:$16 sps:$4 sm:$0xff]  }
  0x1c   :  { %1634 = vmatprep.subr.bf16.mxu0 %v2322_v28  ;;  %1806 = vmatprep.subr.bf16.mxu1 %v2324_v29  ;;  %v2397_v19 = vld [vmem:[%s3543_s1 + $0x268] ss:$16 sps:$4 sm:$0xff]   ;;  %v2402_v20 = vld [vmem:[%s3543_s1 + $0x284] ss:$16 sps:$4 sm:$0xff]   ;;  %v2405_v21 = vld [vmem:[%s3543_s1 + $0x28c] ss:$16 sps:$4 sm:$0xff]  }
  0x1d   :  { %v2400_v22 = vld [vmem:[%s3543_s1 + $0x280] ss:$16 sps:$4 sm:$0xff]   ;;  %v2403_v23 = vld [vmem:[%s3543_s1 + $0x288] ss:$16 sps:$4 sm:$0xff]   ;;  %v2408_v24 = vld [vmem:[%s3543_s1 + $0x2a4] ss:$16 sps:$4 sm:$0xff]  }
  0x1e   :  { %v2411_v25 = vld [vmem:[%s3543_s1 + $0x2ac] ss:$16 sps:$4 sm:$0xff]   ;;  %v2406_v26 = vld [vmem:[%s3543_s1 + $0x2a0] ss:$16 sps:$4 sm:$0xff]   ;;  %v2409_v27 = vld [vmem:[%s3543_s1 + $0x2a8] ss:$16 sps:$4 sm:$0xff]  }
  0x1f   :  { %1635 = vmatpush1.bf16.msra.mxu0 %v2326_v30  ;;  %1807 = vmatpush1.bf16.msra.mxu1 %v2327_v31  ;;  %v2414_v28 = vld [vmem:[%s3543_s1 + $0x2c4] ss:$16 sps:$4 sm:$0xff]   ;;  %v2417_v29 = vld [vmem:[%s3543_s1 + $0x2cc] ss:$16 sps:$4 sm:$0xff]   ;;  %v2433_v46 = vld [vmem:[%s3543_s1 + $0x328] ss:$16 sps:$4 sm:$0xff]  }
  0x20   :  { %1636 = vmatprep.subr.bf16.mxu0 %v2328_v32  ;;  %1808 = vmatprep.subr.bf16.mxu1 %v2330_v33  ;;  %v2979_v30 = vld [vmem:[%s3544_s0 + $0x8] sm:$0xff]  ;;  %v2412_v32 = vld [vmem:[%s3543_s1 + $0x2c0] ss:$16 sps:$4 sm:$0xff]   ;;  %v2438_v47 = vld [vmem:[%s3543_s1 + $0x344] ss:$16 sps:$4 sm:$0xff]  }
  0x21   :  { %v2984_v31 = vld [vmem:[%s3544_s0 + $0x28] sm:$0xff] }
  0x22   :  { %v2415_v33 = vld [vmem:[%s3543_s1 + $0x2c8] ss:$16 sps:$4 sm:$0xff]  }
  0x23   :  { %1637 = vmatpush1.bf16.msra.mxu0 %v2332_v34  ;;  %1809 = vmatpush1.bf16.msra.mxu1 %v2333_v35  ;;  %v1987_v34 = vcombine.high %v2979_v30, %v2984_v31  ;;  %v2420_v35 = vld [vmem:[%s3543_s1 + $0x2e4] ss:$16 sps:$4 sm:$0xff]   ;;  %v2439_v50 = vld [vmem:[%s3543_s1 + $0x348] ss:$16 sps:$4 sm:$0xff]  }
  0x24   :  { %1638 = vmatprep.subr.bf16.mxu0 %v2334_v36  ;;  %1810 = vmatprep.subr.bf16.mxu1 %v2336_v37  ;;  %v2423_v36 = vld [vmem:[%s3543_s1 + $0x2ec] ss:$16 sps:$4 sm:$0xff]   ;;  %v2418_v37 = vld [vmem:[%s3543_s1 + $0x2e0] ss:$16 sps:$4 sm:$0xff]  }
  0x27   :  { %1639 = vmatpush1.bf16.msra.mxu0 %v2338_v38  ;;  %1811 = vmatpush1.bf16.msra.mxu1 %v2339_v39  ;;  %v2421_v38 = vld [vmem:[%s3543_s1 + $0x2e8] ss:$16 sps:$4 sm:$0xff]   ;;  %v2426_v39 = vld [vmem:[%s3543_s1 + $0x304] ss:$16 sps:$4 sm:$0xff]  }
  0x28   :  { %1640 = vmatprep.subr.bf16.mxu0 %v2340_v40  ;;  %1812 = vmatprep.subr.bf16.mxu1 %v2342_v41  ;;  %v2429_v40 = vld [vmem:[%s3543_s1 + $0x30c] ss:$16 sps:$4 sm:$0xff]   ;;  %v2424_v41 = vld [vmem:[%s3543_s1 + $0x300] ss:$16 sps:$4 sm:$0xff]  }
  0x2b   :  { %1641 = vmatpush1.bf16.msra.mxu0 %v2344_v42  ;;  %1813 = vmatpush1.bf16.msra.mxu1 %v2345_v43  ;;  %v2427_v42 = vld [vmem:[%s3543_s1 + $0x308] ss:$16 sps:$4 sm:$0xff]   ;;  %v2432_v43 = vld [vmem:[%s3543_s1 + $0x324] ss:$16 sps:$4 sm:$0xff]  }
  0x2c   :  { %1642 = vmatprep.subr.bf16.mxu0 %v2346_v44  ;;  %1814 = vmatprep.subr.bf16.mxu1 %v2348_v45  ;;  %v2435_v44 = vld [vmem:[%s3543_s1 + $0x32c] ss:$16 sps:$4 sm:$0xff]   ;;  %v2430_v45 = vld [vmem:[%s3543_s1 + $0x320] ss:$16 sps:$4 sm:$0xff]  }
  0x2f   :  { %1643 = vmatpush1.bf16.msra.mxu0 %v2350_v48  ;;  %1815 = vmatpush1.bf16.msra.mxu1 %v2351_v49  ;;  %v2441_v48 = vld [vmem:[%s3543_s1 + $0x34c] ss:$16 sps:$4 sm:$0xff]   ;;  %v2436_v49 = vld [vmem:[%s3543_s1 + $0x340] ss:$16 sps:$4 sm:$0xff]  }
  0x30   :  { %1644 = vmatprep.subr.bf16.mxu0 %v2352_v51  ;;  %1816 = vmatprep.subr.bf16.mxu1 %v2354_v52  ;;  %v2444_v51 = vld [vmem:[%s3543_s1 + $0x364] ss:$16 sps:$4 sm:$0xff]   ;;  %v2447_v52 = vld [vmem:[%s3543_s1 + $0x36c] ss:$16 sps:$4 sm:$0xff]  }
  0x33   :  { %1645 = vmatpush1.bf16.msra.mxu0 %v2356_v53  ;;  %1817 = vmatpush1.bf16.msra.mxu1 %v2357_v54  ;;  %v2442_v53 = vld [vmem:[%s3543_s1 + $0x360] ss:$16 sps:$4 sm:$0xff]   ;;  %v2445_v54 = vld [vmem:[%s3543_s1 + $0x368] ss:$16 sps:$4 sm:$0xff]  }
  0x34   :  { %1646 = vmatprep.subr.bf16.mxu0 %v2358_v55  ;;  %1818 = vmatprep.subr.bf16.mxu1 %v2360_v56  ;;  %v2450_v55 = vld [vmem:[%s3543_s1 + $0x384] ss:$16 sps:$4 sm:$0xff]   ;;  %v2453_v56 = vld [vmem:[%s3543_s1 + $0x38c] ss:$16 sps:$4 sm:$0xff]  }
  0x37   :  { %1647 = vmatpush1.bf16.msra.mxu0 %v2362_v57  ;;  %1819 = vmatpush1.bf16.msra.mxu1 %v2363_v58  ;;  %v2448_v57 = vld [vmem:[%s3543_s1 + $0x380] ss:$16 sps:$4 sm:$0xff]   ;;  %v2451_v58 = vld [vmem:[%s3543_s1 + $0x388] ss:$16 sps:$4 sm:$0xff]  }
  0x38   :  { %1648 = vmatprep.subr.bf16.mxu0 %v2364_v59  ;;  %1820 = vmatprep.subr.bf16.mxu1 %v2366_v60  ;;  %v2456_v59 = vld [vmem:[%s3543_s1 + $0x3a4] ss:$16 sps:$4 sm:$0xff]   ;;  %v2459_v60 = vld [vmem:[%s3543_s1 + $0x3ac] ss:$16 sps:$4 sm:$0xff]  }
  0x3b   :  { %1649 = vmatpush1.bf16.msra.mxu0 %v2368_v61  ;;  %1821 = vmatpush1.bf16.msra.mxu1 %v2369_v62  ;;  %v2454_v61 = vld [vmem:[%s3543_s1 + $0x3a0] ss:$16 sps:$4 sm:$0xff]   ;;  %v2457_v62 = vld [vmem:[%s3543_s1 + $0x3a8] ss:$16 sps:$4 sm:$0xff]  }
  0x3c   :  { %1650 = vmatprep.subr.bf16.mxu0 %v2370_v63  ;;  %1822 = vmatprep.subr.bf16.mxu1 %v2372_v0  ;;  %v2462_v63 = vld [vmem:[%s3543_s1 + $0x3c4] ss:$16 sps:$4 sm:$0xff]   ;;  %v2465_v0 = vld [vmem:[%s3543_s1 + $0x3cc] ss:$16 sps:$4 sm:$0xff]  }
  0x3f   :  { %1651 = vmatpush1.bf16.msra.mxu0 %v2374_v1  ;;  %1823 = vmatpush1.bf16.msra.mxu1 %v2375_v2  ;;  %v2460_v1 = vld [vmem:[%s3543_s1 + $0x3c0] ss:$16 sps:$4 sm:$0xff]   ;;  %v2463_v2 = vld [vmem:[%s3543_s1 + $0x3c8] ss:$16 sps:$4 sm:$0xff]  }
  0x40   :  { %1663 = vmatprep.subr.bf16.mxu0 %v2378_v3  ;;  %1835 = vmatprep.subr.bf16.mxu1 %v2381_v4  ;;  %v2468_v3 = vld [vmem:[%s3543_s1 + $0x3e4] ss:$16 sps:$4 sm:$0xff]   ;;  %v2471_v4 = vld [vmem:[%s3543_s1 + $0x3ec] ss:$16 sps:$4 sm:$0xff]  }
  0x42   :  { %1653 = vmatmul.mubr.bf16.vlgmr.msra.gmra.mrb[0].mxu0 %v1984_v5  ;;  %1825 = vmatmul.mubr.bf16.vlgmr.msra.gmra.mrb[0].mxu1 %v1984_v5  ;;  %v2466_v5 = vld [vmem:[%s3543_s1 + $0x3e0] ss:$16 sps:$4 sm:$0xff]  }
  0x43   :  { %1664 = vmatpush1.bf16.msra.mxu0 %v2376_v6  ;;  %1836 = vmatpush1.bf16.msra.mxu1 %v2379_v7  ;;  %v2469_v6 = vld [vmem:[%s3543_s1 + $0x3e8] ss:$16 sps:$4 sm:$0xff]   ;;  %v2474_v7 = vld [vmem:[%s3543_s1 + $0x404] ss:$16 sps:$4 sm:$0xff]  }
  0x44   :  { %1665 = vmatprep.subr.bf16.mxu0 %v2384_v8  ;;  %1837 = vmatprep.subr.bf16.mxu1 %v2387_v9  ;;  %v2477_v8 = vld [vmem:[%s3543_s1 + $0x40c] ss:$16 sps:$4 sm:$0xff]   ;;  %v1986_v9 = vcombine.low %v2979_v30, %v2984_v31  ;;  %v2499_v30 = vld [vmem:[%s3543_s1 + $0x488] ss:$16 sps:$4 sm:$0xff]   ;;  %v2504_v31 = vld [vmem:[%s3543_s1 + $0x4a4] ss:$16 sps:$4 sm:$0xff]  }
  0x45   :  { %1695 = vmatprep.mubr.bf16.mxu0 %v1987_v34  ;;  %1867 = vmatprep.mubr.bf16.mxu1 %v1987_v34  ;;  %v2505_v34 = vld [vmem:[%s3543_s1 + $0x4a8] ss:$16 sps:$4 sm:$0xff]  }
  0x47   :  { %1666 = vmatpush1.bf16.msra.mxu0 %v2382_v10  ;;  %1838 = vmatpush1.bf16.msra.mxu1 %v2385_v11  ;;  %v2472_v10 = vld [vmem:[%s3543_s1 + $0x400] ss:$16 sps:$4 sm:$0xff]   ;;  %v2475_v11 = vld [vmem:[%s3543_s1 + $0x408] ss:$16 sps:$4 sm:$0xff]  }
  0x48   :  { %1667 = vmatprep.subr.bf16.mxu0 %v2390_v12  ;;  %1839 = vmatprep.subr.bf16.mxu1 %v2393_v13  ;;  %v2480_v12 = vld [vmem:[%s3543_s1 + $0x424] ss:$16 sps:$4 sm:$0xff]   ;;  %v2483_v13 = vld [vmem:[%s3543_s1 + $0x42c] ss:$16 sps:$4 sm:$0xff]  }
  0x4b   :  { %1668 = vmatpush1.bf16.msra.mxu0 %v2388_v14  ;;  %1840 = vmatpush1.bf16.msra.mxu1 %v2391_v15  ;;  %v3125_v14 = vld [vmem:[%s3544_s0 + $0x10] sm:$0xff] }
  0x4c   :  { %1669 = vmatprep.subr.bf16.mxu0 %v2396_v16  ;;  %1841 = vmatprep.subr.bf16.mxu1 %v2399_v17  ;;  %v3130_v15 = vld [vmem:[%s3544_s0 + $0x30] sm:$0xff] }
  0x4d   :  { %v1989_v16 = vcombine.high %v3125_v14, %v3130_v15  ;;  %v2478_v17 = vld [vmem:[%s3543_s1 + $0x420] ss:$16 sps:$4 sm:$0xff]  }
  0x4f   :  { %1670 = vmatpush1.bf16.msra.mxu0 %v2394_v18  ;;  %1842 = vmatpush1.bf16.msra.mxu1 %v2397_v19  ;;  %v2481_v18 = vld [vmem:[%s3543_s1 + $0x428] ss:$16 sps:$4 sm:$0xff]   ;;  %v2486_v19 = vld [vmem:[%s3543_s1 + $0x444] ss:$16 sps:$4 sm:$0xff]  }
  0x50   :  { %1671 = vmatprep.subr.bf16.mxu0 %v2402_v20  ;;  %1843 = vmatprep.subr.bf16.mxu1 %v2405_v21  ;;  %v2489_v20 = vld [vmem:[%s3543_s1 + $0x44c] ss:$16 sps:$4 sm:$0xff]   ;;  %v2484_v21 = vld [vmem:[%s3543_s1 + $0x440] ss:$16 sps:$4 sm:$0xff]  }
  0x53   :  { %1672 = vmatpush1.bf16.msra.mxu0 %v2400_v22  ;;  %1844 = vmatpush1.bf16.msra.mxu1 %v2403_v23  ;;  %v2487_v22 = vld [vmem:[%s3543_s1 + $0x448] ss:$16 sps:$4 sm:$0xff]   ;;  %v2492_v23 = vld [vmem:[%s3543_s1 + $0x464] ss:$16 sps:$4 sm:$0xff]  }
  0x54   :  { %1673 = vmatprep.subr.bf16.mxu0 %v2408_v24  ;;  %1845 = vmatprep.subr.bf16.mxu1 %v2411_v25  ;;  %v2495_v24 = vld [vmem:[%s3543_s1 + $0x46c] ss:$16 sps:$4 sm:$0xff]   ;;  %v2490_v25 = vld [vmem:[%s3543_s1 + $0x460] ss:$16 sps:$4 sm:$0xff]  }
  0x57   :  { %1674 = vmatpush1.bf16.msra.mxu0 %v2406_v26  ;;  %1846 = vmatpush1.bf16.msra.mxu1 %v2409_v27  ;;  %v2493_v26 = vld [vmem:[%s3543_s1 + $0x468] ss:$16 sps:$4 sm:$0xff]   ;;  %v2498_v27 = vld [vmem:[%s3543_s1 + $0x484] ss:$16 sps:$4 sm:$0xff]  }
  0x58   :  { %1675 = vmatprep.subr.bf16.mxu0 %v2414_v28  ;;  %1847 = vmatprep.subr.bf16.mxu1 %v2417_v29  ;;  %v2501_v28 = vld [vmem:[%s3543_s1 + $0x48c] ss:$16 sps:$4 sm:$0xff]   ;;  %v2496_v29 = vld [vmem:[%s3543_s1 + $0x480] ss:$16 sps:$4 sm:$0xff]  }
  0x5b   :  { %1676 = vmatpush1.bf16.msra.mxu0 %v2412_v32  ;;  %1848 = vmatpush1.bf16.msra.mxu1 %v2415_v33  ;;  %v2507_v32 = vld [vmem:[%s3543_s1 + $0x4ac] ss:$16 sps:$4 sm:$0xff]   ;;  %v2502_v33 = vld [vmem:[%s3543_s1 + $0x4a0] ss:$16 sps:$4 sm:$0xff]  }
  0x5c   :  { %1677 = vmatprep.subr.bf16.mxu0 %v2420_v35  ;;  %1849 = vmatprep.subr.bf16.mxu1 %v2423_v36  ;;  %v2510_v35 = vld [vmem:[%s3543_s1 + $0x4c4] ss:$16 sps:$4 sm:$0xff]   ;;  %v2513_v36 = vld [vmem:[%s3543_s1 + $0x4cc] ss:$16 sps:$4 sm:$0xff]  }
  0x5f   :  { %1678 = vmatpush1.bf16.msra.mxu0 %v2418_v37  ;;  %1850 = vmatpush1.bf16.msra.mxu1 %v2421_v38  ;;  %v2508_v37 = vld [vmem:[%s3543_s1 + $0x4c0] ss:$16 sps:$4 sm:$0xff]   ;;  %v2511_v38 = vld [vmem:[%s3543_s1 + $0x4c8] ss:$16 sps:$4 sm:$0xff]  }
  0x60   :  { %1679 = vmatprep.subr.bf16.mxu0 %v2426_v39  ;;  %1851 = vmatprep.subr.bf16.mxu1 %v2429_v40  ;;  %v2516_v39 = vld [vmem:[%s3543_s1 + $0x4e4] ss:$16 sps:$4 sm:$0xff]   ;;  %v2519_v40 = vld [vmem:[%s3543_s1 + $0x4ec] ss:$16 sps:$4 sm:$0xff]  }
  0x63   :  { %1680 = vmatpush1.bf16.msra.mxu0 %v2424_v41  ;;  %1852 = vmatpush1.bf16.msra.mxu1 %v2427_v42  ;;  %v2514_v41 = vld [vmem:[%s3543_s1 + $0x4e0] ss:$16 sps:$4 sm:$0xff]   ;;  %v2517_v42 = vld [vmem:[%s3543_s1 + $0x4e8] ss:$16 sps:$4 sm:$0xff]  }
  0x64   :  { %1681 = vmatprep.subr.bf16.mxu0 %v2432_v43  ;;  %1853 = vmatprep.subr.bf16.mxu1 %v2435_v44  ;;  %v2522_v43 = vld [vmem:[%s3543_s1 + $0x504] ss:$16 sps:$4 sm:$0xff]   ;;  %v2525_v44 = vld [vmem:[%s3543_s1 + $0x50c] ss:$16 sps:$4 sm:$0xff]  }
  0x67   :  { %1682 = vmatpush1.bf16.msra.mxu0 %v2430_v45  ;;  %1854 = vmatpush1.bf16.msra.mxu1 %v2433_v46  ;;  %v2520_v45 = vld [vmem:[%s3543_s1 + $0x500] ss:$16 sps:$4 sm:$0xff]   ;;  %v2523_v46 = vld [vmem:[%s3543_s1 + $0x508] ss:$16 sps:$4 sm:$0xff]  }
  0x68   :  { %1683 = vmatprep.subr.bf16.mxu0 %v2438_v47  ;;  %1855 = vmatprep.subr.bf16.mxu1 %v2441_v48  ;;  %v2528_v47 = vld [vmem:[%s3543_s1 + $0x524] ss:$16 sps:$4 sm:$0xff]   ;;  %v2531_v48 = vld [vmem:[%s3543_s1 + $0x52c] ss:$16 sps:$4 sm:$0xff]  }
  0x6b   :  { %1684 = vmatpush1.bf16.msra.mxu0 %v2436_v49  ;;  %1856 = vmatpush1.bf16.msra.mxu1 %v2439_v50  ;;  %v2526_v49 = vld [vmem:[%s3543_s1 + $0x520] ss:$16 sps:$4 sm:$0xff]   ;;  %v2529_v50 = vld [vmem:[%s3543_s1 + $0x528] ss:$16 sps:$4 sm:$0xff]  }
  0x6c   :  { %1685 = vmatprep.subr.bf16.mxu0 %v2444_v51  ;;  %1857 = vmatprep.subr.bf16.mxu1 %v2447_v52  ;;  %v2534_v51 = vld [vmem:[%s3543_s1 + $0x544] ss:$16 sps:$4 sm:$0xff]   ;;  %v2537_v52 = vld [vmem:[%s3543_s1 + $0x54c] ss:$16 sps:$4 sm:$0xff]  }
  0x6f   :  { %1686 = vmatpush1.bf16.msra.mxu0 %v2442_v53  ;;  %1858 = vmatpush1.bf16.msra.mxu1 %v2445_v54  ;;  %v2532_v53 = vld [vmem:[%s3543_s1 + $0x540] ss:$16 sps:$4 sm:$0xff]   ;;  %v2535_v54 = vld [vmem:[%s3543_s1 + $0x548] ss:$16 sps:$4 sm:$0xff]  }
  0x70   :  { %1687 = vmatprep.subr.bf16.mxu0 %v2450_v55  ;;  %1859 = vmatprep.subr.bf16.mxu1 %v2453_v56  ;;  %v2540_v55 = vld [vmem:[%s3543_s1 + $0x564] ss:$16 sps:$4 sm:$0xff]   ;;  %v2543_v56 = vld [vmem:[%s3543_s1 + $0x56c] ss:$16 sps:$4 sm:$0xff]  }
  0x73   :  { %1688 = vmatpush1.bf16.msra.mxu0 %v2448_v57  ;;  %1860 = vmatpush1.bf16.msra.mxu1 %v2451_v58  ;;  %v2538_v57 = vld [vmem:[%s3543_s1 + $0x560] ss:$16 sps:$4 sm:$0xff]   ;;  %v2541_v58 = vld [vmem:[%s3543_s1 + $0x568] ss:$16 sps:$4 sm:$0xff]  }
  0x74   :  { %1689 = vmatprep.subr.bf16.mxu0 %v2456_v59  ;;  %1861 = vmatprep.subr.bf16.mxu1 %v2459_v60  ;;  %v2546_v59 = vld [vmem:[%s3543_s1 + $0x584] ss:$16 sps:$4 sm:$0xff]   ;;  %v2549_v60 = vld [vmem:[%s3543_s1 + $0x58c] ss:$16 sps:$4 sm:$0xff]  }
  0x77   :  { %1690 = vmatpush1.bf16.msra.mxu0 %v2454_v61  ;;  %1862 = vmatpush1.bf16.msra.mxu1 %v2457_v62  ;;  %v2544_v61 = vld [vmem:[%s3543_s1 + $0x580] ss:$16 sps:$4 sm:$0xff]   ;;  %v2547_v62 = vld [vmem:[%s3543_s1 + $0x588] ss:$16 sps:$4 sm:$0xff]  }
  0x78   :  { %1691 = vmatprep.subr.bf16.mxu0 %v2462_v63  ;;  %1863 = vmatprep.subr.bf16.mxu1 %v2465_v0  ;;  %v2552_v63 = vld [vmem:[%s3543_s1 + $0x5a4] ss:$16 sps:$4 sm:$0xff]   ;;  %v2555_v0 = vld [vmem:[%s3543_s1 + $0x5ac] ss:$16 sps:$4 sm:$0xff]  }
  0x7b   :  { %1692 = vmatpush1.bf16.msra.mxu0 %v2460_v1  ;;  %1864 = vmatpush1.bf16.msra.mxu1 %v2463_v2  ;;  %v2550_v1 = vld [vmem:[%s3543_s1 + $0x5a0] ss:$16 sps:$4 sm:$0xff]   ;;  %v2553_v2 = vld [vmem:[%s3543_s1 + $0x5a8] ss:$16 sps:$4 sm:$0xff]  }
  0x7c   :  { %1693 = vmatprep.subr.bf16.mxu0 %v2468_v3  ;;  %1865 = vmatprep.subr.bf16.mxu1 %v2471_v4  ;;  %v2558_v3 = vld [vmem:[%s3543_s1 + $0x5c4] ss:$16 sps:$4 sm:$0xff]   ;;  %v2561_v4 = vld [vmem:[%s3543_s1 + $0x5cc] ss:$16 sps:$4 sm:$0xff]  }
  0x7f   :  { %1694 = vmatpush1.bf16.msra.mxu0 %v2466_v5  ;;  %1866 = vmatpush1.bf16.msra.mxu1 %v2469_v6  ;;  %v2556_v5 = vld [vmem:[%s3543_s1 + $0x5c0] ss:$16 sps:$4 sm:$0xff]   ;;  %v2559_v6 = vld [vmem:[%s3543_s1 + $0x5c8] ss:$16 sps:$4 sm:$0xff]  }
  0x80   :  { %1706 = vmatprep.subr.bf16.mxu0 %v2474_v7  ;;  %1878 = vmatprep.subr.bf16.mxu1 %v2477_v8  ;;  %v2564_v7 = vld [vmem:[%s3543_s1 + $0x5e4] ss:$16 sps:$4 sm:$0xff]   ;;  %v2567_v8 = vld [vmem:[%s3543_s1 + $0x5ec] ss:$16 sps:$4 sm:$0xff]  }
  0x82   :  { %1696 = vmatmul.mubr.bf16.vlgmr.msra.gmra.mrb[0].mxu0 %v1986_v9  ;;  %1868 = vmatmul.mubr.bf16.vlgmr.msra.gmra.mrb[0].mxu1 %v1986_v9  ;;  %v2562_v9 = vld [vmem:[%s3543_s1 + $0x5e0] ss:$16 sps:$4 sm:$0xff]  }
  0x83   :  { %1707 = vmatpush1.bf16.msra.mxu0 %v2472_v10  ;;  %1879 = vmatpush1.bf16.msra.mxu1 %v2475_v11  ;;  %v2565_v10 = vld [vmem:[%s3543_s1 + $0x5e8] ss:$16 sps:$4 sm:$0xff]   ;;  %v2570_v11 = vld [vmem:[%s3543_s1 + $0x604] ss:$16 sps:$4 sm:$0xff]  }
  0x84   :  { %1708 = vmatprep.subr.bf16.mxu0 %v2480_v12  ;;  %1880 = vmatprep.subr.bf16.mxu1 %v2483_v13  ;;  %v2573_v12 = vld [vmem:[%s3543_s1 + $0x60c] ss:$16 sps:$4 sm:$0xff]   ;;  %v1988_v13 = vcombine.low %v3125_v14, %v3130_v15  ;;  %v2571_v14 = vld [vmem:[%s3543_s1 + $0x608] ss:$16 sps:$4 sm:$0xff]   ;;  %v2576_v15 = vld [vmem:[%s3543_s1 + $0x624] ss:$16 sps:$4 sm:$0xff]  }
  0x85   :  { %1738 = vmatprep.mubr.bf16.mxu0 %v1989_v16  ;;  %1910 = vmatprep.mubr.bf16.mxu1 %v1989_v16  ;;  %v3319_v16 = vld [vmem:[%s3544_s0 + $0x18] sm:$0xff] }
  0x87   :  { %1709 = vmatpush1.bf16.msra.mxu0 %v2478_v17  ;;  %1881 = vmatpush1.bf16.msra.mxu1 %v2481_v18  ;;  %v3324_v17 = vld [vmem:[%s3544_s0 + $0x38] sm:$0xff]  ;;  %v2568_v18 = vld [vmem:[%s3543_s1 + $0x600] ss:$16 sps:$4 sm:$0xff]  }
  0x88   :  { %1710 = vmatprep.subr.bf16.mxu0 %v2486_v19  ;;  %1882 = vmatprep.subr.bf16.mxu1 %v2489_v20  ;;  %v2579_v19 = vld [vmem:[%s3543_s1 + $0x62c] ss:$16 sps:$4 sm:$0xff]   ;;  %v1991_v20 = vcombine.high %v3319_v16, %v3324_v17 }
  0x8b   :  { %1711 = vmatpush1.bf16.msra.mxu0 %v2484_v21  ;;  %1883 = vmatpush1.bf16.msra.mxu1 %v2487_v22  ;;  %v2574_v21 = vld [vmem:[%s3543_s1 + $0x620] ss:$16 sps:$4 sm:$0xff]   ;;  %v2577_v22 = vld [vmem:[%s3543_s1 + $0x628] ss:$16 sps:$4 sm:$0xff]  }
  0x8c   :  { %1712 = vmatprep.subr.bf16.mxu0 %v2492_v23  ;;  %1884 = vmatprep.subr.bf16.mxu1 %v2495_v24  ;;  %v2582_v23 = vld [vmem:[%s3543_s1 + $0x644] ss:$16 sps:$4 sm:$0xff]   ;;  %v2585_v24 = vld [vmem:[%s3543_s1 + $0x64c] ss:$16 sps:$4 sm:$0xff]  }
  0x8f   :  { %1713 = vmatpush1.bf16.msra.mxu0 %v2490_v25  ;;  %1885 = vmatpush1.bf16.msra.mxu1 %v2493_v26  ;;  %v2580_v25 = vld [vmem:[%s3543_s1 + $0x640] ss:$16 sps:$4 sm:$0xff]   ;;  %v2583_v26 = vld [vmem:[%s3543_s1 + $0x648] ss:$16 sps:$4 sm:$0xff]  }
  0x90   :  { %1714 = vmatprep.subr.bf16.mxu0 %v2498_v27  ;;  %1886 = vmatprep.subr.bf16.mxu1 %v2501_v28  ;;  %v2588_v27 = vld [vmem:[%s3543_s1 + $0x664] ss:$16 sps:$4 sm:$0xff]   ;;  %v2591_v28 = vld [vmem:[%s3543_s1 + $0x66c] ss:$16 sps:$4 sm:$0xff]  }
  0x93   :  { %1715 = vmatpush1.bf16.msra.mxu0 %v2496_v29  ;;  %1887 = vmatpush1.bf16.msra.mxu1 %v2499_v30  ;;  %v2586_v29 = vld [vmem:[%s3543_s1 + $0x660] ss:$16 sps:$4 sm:$0xff]   ;;  %v2589_v30 = vld [vmem:[%s3543_s1 + $0x668] ss:$16 sps:$4 sm:$0xff]  }
  0x94   :  { %1716 = vmatprep.subr.bf16.mxu0 %v2504_v31  ;;  %1888 = vmatprep.subr.bf16.mxu1 %v2507_v32  ;;  %v2594_v31 = vld [vmem:[%s3543_s1 + $0x684] ss:$16 sps:$4 sm:$0xff]   ;;  %v2597_v32 = vld [vmem:[%s3543_s1 + $0x68c] ss:$16 sps:$4 sm:$0xff]  }
  0x97   :  { %1717 = vmatpush1.bf16.msra.mxu0 %v2502_v33  ;;  %1889 = vmatpush1.bf16.msra.mxu1 %v2505_v34  ;;  %v2592_v33 = vld [vmem:[%s3543_s1 + $0x680] ss:$16 sps:$4 sm:$0xff]   ;;  %v2595_v34 = vld [vmem:[%s3543_s1 + $0x688] ss:$16 sps:$4 sm:$0xff]  }
  0x98   :  { %1718 = vmatprep.subr.bf16.mxu0 %v2510_v35  ;;  %1890 = vmatprep.subr.bf16.mxu1 %v2513_v36  ;;  %v2600_v35 = vld [vmem:[%s3543_s1 + $0x6a4] ss:$16 sps:$4 sm:$0xff]   ;;  %v2603_v36 = vld [vmem:[%s3543_s1 + $0x6ac] ss:$16 sps:$4 sm:$0xff]  }
  0x9b   :  { %1719 = vmatpush1.bf16.msra.mxu0 %v2508_v37  ;;  %1891 = vmatpush1.bf16.msra.mxu1 %v2511_v38  ;;  %v2598_v37 = vld [vmem:[%s3543_s1 + $0x6a0] ss:$16 sps:$4 sm:$0xff]   ;;  %v2601_v38 = vld [vmem:[%s3543_s1 + $0x6a8] ss:$16 sps:$4 sm:$0xff]  }
  0x9c   :  { %1720 = vmatprep.subr.bf16.mxu0 %v2516_v39  ;;  %1892 = vmatprep.subr.bf16.mxu1 %v2519_v40  ;;  %v2606_v39 = vld [vmem:[%s3543_s1 + $0x6c4] ss:$16 sps:$4 sm:$0xff]   ;;  %v2609_v40 = vld [vmem:[%s3543_s1 + $0x6cc] ss:$16 sps:$4 sm:$0xff]  }
  0x9f   :  { %1721 = vmatpush1.bf16.msra.mxu0 %v2514_v41  ;;  %1893 = vmatpush1.bf16.msra.mxu1 %v2517_v42  ;;  %v2604_v41 = vld [vmem:[%s3543_s1 + $0x6c0] ss:$16 sps:$4 sm:$0xff]   ;;  %v2607_v42 = vld [vmem:[%s3543_s1 + $0x6c8] ss:$16 sps:$4 sm:$0xff]  }
  0xa0   :  { %1722 = vmatprep.subr.bf16.mxu0 %v2522_v43  ;;  %1894 = vmatprep.subr.bf16.mxu1 %v2525_v44  ;;  %v2612_v43 = vld [vmem:[%s3543_s1 + $0x6e4] ss:$16 sps:$4 sm:$0xff]   ;;  %v2615_v44 = vld [vmem:[%s3543_s1 + $0x6ec] ss:$16 sps:$4 sm:$0xff]  }
  0xa3   :  { %1723 = vmatpush1.bf16.msra.mxu0 %v2520_v45  ;;  %1895 = vmatpush1.bf16.msra.mxu1 %v2523_v46  ;;  %v2610_v45 = vld [vmem:[%s3543_s1 + $0x6e0] ss:$16 sps:$4 sm:$0xff]   ;;  %v2613_v46 = vld [vmem:[%s3543_s1 + $0x6e8] ss:$16 sps:$4 sm:$0xff]  }
  0xa4   :  { %1724 = vmatprep.subr.bf16.mxu0 %v2528_v47  ;;  %1896 = vmatprep.subr.bf16.mxu1 %v2531_v48  ;;  %v2618_v47 = vld [vmem:[%s3543_s1 + $0x704] ss:$16 sps:$4 sm:$0xff]   ;;  %v2621_v48 = vld [vmem:[%s3543_s1 + $0x70c] ss:$16 sps:$4 sm:$0xff]  }
  0xa7   :  { %1725 = vmatpush1.bf16.msra.mxu0 %v2526_v49  ;;  %1897 = vmatpush1.bf16.msra.mxu1 %v2529_v50  ;;  %v2616_v49 = vld [vmem:[%s3543_s1 + $0x700] ss:$16 sps:$4 sm:$0xff]   ;;  %v2619_v50 = vld [vmem:[%s3543_s1 + $0x708] ss:$16 sps:$4 sm:$0xff]  }
  0xa8   :  { %1726 = vmatprep.subr.bf16.mxu0 %v2534_v51  ;;  %1898 = vmatprep.subr.bf16.mxu1 %v2537_v52  ;;  %v2624_v51 = vld [vmem:[%s3543_s1 + $0x724] ss:$16 sps:$4 sm:$0xff]   ;;  %v2627_v52 = vld [vmem:[%s3543_s1 + $0x72c] ss:$16 sps:$4 sm:$0xff]  }
  0xab   :  { %1727 = vmatpush1.bf16.msra.mxu0 %v2532_v53  ;;  %1899 = vmatpush1.bf16.msra.mxu1 %v2535_v54  ;;  %v2622_v53 = vld [vmem:[%s3543_s1 + $0x720] ss:$16 sps:$4 sm:$0xff]   ;;  %v2625_v54 = vld [vmem:[%s3543_s1 + $0x728] ss:$16 sps:$4 sm:$0xff]  }
  0xac   :  { %1728 = vmatprep.subr.bf16.mxu0 %v2540_v55  ;;  %1900 = vmatprep.subr.bf16.mxu1 %v2543_v56  ;;  %v2630_v55 = vld [vmem:[%s3543_s1 + $0x744] ss:$16 sps:$4 sm:$0xff]   ;;  %v2633_v56 = vld [vmem:[%s3543_s1 + $0x74c] ss:$16 sps:$4 sm:$0xff]  }
  0xaf   :  { %1729 = vmatpush1.bf16.msra.mxu0 %v2538_v57  ;;  %1901 = vmatpush1.bf16.msra.mxu1 %v2541_v58  ;;  %v2628_v57 = vld [vmem:[%s3543_s1 + $0x740] ss:$16 sps:$4 sm:$0xff]   ;;  %v2631_v58 = vld [vmem:[%s3543_s1 + $0x748] ss:$16 sps:$4 sm:$0xff]  }
  0xb0   :  { %1730 = vmatprep.subr.bf16.mxu0 %v2546_v59  ;;  %1902 = vmatprep.subr.bf16.mxu1 %v2549_v60  ;;  %v2636_v59 = vld [vmem:[%s3543_s1 + $0x764] ss:$16 sps:$4 sm:$0xff]   ;;  %v2639_v60 = vld [vmem:[%s3543_s1 + $0x76c] ss:$16 sps:$4 sm:$0xff]  }
  0xb3   :  { %1731 = vmatpush1.bf16.msra.mxu0 %v2544_v61  ;;  %1903 = vmatpush1.bf16.msra.mxu1 %v2547_v62  ;;  %v2634_v61 = vld [vmem:[%s3543_s1 + $0x760] ss:$16 sps:$4 sm:$0xff]   ;;  %v2637_v62 = vld [vmem:[%s3543_s1 + $0x768] ss:$16 sps:$4 sm:$0xff]  }
  0xb4   :  { %1732 = vmatprep.subr.bf16.mxu0 %v2552_v63  ;;  %1904 = vmatprep.subr.bf16.mxu1 %v2555_v0  ;;  %v2642_v63 = vld [vmem:[%s3543_s1 + $0x784] ss:$16 sps:$4 sm:$0xff]   ;;  %v2645_v0 = vld [vmem:[%s3543_s1 + $0x78c] ss:$16 sps:$4 sm:$0xff]  }
  0xb7   :  { %1733 = vmatpush1.bf16.msra.mxu0 %v2550_v1  ;;  %1905 = vmatpush1.bf16.msra.mxu1 %v2553_v2  ;;  %v2640_v1 = vld [vmem:[%s3543_s1 + $0x780] ss:$16 sps:$4 sm:$0xff]   ;;  %v2643_v2 = vld [vmem:[%s3543_s1 + $0x788] ss:$16 sps:$4 sm:$0xff]  }
  0xb8   :  { %1734 = vmatprep.subr.bf16.mxu0 %v2558_v3  ;;  %1906 = vmatprep.subr.bf16.mxu1 %v2561_v4  ;;  %v2648_v3 = vld [vmem:[%s3543_s1 + $0x7a4] ss:$16 sps:$4 sm:$0xff]   ;;  %v2651_v4 = vld [vmem:[%s3543_s1 + $0x7ac] ss:$16 sps:$4 sm:$0xff]  }
  0xbb   :  { %1735 = vmatpush1.bf16.msra.mxu0 %v2556_v5  ;;  %1907 = vmatpush1.bf16.msra.mxu1 %v2559_v6  ;;  %v2646_v5 = vld [vmem:[%s3543_s1 + $0x7a0] ss:$16 sps:$4 sm:$0xff]   ;;  %v2649_v6 = vld [vmem:[%s3543_s1 + $0x7a8] ss:$16 sps:$4 sm:$0xff]  }
  0xbc   :  { %1736 = vmatprep.subr.bf16.mxu0 %v2564_v7  ;;  %1908 = vmatprep.subr.bf16.mxu1 %v2567_v8  ;;  %v2654_v7 = vld [vmem:[%s3543_s1 + $0x7c4] ss:$16 sps:$4 sm:$0xff]   ;;  %v2657_v8 = vld [vmem:[%s3543_s1 + $0x7cc] ss:$16 sps:$4 sm:$0xff]  }
  0xbf   :  { %1737 = vmatpush1.bf16.msra.mxu0 %v2562_v9  ;;  %1909 = vmatpush1.bf16.msra.mxu1 %v2565_v10  ;;  %v2652_v9 = vld [vmem:[%s3543_s1 + $0x7c0] ss:$16 sps:$4 sm:$0xff]   ;;  %v2655_v10 = vld [vmem:[%s3543_s1 + $0x7c8] ss:$16 sps:$4 sm:$0xff]  }
  0xc0   :  { %1749 = vmatprep.subr.bf16.mxu0 %v2570_v11  ;;  %1921 = vmatprep.subr.bf16.mxu1 %v2573_v12  ;;  %v2660_v11 = vld [vmem:[%s3543_s1 + $0x7e4] ss:$16 sps:$4 sm:$0xff]   ;;  %v2663_v12 = vld [vmem:[%s3543_s1 + $0x7ec] ss:$16 sps:$4 sm:$0xff]  }
  0xc2   :  { %1739 = vmatmul.mubr.bf16.vlgmr.msra.gmra.mrb[0].mxu0 %v1988_v13  ;;  %1911 = vmatmul.mubr.bf16.vlgmr.msra.gmra.mrb[0].mxu1 %v1988_v13  ;;  %v2658_v13 = vld [vmem:[%s3543_s1 + $0x7e0] ss:$16 sps:$4 sm:$0xff]  }
  0xc3   :  { %1750 = vmatpush1.bf16.msra.mxu0 %v2568_v18  ;;  %1922 = vmatpush1.bf16.msra.mxu1 %v2571_v14  ;;  %v2661_v18 = vld [vmem:[%s3543_s1 + $0x7e8] ss:$16 sps:$4 sm:$0xff]   ;;  %v1990_v14 = vcombine.low %v3319_v16, %v3324_v17 }
  0xc4   :  { %1751 = vmatprep.subr.bf16.mxu0 %v2576_v15  ;;  %1923 = vmatprep.subr.bf16.mxu1 %v2579_v19  ;;  %v280_v15 = vlaneseq }
  0xc5   :  { %1781 = vmatprep.mubr.bf16.mxu0 %v1991_v20  ;;  %1953 = vmatprep.mubr.bf16.mxu1 %v1991_v20 }
  0xc6   :  { %v281_v19 = vshrl.u32 %v280_v15, 7 }
  0xc7   :  { %1752 = vmatpush1.bf16.msra.mxu0 %v2574_v21  ;;  %1924 = vmatpush1.bf16.msra.mxu1 %v2577_v22  ;;  %v278_v22 = vld [vmem:[%s3545_s2] sm:$0xf] }
  0xc8   :  { %1753 = vmatprep.subr.bf16.mxu0 %v2582_v23  ;;  %1925 = vmatprep.subr.bf16.mxu1 %v2585_v24  ;;  %v282_v20 = vsub.s32 0, %v281_v19  ;;  %v290_v21 = vsub.s32 2, %v281_v19  ;;  %v286_v23 = vsub.s32 1, %v281_v19  ;;  %v294_v24 = vsub.s32 3, %v281_v19 }
  0xcb   :  { %1754 = vmatpush1.bf16.msra.mxu0 %v2580_v25  ;;  %1926 = vmatpush1.bf16.msra.mxu1 %v2583_v26  ;;  %v283_v25 = vrot.slane %v278_v22, %v282_v20  ;;  %v291_v26 = vrot.slane %v278_v22, %v290_v21 }
  0xcc   :  { %1755 = vmatprep.subr.bf16.mxu0 %v2588_v27  ;;  %1927 = vmatprep.subr.bf16.mxu1 %v2591_v28  ;;  %v287_v27 = vrot.slane %v278_v22, %v286_v23  ;;  %v295_v28 = vrot.slane %v278_v22, %v294_v24 }
  0xcf   :  { %1756 = vmatpush1.bf16.msra.mxu0 %v2586_v29  ;;  %1928 = vmatpush1.bf16.msra.mxu1 %v2589_v30 }
  0xd0   :  { %1757 = vmatprep.subr.bf16.mxu0 %v2594_v31  ;;  %1929 = vmatprep.subr.bf16.mxu1 %v2597_v32 }
  0xd3   :  { %1758 = vmatpush1.bf16.msra.mxu0 %v2592_v33  ;;  %1930 = vmatpush1.bf16.msra.mxu1 %v2595_v34 }
  0xd4   :  { %1759 = vmatprep.subr.bf16.mxu0 %v2600_v35  ;;  %1931 = vmatprep.subr.bf16.mxu1 %v2603_v36 }
  0xd7   :  { %1760 = vmatpush1.bf16.msra.mxu0 %v2598_v37  ;;  %1932 = vmatpush1.bf16.msra.mxu1 %v2601_v38 }
  0xd8   :  { %1761 = vmatprep.subr.bf16.mxu0 %v2606_v39  ;;  %1933 = vmatprep.subr.bf16.mxu1 %v2609_v40 }
  0xdb   :  { %1762 = vmatpush1.bf16.msra.mxu0 %v2604_v41  ;;  %1934 = vmatpush1.bf16.msra.mxu1 %v2607_v42 }
  0xdc   :  { %1763 = vmatprep.subr.bf16.mxu0 %v2612_v43  ;;  %1935 = vmatprep.subr.bf16.mxu1 %v2615_v44 }
  0xdf   :  { %1764 = vmatpush1.bf16.msra.mxu0 %v2610_v45  ;;  %1936 = vmatpush1.bf16.msra.mxu1 %v2613_v46 }
  0xe0   :  { %1765 = vmatprep.subr.bf16.mxu0 %v2618_v47  ;;  %1937 = vmatprep.subr.bf16.mxu1 %v2621_v48 }
  0xe3   :  { %1766 = vmatpush1.bf16.msra.mxu0 %v2616_v49  ;;  %1938 = vmatpush1.bf16.msra.mxu1 %v2619_v50 }
  0xe4   :  { %1767 = vmatprep.subr.bf16.mxu0 %v2624_v51  ;;  %1939 = vmatprep.subr.bf16.mxu1 %v2627_v52 }
  0xe7   :  { %1768 = vmatpush1.bf16.msra.mxu0 %v2622_v53  ;;  %1940 = vmatpush1.bf16.msra.mxu1 %v2625_v54 }
  0xe8   :  { %1769 = vmatprep.subr.bf16.mxu0 %v2630_v55  ;;  %1941 = vmatprep.subr.bf16.mxu1 %v2633_v56 }
  0xeb   :  { %1770 = vmatpush1.bf16.msra.mxu0 %v2628_v57  ;;  %1942 = vmatpush1.bf16.msra.mxu1 %v2631_v58 }
  0xec   :  { %1771 = vmatprep.subr.bf16.mxu0 %v2636_v59  ;;  %1943 = vmatprep.subr.bf16.mxu1 %v2639_v60 }
  0xef   :  { %1772 = vmatpush1.bf16.msra.mxu0 %v2634_v61  ;;  %1944 = vmatpush1.bf16.msra.mxu1 %v2637_v62 }
  0xf0   :  { %1773 = vmatprep.subr.bf16.mxu0 %v2642_v63  ;;  %1945 = vmatprep.subr.bf16.mxu1 %v2645_v0 }
  0xf3   :  { %1774 = vmatpush1.bf16.msra.mxu0 %v2640_v1  ;;  %1946 = vmatpush1.bf16.msra.mxu1 %v2643_v2 }
  0xf4   :  { %1775 = vmatprep.subr.bf16.mxu0 %v2648_v3  ;;  %1947 = vmatprep.subr.bf16.mxu1 %v2651_v4 }
  0xf7   :  { %1776 = vmatpush1.bf16.msra.mxu0 %v2646_v5  ;;  %1948 = vmatpush1.bf16.msra.mxu1 %v2649_v6 }
  0xf8   :  { %1777 = vmatprep.subr.bf16.mxu0 %v2654_v7  ;;  %1949 = vmatprep.subr.bf16.mxu1 %v2657_v8 }
  0xfb   :  { %1778 = vmatpush1.bf16.msra.mxu0 %v2652_v9  ;;  %1950 = vmatpush1.bf16.msra.mxu1 %v2655_v10 }
  0xfc   :  { %1779 = vmatprep.subr.bf16.mxu0 %v2660_v11  ;;  %1951 = vmatprep.subr.bf16.mxu1 %v2663_v12 }
  0xff   :  { %1780 = vmatpush1.bf16.msra.mxu0 %v2658_v13  ;;  %1952 = vmatpush1.bf16.msra.mxu1 %v2661_v18 }
 0x102   :  { %1782 = vmatmul.mubr.bf16.vlgmr.msra.gmra.mrb[0].mxu0 %v1990_v14  ;;  %1954 = vmatmul.mubr.bf16.vlgmr.msra.gmra.mrb[0].mxu1 %v1990_v14 }
 0x1d5   :  { %v1783_v29 = vpop.f32.mrb[0].mxu0  ;;  %v1955_v16 = vpop.f32.mrb[0].mxu1 }
 0x1d6   :  { %v2248_v17 = vadd.f32 %v1783_v29, %v283_v25  ;;  %v2252_v30 = vadd.f32 %v1955_v16, %v291_v26  ;;  %v1785_v31 = vpop.f32.mrb[1].mxu0  ;;  %v1957_v32 = vpop.f32.mrb[1].mxu1 }
 0x1d7   :  { %v2249_v33 = vadd.f32 %v1785_v31, %v287_v27  ;;  %v2253_v34 = vadd.f32 %v1957_v32, %v295_v28  ;;  %v1787_v35 = vpop.f32.mrb[2].mxu0  ;;  %v1959_v36 = vpop.f32.mrb[2].mxu1 }
 0x1d8   :  { %2664 = vtanh.f32 %v2248_v17  ;;  %v2250_v37 = vadd.f32 %v1787_v35, %v283_v25  ;;  %v1789_v38 = vpop.f32.mrb[3].mxu0  ;;  %v1961_v39 = vpop.f32.mrb[3].mxu1  ;;  %v2254_v40 = vadd.f32 %v1959_v36, %v291_v26 }
 0x1d9   :  { %2666 = vtanh.f32 %v2252_v30  ;;  %v2251_v41 = vadd.f32 %v1789_v38, %v287_v27  ;;  %v2255_v42 = vadd.f32 %v1961_v39, %v295_v28 }
 0x1da   :  { %2668 = vtanh.f32 %v2249_v33 }
 0x1db   :  { %2670 = vtanh.f32 %v2253_v34 }
 0x1dc   :  { %2672 = vtanh.f32 %v2250_v37 }
 0x1dd   :  { %2674 = vtanh.f32 %v2254_v40 }
 0x1de   :  { %2676 = vtanh.f32 %v2251_v41 }
 0x1df   :  { %2678 = vtanh.f32 %v2255_v42 }
 0x1e2   :  { %v2665_v43 = vpop.eup %2664 }
 0x1e3   :  { %v2667_v44 = vpop.eup %2666  ;;  %1972 = vst [vmem:[%s3546_s3] sm:$0xff] %v2665_v43 }
 0x1e4   :  { %v2669_v45 = vpop.eup %2668  ;;  %1974 = vst [vmem:[%s3546_s3 + $0x10] sm:$0xff] %v2667_v44 }
 0x1e5   :  { %v2671_v46 = vpop.eup %2670  ;;  %1973 = vst [vmem:[%s3546_s3 + $0x8] sm:$0xff] %v2669_v45 }
 0x1e6   :  { %v2673_v47 = vpop.eup %2672  ;;  %1975 = vst [vmem:[%s3546_s3 + $0x18] sm:$0xff] %v2671_v46 }
 0x1e7   :  { %v2675_v48 = vpop.eup %2674  ;;  %1976 = vst [vmem:[%s3546_s3 + $0x20] sm:$0xff] %v2673_v47 }
 0x1e8   :  { %v2677_v49 = vpop.eup %2676  ;;  %1978 = vst [vmem:[%s3546_s3 + $0x30] sm:$0xff] %v2675_v48 }
 0x1e9   :  { %v2679_v50 = vpop.eup %2678  ;;  %1977 = vst [vmem:[%s3546_s3 + $0x28] sm:$0xff] %v2677_v49 }
 0x1ea   :  { %1979 = vst [vmem:[%s3546_s3 + $0x38] sm:$0xff] %v2679_v50 }

// kernel: generator_forward.2
= control target key start
LH: loop header
LB: loop body
LE: loop exit
PB: predicated region body
PF: predicated region fallthrough
CT: control target
= control target key end

     0   :  { %18 = vsyncpa [#allocation3], 0  ;;  %s5141_s0 = inlined_call_operand.vmem [shape: f32[16,1], index: 0, kind: input, shape index: {}]   ;;  %s5142_s1 = inlined_call_operand.vmem [shape: bf16[16,32], index: 1, kind: input, shape index: {}]   ;;  %s5143_s2 = inlined_call_operand.vmem [shape: f32[16,128], index: 2, kind: input, shape index: {}]   ;;  %s5144_s3 = inlined_call_operand.hbm [shape: bf16[32,128], index: 3, kind: input, shape index: {}]   ;;  %s5145_s4 = inlined_call_operand.hbm [shape: bf16[128,256], index: 4, kind: input, shape index: {}]   ;;  %s5146_s5 = inlined_call_operand.hbm [shape: f32[1,256], index: 5, kind: input, shape index: {}]   ;;  %s5147_s6 = inlined_call_operand.hbm [shape: f32[1,256], index: 6, kind: input, shape index: {}]   ;;  %s5148_s7 = inlined_call_operand.hbm [shape: bf16[256,512], index: 7, kind: input, shape index: {}]   ;;  %s5149_s8 = inlined_call_operand.hbm [shape: f32[1,512], index: 8, kind: input, shape index: {}]   ;;  %s5150_s9 = inlined_call_operand.hbm [shape: f32[1,512], index: 9, kind: input, shape index: {}]   ;;  %s5151_s10 = inlined_call_operand.hbm [shape: bf16[512,1024], index: 10, kind: input, shape index: {}]   ;;  %s5152_s11 = inlined_call_operand.hbm [shape: f32[1,1024], index: 11, kind: input, shape index: {}]   ;;  %s5153_s12 = inlined_call_operand.hbm [shape: f32[1,1024], index: 12, kind: input, shape index: {}]   ;;  %s5154_s13 = inlined_call_operand.vmem [shape: bf16[16,1024], index: 13, kind: output, shape index: {}]  }
   0x1   :  { %19 = vsyncpa [#allocation5], 0 }
   0x2   :  { %20 = vsyncpa [#allocation8], 0 }
   0x3   :  { %21 = vsyncpa [#allocation11], 0 }
   0x4   :  { %22 = vsyncpa [#allocation14], 0 }
   0x5   :  { %23 = vsyncpa [#allocation17], 0  ;;  %s4494_s25 = smov [#allocation4]   ;;  %s4262_s29 = scalar_lea.hbm %s5145_s4, 2048 }
   0x6   :  { %s47_s26 = sshll.u32 %s4494_s25, 4  ;;  %p4263_p0 = scmp.ne.s32.totalorder %s5145_s4, %s4262_s29  ;;  %s48_s26 = int_to_ptr.vmem [resolvable:$true] %s47_s26 }
   0x7   :  { %p4266_p1 = scmp.lt.u32.totalorder %s4262_s29, %s5145_s4 }
   0x9   :  { %p4268_p2 = pnand %p4266_p1, %p4263_p0 }
   0xb   :  { %4271 = shalt.err (!%p4268_p2)
}
   0xc   :  { %s4272_s17 = scalar_lea.vmem %s48_s26, 2048  ;;  %p4277_p4 = scmp.lt.s32.totalorder %s48_s26, %s48_s26 }
   0xd   :  { %p4273_p3 = scmp.ne.s32.totalorder %s48_s26, %s4272_s17  ;;  %p4278_p5 = scmp.lt.s32.totalorder %s4272_s17, %s4272_s17 }
   0xf   :  { %p4279_p6 = por %p4278_p5, %p4277_p4 }
  0x11   :  { %p4280_p7 = pnand %p4279_p6, %p4273_p3 }
  0x13   :  { %4283 = shalt.err (!%p4280_p7)
}
  0x14   :  { %s4495_s18 = smov 128   ;;  %s4496_s19 = smov 8  }
  0x15   :  { %53 = dma.hbm_to_vmem [thread:$0]  %s5145_s4, 2048, %s48_s26, [#allocation5], %s4495_s18, %s4495_s18, %s4496_s19  }
  0x16   :  { %s4497_s22 = smov [#allocation7]   ;;  %s4498_s24 = smov [#allocation10]  }
  0x17   :  { %s70_s23 = sshll.u32 %s4497_s22, 4  ;;  %s92_s25 = sshll.u32 %s4498_s24, 4  ;;  %s71_s23 = int_to_ptr.vmem [resolvable:$true] %s70_s23  ;;  %s93_s25 = int_to_ptr.vmem [resolvable:$true] %s92_s25 }
  0x18   :  { %s4284_s29 = scalar_lea.hbm %s5147_s6, 32 }
  0x19   :  { %p4285_p8 = scmp.ne.s32.totalorder %s5147_s6, %s4284_s29  ;;  %p4288_p9 = scmp.lt.u32.totalorder %s4284_s29, %s5147_s6 }
  0x1b   :  { %p4290_p10 = pnand %p4288_p9, %p4285_p8 }
  0x1d   :  { %4293 = shalt.err (!%p4290_p10)
}
  0x1e   :  { %s4294_s4 = scalar_lea.vmem %s71_s23, 32  ;;  %p4299_p12 = scmp.lt.s32.totalorder %s71_s23, %s71_s23 }
  0x1f   :  { %p4295_p11 = scmp.ne.s32.totalorder %s71_s23, %s4294_s4  ;;  %p4300_p13 = scmp.lt.s32.totalorder %s4294_s4, %s4294_s4 }
  0x21   :  { %p4301_p0 = por %p4300_p13, %p4299_p12 }
  0x23   :  { %p4302_p1 = pnand %p4301_p0, %p4295_p11 }
  0x25   :  { %4305 = shalt.err (!%p4302_p1)
}
  0x26   :  { %73 = dma.hbm_to_vmem [thread:$0]  %s5147_s6, 32, %s71_s23, [#allocation8]  }
  0x27   :  { %s4306_s20 = scalar_lea.hbm %s5149_s8, 64 }
  0x28   :  { %p4307_p2 = scmp.ne.s32.totalorder %s5149_s8, %s4306_s20  ;;  %p4310_p3 = scmp.lt.u32.totalorder %s4306_s20, %s5149_s8 }
  0x2a   :  { %p4312_p4 = pnand %p4310_p3, %p4307_p2 }
  0x2c   :  { %4315 = shalt.err (!%p4312_p4)
}
  0x2d   :  { %s4316_s28 = scalar_lea.vmem %s93_s25, 64  ;;  %p4321_p6 = scmp.lt.s32.totalorder %s93_s25, %s93_s25 }
  0x2e   :  { %p4317_p5 = scmp.ne.s32.totalorder %s93_s25, %s4316_s28  ;;  %p4322_p7 = scmp.lt.s32.totalorder %s4316_s28, %s4316_s28 }
  0x30   :  { %p4323_p8 = por %p4322_p7, %p4321_p6 }
  0x32   :  { %p4324_p9 = pnand %p4323_p8, %p4317_p5 }
  0x34   :  { %4327 = shalt.err (!%p4324_p9)
}
  0x35   :  { %95 = dma.hbm_to_vmem [thread:$0]  %s5149_s8, 64, %s93_s25, [#allocation11]  }
  0x36   :  { %s4499_s29 = smov [#allocation13]   ;;  %s4328_s16 = scalar_lea.hbm %s5151_s10, 32768 }
  0x37   :  { %s111_s30 = sshll.u32 %s4499_s29, 4  ;;  %p4329_p10 = scmp.ne.s32.totalorder %s5151_s10, %s4328_s16  ;;  %s112_s30 = int_to_ptr.vmem [resolvable:$true] %s111_s30 }
  0x38   :  { %p4332_p11 = scmp.lt.u32.totalorder %s4328_s16, %s5151_s10 }
  0x3a   :  { %p4334_p12 = pnand %p4332_p11, %p4329_p10 }
  0x3c   :  { %4337 = shalt.err (!%p4334_p12)
}
  0x3d   :  { %s4338_s19 = scalar_lea.vmem %s112_s30, 32768  ;;  %p4343_p0 = scmp.lt.s32.totalorder %s112_s30, %s112_s30 }
  0x3e   :  { %p4339_p13 = scmp.ne.s32.totalorder %s112_s30, %s4338_s19  ;;  %p4344_p1 = scmp.lt.s32.totalorder %s4338_s19, %s4338_s19 }
  0x40   :  { %p4345_p2 = por %p4344_p1, %p4343_p0 }
  0x42   :  { %p4346_p3 = pnand %p4345_p2, %p4339_p13 }
  0x44   :  { %4349 = shalt.err (!%p4346_p3)
}
  0x45   :  { %s4500_s8 = smov 512   ;;  %s4501_s25 = smov 32  }
  0x46   :  { %117 = dma.hbm_to_vmem [thread:$0]  %s5151_s10, 32768, %s112_s30, [#allocation14], %s4500_s8, %s4500_s8, %s4501_s25  }
  0x47   :  { %s4502_s22 = smov [#allocation2]   ;;  %s4350_s6 = scalar_lea.hbm %s5144_s3, 256 }
  0x48   :  { %s35_s24 = sshll.u32 %s4502_s22, 4  ;;  %p4351_p4 = scmp.ne.s32.totalorder %s5144_s3, %s4350_s6  ;;  %s36_s24 = int_to_ptr.vmem [resolvable:$true] %s35_s24 }
  0x49   :  { %p4354_p5 = scmp.lt.u32.totalorder %s4350_s6, %s5144_s3 }
  0x4b   :  { %p4356_p6 = pnand %p4354_p5, %p4351_p4 }
  0x4d   :  { %4359 = shalt.err (!%p4356_p6)
}
  0x4e   :  { %s4360_s16 = scalar_lea.vmem %s36_s24, 256  ;;  %p4365_p8 = scmp.lt.s32.totalorder %s36_s24, %s36_s24 }
  0x4f   :  { %p4361_p7 = scmp.ne.s32.totalorder %s36_s24, %s4360_s16  ;;  %p4366_p9 = scmp.lt.s32.totalorder %s4360_s16, %s4360_s16 }
  0x51   :  { %p4367_p10 = por %p4366_p9, %p4365_p8 }
  0x53   :  { %p4368_p11 = pnand %p4367_p10, %p4361_p7 }
  0x55   :  { %4371 = shalt.err (!%p4368_p11)
}
  0x56   :  { %s4503_s10 = smov 64   ;;  %s4504_s30 = smov 4  }
  0x57   :  { %41 = dma.hbm_to_vmem [thread:$0]  %s5144_s3, 256, %s36_s24, [#allocation3], %s4503_s10, %s4503_s10, %s4504_s30  }
  0x58   :  { %s4505_s17 = smov [#allocation6]   ;;  %s4506_s19 = smov [#allocation9]  }
  0x59   :  { %s60_s18 = sshll.u32 %s4505_s17, 4  ;;  %s79_s8 = sshll.u32 %s4506_s19, 4  ;;  %s61_s18 = int_to_ptr.vmem [resolvable:$true] %s60_s18  ;;  %s80_s8 = int_to_ptr.vmem [resolvable:$true] %s79_s8 }
  0x5a   :  { %s4372_s21 = scalar_lea.hbm %s5146_s5, 32 }
  0x5b   :  { %p4373_p12 = scmp.ne.s32.totalorder %s5146_s5, %s4372_s21  ;;  %p4376_p13 = scmp.lt.u32.totalorder %s4372_s21, %s5146_s5 }
  0x5d   :  { %p4378_p0 = pnand %p4376_p13, %p4373_p12 }
  0x5f   :  { %4381 = shalt.err (!%p4378_p0)
}
  0x60   :  { %s4382_s3 = scalar_lea.vmem %s61_s18, 32  ;;  %p4387_p2 = scmp.lt.s32.totalorder %s61_s18, %s61_s18 }
  0x61   :  { %p4383_p1 = scmp.ne.s32.totalorder %s61_s18, %s4382_s3  ;;  %p4388_p3 = scmp.lt.s32.totalorder %s4382_s3, %s4382_s3 }
  0x63   :  { %p4389_p4 = por %p4388_p3, %p4387_p2 }
  0x65   :  { %p4390_p5 = pnand %p4389_p4, %p4383_p1 }
  0x67   :  { %4393 = shalt.err (!%p4390_p5)
}
  0x68   :  { %63 = dma.hbm_to_vmem [thread:$0]  %s5146_s5, 32, %s61_s18, [#allocation5]  }
  0x69   :  { %s4394_s15 = scalar_lea.hbm %s5148_s7, 8192 }
  0x6a   :  { %p4395_p6 = scmp.ne.s32.totalorder %s5148_s7, %s4394_s15  ;;  %p4398_p7 = scmp.lt.u32.totalorder %s4394_s15, %s5148_s7 }
  0x6c   :  { %p4400_p8 = pnand %p4398_p7, %p4395_p6 }
  0x6e   :  { %4403 = shalt.err (!%p4400_p8)
}
  0x6f   :  { %s4404_s26 = scalar_lea.vmem %s80_s8, 8192  ;;  %p4409_p10 = scmp.lt.s32.totalorder %s80_s8, %s80_s8 }
  0x70   :  { %p4405_p9 = scmp.ne.s32.totalorder %s80_s8, %s4404_s26  ;;  %p4410_p11 = scmp.lt.s32.totalorder %s4404_s26, %s4404_s26 }
  0x72   :  { %p4411_p12 = por %p4410_p11, %p4409_p10 }
  0x74   :  { %p4412_p13 = pnand %p4411_p12, %p4405_p9 }
  0x76   :  { %4415 = shalt.err (!%p4412_p13)
}
  0x77   :  { %s4507_s5 = smov 256   ;;  %s4508_s17 = smov 16  }
  0x78   :  { %85 = dma.hbm_to_vmem [thread:$0]  %s5148_s7, 8192, %s80_s8, [#allocation8], %s4507_s5, %s4507_s5, %s4508_s17  }
  0x79   :  { %s4509_s25 = smov [#allocation12]   ;;  %s4510_s21 = smov [#allocation15]  }
  0x7a   :  { %s102_s20 = sshll.u32 %s4509_s25, 4  ;;  %s124_s22 = sshll.u32 %s4510_s21, 4  ;;  %s103_s20 = int_to_ptr.vmem [resolvable:$true] %s102_s20  ;;  %s125_s22 = int_to_ptr.vmem [resolvable:$true] %s124_s22 }
  0x7b   :  { %s4416_s6 = scalar_lea.hbm %s5150_s9, 64 }
  0x7c   :  { %p4417_p0 = scmp.ne.s32.totalorder %s5150_s9, %s4416_s6  ;;  %p4420_p1 = scmp.lt.u32.totalorder %s4416_s6, %s5150_s9 }
  0x7e   :  { %p4422_p2 = pnand %p4420_p1, %p4417_p0 }
  0x80   :  { %4425 = shalt.err (!%p4422_p2)
}
  0x81   :  { %s4426_s7 = scalar_lea.vmem %s103_s20, 64  ;;  %p4431_p4 = scmp.lt.s32.totalorder %s103_s20, %s103_s20 }
  0x82   :  { %p4427_p3 = scmp.ne.s32.totalorder %s103_s20, %s4426_s7  ;;  %p4432_p5 = scmp.lt.s32.totalorder %s4426_s7, %s4426_s7 }
  0x84   :  { %p4433_p6 = por %p4432_p5, %p4431_p4 }
  0x86   :  { %p4434_p7 = pnand %p4433_p6, %p4427_p3 }
  0x88   :  { %4437 = shalt.err (!%p4434_p7)
}
  0x89   :  { %105 = dma.hbm_to_vmem [thread:$0]  %s5150_s9, 64, %s103_s20, [#allocation11]  }
  0x8a   :  { %s4438_s10 = scalar_lea.hbm %s5152_s11, 128 }
  0x8b   :  { %p4439_p8 = scmp.ne.s32.totalorder %s5152_s11, %s4438_s10  ;;  %p4442_p9 = scmp.lt.u32.totalorder %s4438_s10, %s5152_s11 }
  0x8d   :  { %p4444_p10 = pnand %p4442_p9, %p4439_p8 }
  0x8f   :  { %4447 = shalt.err (!%p4444_p10)
}
  0x90   :  { %s4448_s17 = scalar_lea.vmem %s125_s22, 128  ;;  %p4453_p12 = scmp.lt.s32.totalorder %s125_s22, %s125_s22 }
  0x91   :  { %p4449_p11 = scmp.ne.s32.totalorder %s125_s22, %s4448_s17  ;;  %p4454_p13 = scmp.lt.s32.totalorder %s4448_s17, %s4448_s17 }
  0x93   :  { %p4455_p0 = por %p4454_p13, %p4453_p12 }
  0x95   :  { %p4456_p1 = pnand %p4455_p0, %p4449_p11 }
  0x97   :  { %4459 = shalt.err (!%p4456_p1)
}
  0x98   :  { %127 = dma.hbm_to_vmem [thread:$0]  %s5152_s11, 128, %s125_s22, [#allocation14]  }
  0x99   :  { %s4511_s19 = smov [#allocation16]   ;;  %s4460_s27 = scalar_lea.hbm %s5153_s12, 128 }
  0x9a   :  { %s134_s25 = sshll.u32 %s4511_s19, 4  ;;  %p4461_p2 = scmp.ne.s32.totalorder %s5153_s12, %s4460_s27  ;;  %s135_s25 = int_to_ptr.vmem [resolvable:$true] %s134_s25 }
  0x9b   :  { %p4464_p3 = scmp.lt.u32.totalorder %s4460_s27, %s5153_s12 }
  0x9d   :  { %p4466_p4 = pnand %p4464_p3, %p4461_p2 }
  0x9f   :  { %4469 = shalt.err (!%p4466_p4)
}
  0xa0   :  { %s4470_s23 = scalar_lea.vmem %s135_s25, 128  ;;  %p4475_p6 = scmp.lt.s32.totalorder %s135_s25, %s135_s25 }
  0xa1   :  { %p4471_p5 = scmp.ne.s32.totalorder %s135_s25, %s4470_s23  ;;  %p4476_p7 = scmp.lt.s32.totalorder %s4470_s23, %s4470_s23 }
  0xa3   :  { %p4477_p8 = por %p4476_p7, %p4475_p6 }
  0xa5   :  { %p4478_p9 = pnand %p4477_p8, %p4471_p5 }
  0xa7   :  { %4481 = shalt.err (!%p4478_p9)
}
  0xa8   :  { %137 = dma.hbm_to_vmem [thread:$0]  %s5153_s12, 128, %s135_s25, [#allocation17]  }
  0xa9   :  { %4482 = dma.done.wait [#allocation3], 256  }
  0xaa   :  { %4483 = vsyncadd [#allocation3], 4294967040 }
  0xab   :  { %4484 = dma.done.wait [#allocation5], 2080  }
  0xac   :  { %4485 = vsyncadd [#allocation5], 4294965216 }
  0xad   :  { %4486 = dma.done.wait [#allocation8], 8224  }
  0xae   :  { %4487 = vsyncadd [#allocation8], 4294959072 }
  0xaf   :  { %4488 = dma.done.wait [#allocation11], 128  }
  0xb0   :  { %4489 = vsyncadd [#allocation11], 4294967168 }
  0xb1   :  { %4490 = dma.done.wait [#allocation14], 32896  }
  0xb2   :  { %4491 = vsyncadd [#allocation14], 4294934400 }
  0xb3   :  { %4492 = dma.done.wait [#allocation17], 128  }
  0xb4   :  { %4493 = vsyncadd [#allocation17], 4294967168  ;;  %v4512_v0 = vmov 0.0   ;;  %vm4513_vm0 = vmmov 0   ;;  %v4111_v1 = vld [vmem:[#allocation2] sm:$0xff]   ;;  %v4112_v2 = vld [vmem:[#allocation2 + $0x8] sm:$0xff]  }
  0xb5   :  { %4064 = vmatprep.subr.bf16.mxu0 %v4512_v0  ;;  %4068 = vmatprep.mubr.msk.bf16.mxu0 %vm4513_vm0, %v4512_v0  ;;  %v4114_v3 = vld [vmem:[#allocation4 + $0x4] ss:$8 sps:$4 sm:$0xff]   ;;  %v4116_v4 = vld [vmem:[#allocation4] ss:$8 sps:$4 sm:$0xff]   ;;  %v4117_v6 = vld [vmem:[#allocation4 + $0x14] ss:$8 sps:$4 sm:$0xff]  }
  0xb6   :  { %4065 = vmatpush3.bf16.msra.mxu0 %v4111_v1  ;;  %v4113_v5 = vld [vmem:[%s5142_s1] sm:$0xff]   ;;  %344 = vmatprep.subr.bf16.mxu1 %v4114_v3  ;;  %vm196_vm1 = vcmask 261120   ;;  %v4119_v7 = vld [vmem:[#allocation4 + $0x10] ss:$8 sps:$4 sm:$0xff]   ;;  %v4123_v10 = vld [vmem:[#allocation4 + $0x34] ss:$8 sps:$4 sm:$0xff]  }
  0xb7   :  { %4066 = vmatprep.subr.bf16.mxu0 %v4512_v0  ;;  %345 = vmatpush1.bf16.msra.mxu1 %v4116_v4  ;;  %v4120_v8 = vld [vmem:[#allocation4 + $0x24] ss:$8 sps:$4 sm:$0xff]   ;;  %v4122_v9 = vld [vmem:[#allocation4 + $0x20] ss:$8 sps:$4 sm:$0xff]   ;;  %v4125_v11 = vld [vmem:[#allocation4 + $0x30] ss:$8 sps:$4 sm:$0xff]  }
  0xb8   :  { %346 = vmatprep.subr.bf16.mxu1 %v4117_v6  ;;  %v4126_v12 = vld [vmem:[#allocation4 + $0x44] ss:$8 sps:$4 sm:$0xff]   ;;  %v4128_v13 = vld [vmem:[#allocation4 + $0x40] ss:$8 sps:$4 sm:$0xff]   ;;  %v4129_v14 = vld [vmem:[#allocation4 + $0x54] ss:$8 sps:$4 sm:$0xff]  }
  0xb9   :  { %v4131_v15 = vld [vmem:[#allocation4 + $0x50] ss:$8 sps:$4 sm:$0xff]   ;;  %v4132_v16 = vld [vmem:[#allocation4 + $0x64] ss:$8 sps:$4 sm:$0xff]   ;;  %v4134_v17 = vld [vmem:[#allocation4 + $0x60] ss:$8 sps:$4 sm:$0xff]  }
  0xba   :  { %4067 = vmatpush3.bf16.msra.mxu0 %v4112_v2  ;;  %v4135_v18 = vld [vmem:[#allocation4 + $0x74] ss:$8 sps:$4 sm:$0xff]   ;;  %v4137_v19 = vld [vmem:[#allocation4 + $0x70] ss:$8 sps:$4 sm:$0xff]   ;;  %v4514_v20 = vmov 0   ;;  %v169_v21 = vld [vmem:[%s5141_s0] sm:$0xff] }
  0xbb   :  { %347 = vmatpush1.bf16.msra.mxu1 %v4119_v7  ;;  %376 = vmatprep.mubr.bf16.mxu1 %v4514_v20  ;;  %v170_v22 = vld [vmem:[%s5141_s0 + $0x8] sm:$0xff]  ;;  %v177_v23 = vld [vmem:[%s5143_s2] sm:$0xff] }
  0xbc   :  { %348 = vmatprep.subr.bf16.mxu1 %v4120_v8  ;;  %4110 = vset.pattern.permute.xlu0 %v4514_v20  ;;  %v178_v25 = vld [vmem:[%s5143_s2 + $0x8] sm:$0xff]  ;;  %v4140_v36 = vld [vmem:[#allocation9 + $0x4] ss:$16 sps:$4 sm:$0xff]   ;;  %v4141_v39 = vld [vmem:[#allocation9 + $0x8] ss:$16 sps:$4 sm:$0xff]  }
  0xbd   :  { %4069 = vmatmul.mubr.msk.bf16.vlgmr.msra.gmra.mrb[0].mxu0 %vm196_vm1, %v4113_v5  ;;  %391 = vperm.xlu0 %4110, %v169_v21   ;;  %v4143_v37 = vld [vmem:[#allocation9 + $0xc] ss:$16 sps:$4 sm:$0xff]   ;;  %v4138_v38 = vld [vmem:[#allocation9] ss:$16 sps:$4 sm:$0xff]   ;;  %v4146_v40 = vld [vmem:[#allocation9 + $0x24] ss:$16 sps:$4 sm:$0xff]  }
  0xbe   :  { %919 = vmatprep.subr.bf16.mxu0 %v4140_v36  ;;  %v4149_v41 = vld [vmem:[#allocation9 + $0x2c] ss:$16 sps:$4 sm:$0xff]   ;;  %v4144_v42 = vld [vmem:[#allocation9 + $0x20] ss:$16 sps:$4 sm:$0xff]   ;;  %v4147_v43 = vld [vmem:[#allocation9 + $0x28] ss:$16 sps:$4 sm:$0xff]  }
  0xbf   :  { %349 = vmatpush1.bf16.msra.mxu1 %v4122_v9  ;;  %920 = vmatpush1.bf16.msra.mxu0 %v4138_v38  ;;  %v4152_v44 = vld [vmem:[#allocation9 + $0x44] ss:$16 sps:$4 sm:$0xff]   ;;  %v4155_v45 = vld [vmem:[#allocation9 + $0x4c] ss:$16 sps:$4 sm:$0xff]   ;;  %v4150_v46 = vld [vmem:[#allocation9 + $0x40] ss:$16 sps:$4 sm:$0xff]  }
  0xc0   :  { %350 = vmatprep.subr.bf16.mxu1 %v4123_v10  ;;  %921 = vmatprep.subr.bf16.mxu0 %v4146_v40  ;;  %v4153_v47 = vld [vmem:[#allocation9 + $0x48] ss:$16 sps:$4 sm:$0xff]   ;;  %v4158_v48 = vld [vmem:[#allocation9 + $0x64] ss:$16 sps:$4 sm:$0xff]   ;;  %v4161_v49 = vld [vmem:[#allocation9 + $0x6c] ss:$16 sps:$4 sm:$0xff]  }
  0xc1   :  { %396 = vperm.xlu0 %4110, %v170_v22   ;;  %v4156_v50 = vld [vmem:[#allocation9 + $0x60] ss:$16 sps:$4 sm:$0xff]   ;;  %v4159_v51 = vld [vmem:[#allocation9 + $0x68] ss:$16 sps:$4 sm:$0xff]   ;;  %v4164_v52 = vld [vmem:[#allocation9 + $0x84] ss:$16 sps:$4 sm:$0xff]  }
  0xc2   :  { %v4167_v53 = vld [vmem:[#allocation9 + $0x8c] ss:$16 sps:$4 sm:$0xff]   ;;  %v4162_v54 = vld [vmem:[#allocation9 + $0x80] ss:$16 sps:$4 sm:$0xff]   ;;  %v4165_v55 = vld [vmem:[#allocation9 + $0x88] ss:$16 sps:$4 sm:$0xff]  }
  0xc3   :  { %351 = vmatpush1.bf16.msra.mxu1 %v4125_v11  ;;  %922 = vmatpush1.bf16.msra.mxu0 %v4144_v42  ;;  %v4170_v56 = vld [vmem:[#allocation9 + $0xa4] ss:$16 sps:$4 sm:$0xff]   ;;  %v4173_v57 = vld [vmem:[#allocation9 + $0xac] ss:$16 sps:$4 sm:$0xff]   ;;  %v4168_v58 = vld [vmem:[#allocation9 + $0xa0] ss:$16 sps:$4 sm:$0xff]  }
  0xc4   :  { %352 = vmatprep.subr.bf16.mxu1 %v4126_v12  ;;  %923 = vmatprep.subr.bf16.mxu0 %v4152_v44  ;;  %v4171_v59 = vld [vmem:[#allocation9 + $0xa8] ss:$16 sps:$4 sm:$0xff]   ;;  %v4176_v60 = vld [vmem:[#allocation9 + $0xc4] ss:$16 sps:$4 sm:$0xff]   ;;  %v4174_v61 = vld [vmem:[#allocation9 + $0xc0] ss:$16 sps:$4 sm:$0xff]  }
  0xc5   :  { %v4177_v62 = vld [vmem:[#allocation9 + $0xc8] ss:$16 sps:$4 sm:$0xff]   ;;  %v4179_v63 = vld [vmem:[#allocation9 + $0xcc] ss:$16 sps:$4 sm:$0xff]   ;;  %v4182_v0 = vld [vmem:[#allocation9 + $0xe4] ss:$16 sps:$4 sm:$0xff]  }
  0xc6   :  { %v4185_v1 = vld [vmem:[#allocation9 + $0xec] ss:$16 sps:$4 sm:$0xff]   ;;  %v4180_v2 = vld [vmem:[#allocation9 + $0xe0] ss:$16 sps:$4 sm:$0xff]   ;;  %v4183_v3 = vld [vmem:[#allocation9 + $0xe8] ss:$16 sps:$4 sm:$0xff]  }
  0xc7   :  { %353 = vmatpush1.bf16.msra.mxu1 %v4128_v13  ;;  %924 = vmatpush1.bf16.msra.mxu0 %v4150_v46  ;;  %v4188_v4 = vld [vmem:[#allocation9 + $0x104] ss:$16 sps:$4 sm:$0xff]   ;;  %v4191_v5 = vld [vmem:[#allocation9 + $0x10c] ss:$16 sps:$4 sm:$0xff]   ;;  %v4186_v6 = vld [vmem:[#allocation9 + $0x100] ss:$16 sps:$4 sm:$0xff]  }
  0xc8   :  { %354 = vmatprep.subr.bf16.mxu1 %v4129_v14  ;;  %925 = vmatprep.subr.bf16.mxu0 %v4158_v48  ;;  %v4189_v7 = vld [vmem:[#allocation9 + $0x108] ss:$16 sps:$4 sm:$0xff]   ;;  %v4194_v8 = vld [vmem:[#allocation9 + $0x124] ss:$16 sps:$4 sm:$0xff]   ;;  %v4197_v9 = vld [vmem:[#allocation9 + $0x12c] ss:$16 sps:$4 sm:$0xff]  }
  0xc9   :  { %v4192_v10 = vld [vmem:[#allocation9 + $0x120] ss:$16 sps:$4 sm:$0xff]   ;;  %v4195_v11 = vld [vmem:[#allocation9 + $0x128] ss:$16 sps:$4 sm:$0xff]   ;;  %v4200_v12 = vld [vmem:[#allocation9 + $0x144] ss:$16 sps:$4 sm:$0xff]  }
  0xca   :  { %v4203_v13 = vld [vmem:[#allocation9 + $0x14c] ss:$16 sps:$4 sm:$0xff]   ;;  %v4198_v14 = vld [vmem:[#allocation9 + $0x140] ss:$16 sps:$4 sm:$0xff]   ;;  %v4212_v20 = vld [vmem:[#allocation9 + $0x184] ss:$16 sps:$4 sm:$0xff]  }
  0xcb   :  { %355 = vmatpush1.bf16.msra.mxu1 %v4131_v15  ;;  %926 = vmatpush1.bf16.msra.mxu0 %v4156_v50  ;;  %v4201_v15 = vld [vmem:[#allocation9 + $0x148] ss:$16 sps:$4 sm:$0xff]   ;;  %v4215_v21 = vld [vmem:[#allocation9 + $0x18c] ss:$16 sps:$4 sm:$0xff]   ;;  %v4210_v22 = vld [vmem:[#allocation9 + $0x180] ss:$16 sps:$4 sm:$0xff]  }
  0xcc   :  { %356 = vmatprep.subr.bf16.mxu1 %v4132_v16  ;;  %927 = vmatprep.subr.bf16.mxu0 %v4164_v52  ;;  %v4206_v16 = vld [vmem:[#allocation9 + $0x164] ss:$16 sps:$4 sm:$0xff]  }
  0xcf   :  { %357 = vmatpush1.bf16.msra.mxu1 %v4134_v17  ;;  %928 = vmatpush1.bf16.msra.mxu0 %v4162_v54  ;;  %v4209_v17 = vld [vmem:[#allocation9 + $0x16c] ss:$16 sps:$4 sm:$0xff]  }
  0xd0   :  { %358 = vmatprep.subr.bf16.mxu1 %v4135_v18  ;;  %929 = vmatprep.subr.bf16.mxu0 %v4170_v56  ;;  %v4204_v18 = vld [vmem:[#allocation9 + $0x160] ss:$16 sps:$4 sm:$0xff]  }
  0xd3   :  { %359 = vmatpush1.bf16.msra.mxu1 %v4137_v19  ;;  %930 = vmatpush1.bf16.msra.mxu0 %v4168_v58  ;;  %v4207_v19 = vld [vmem:[#allocation9 + $0x168] ss:$16 sps:$4 sm:$0xff]  }
  0xd4   :  { %962 = vmatprep.subr.bf16.mxu1 %v4143_v37  ;;  %931 = vmatprep.subr.bf16.mxu0 %v4176_v60 }
  0xd7   :  { %932 = vmatpush1.bf16.msra.mxu0 %v4174_v61 }
  0xd8   :  { %933 = vmatprep.subr.bf16.mxu0 %v4182_v0 }
  0xdb   :  { %934 = vmatpush1.bf16.msra.mxu0 %v4180_v2 }
  0xdc   :  { %935 = vmatprep.subr.bf16.mxu0 %v4188_v4 }
  0xdf   :  { %936 = vmatpush1.bf16.msra.mxu0 %v4186_v6 }
  0xe0   :  { %937 = vmatprep.subr.bf16.mxu0 %v4194_v8 }
  0xe3   :  { %938 = vmatpush1.bf16.msra.mxu0 %v4192_v10 }
  0xe4   :  { %939 = vmatprep.subr.bf16.mxu0 %v4200_v12 }
  0xe7   :  { %940 = vmatpush1.bf16.msra.mxu0 %v4198_v14 }
  0xe8   :  { %941 = vmatprep.subr.bf16.mxu0 %v4206_v16 }
  0xeb   :  { %942 = vmatpush1.bf16.msra.mxu0 %v4204_v18 }
  0xec   :  { %943 = vmatprep.subr.bf16.mxu0 %v4212_v20 }
  0xef   :  { %944 = vmatpush1.bf16.msra.mxu0 %v4210_v22 }
 0x13c   :  { %v4721_v36 = vpop.permute.xlu0 %391 }
 0x190   :  { %v234_v24 = vpop.f32.mrb[0].mxu0 }
 0x191   :  { %v235_v26 = vadd.f32 %v234_v24, %v177_v23  ;;  %v4070_v27 = vpop.f32.mrb[1].mxu0  ;;  %v4213_v23 = vld [vmem:[#allocation9 + $0x188] ss:$16 sps:$4 sm:$0xff]   ;;  %v4218_v24 = vld [vmem:[#allocation9 + $0x1a4] ss:$16 sps:$4 sm:$0xff]  }
 0x192   :  { %v237_v28 = vpop.f32.mrb[2].mxu0  ;;  %v4219_v27 = vld [vmem:[#allocation9 + $0x1a8] ss:$16 sps:$4 sm:$0xff]   ;;  %945 = vmatprep.subr.bf16.mxu0 %v4218_v24 }
 0x193   :  { %v243_v29 = vmul.f32 0.2, %v235_v26  ;;  %v238_v30 = vadd.f32 %v237_v28, %v178_v25  ;;  %v4071_v31 = vpop.f32.mrb[3].mxu0  ;;  %vm241_vm2 = vcmp.gt.f32.partialorder %v235_v26, 0.0  ;;  %v4221_v25 = vld [vmem:[#allocation9 + $0x1ac] ss:$16 sps:$4 sm:$0xff]  }
 0x194   :  { %v4224_v28 = vld [vmem:[#allocation9 + $0x1c4] ss:$16 sps:$4 sm:$0xff]   ;;  %v4225_v31 = vld [vmem:[#allocation9 + $0x1c8] ss:$16 sps:$4 sm:$0xff]  }
 0x195   :  { %vm242_vm3 = vcmp.gt.f32.partialorder %v238_v30, 0.0  ;;  %v244_v32 = vmul.f32 0.2, %v238_v30  ;;  %v245_v33 = vsel %vm241_vm2, %v235_v26, %v243_v29  ;;  %v4216_v26 = vld [vmem:[#allocation9 + $0x1a0] ss:$16 sps:$4 sm:$0xff]  }
 0x196   :  { %946 = vmatpush1.bf16.msra.mxu0 %v4216_v26  ;;  %v4227_v29 = vld [vmem:[#allocation9 + $0x1cc] ss:$16 sps:$4 sm:$0xff]  }
 0x197   :  { %v246_v34 = vsel %vm242_vm3, %v238_v30, %v244_v32  ;;  %v4222_v30 = vld [vmem:[#allocation9 + $0x1c0] ss:$16 sps:$4 sm:$0xff]   ;;  %947 = vmatprep.subr.bf16.mxu0 %v4224_v28  ;;  %v4230_v32 = vld [vmem:[#allocation9 + $0x1e4] ss:$16 sps:$4 sm:$0xff]   ;;  %v4515_v28 = vmov 1966171168  }
 0x198   :  { %v247_v35 = vpack.c.bf16 %v246_v34, %v245_v33  ;;  %v4228_v33 = vld [vmem:[#allocation9 + $0x1e0] ss:$16 sps:$4 sm:$0xff]   ;;  %v4233_v34 = vld [vmem:[#allocation9 + $0x1ec] ss:$16 sps:$4 sm:$0xff]  }
 0x19a   :  { %377 = vmatmul.mubr.bf16.vlgmr.msra.gmra.mrb[0].mxu1 %v247_v35  ;;  %948 = vmatpush1.bf16.msra.mxu0 %v4222_v30  ;;  %v4231_v35 = vld [vmem:[#allocation9 + $0x1e8] ss:$16 sps:$4 sm:$0xff]   ;;  %v457_v30 = vlaneseq }
 0x19b   :  { %963 = vmatpush1.bf16.msra.mxu1 %v4141_v39  ;;  %949 = vmatprep.subr.bf16.mxu0 %v4230_v32  ;;  %v4727_v39 = vpop.permute.xlu0 %396 }
 0x19c   :  { %964 = vmatprep.subr.bf16.mxu1 %v4149_v41  ;;  %v4749_v32 = vshrl.u32 %v457_v30, 7  ;;  %v1282_v30 = vld [vmem:[#allocation13 + $0xa8] sm:$0xff] }
 0x19e   :  { %950 = vmatpush1.bf16.msra.mxu0 %v4228_v33 }
 0x19f   :  { %965 = vmatpush1.bf16.msra.mxu1 %v4147_v43 }
 0x1a0   :  { %966 = vmatprep.subr.bf16.mxu1 %v4155_v45 }
 0x1a3   :  { %967 = vmatpush1.bf16.msra.mxu1 %v4153_v47 }
 0x1a4   :  { %968 = vmatprep.subr.bf16.mxu1 %v4161_v49 }
 0x1a7   :  { %969 = vmatpush1.bf16.msra.mxu1 %v4159_v51 }
 0x1a8   :  { %970 = vmatprep.subr.bf16.mxu1 %v4167_v53 }
 0x1ab   :  { %971 = vmatpush1.bf16.msra.mxu1 %v4165_v55 }
 0x1ac   :  { %972 = vmatprep.subr.bf16.mxu1 %v4173_v57 }
 0x1af   :  { %973 = vmatpush1.bf16.msra.mxu1 %v4171_v59 }
 0x1b0   :  { %974 = vmatprep.subr.bf16.mxu1 %v4179_v63 }
 0x1b3   :  { %975 = vmatpush1.bf16.msra.mxu1 %v4177_v62 }
 0x1b4   :  { %976 = vmatprep.subr.bf16.mxu1 %v4185_v1 }
 0x1b7   :  { %977 = vmatpush1.bf16.msra.mxu1 %v4183_v3 }
 0x1b8   :  { %978 = vmatprep.subr.bf16.mxu1 %v4191_v5 }
 0x1bb   :  { %979 = vmatpush1.bf16.msra.mxu1 %v4189_v7 }
 0x1bc   :  { %980 = vmatprep.subr.bf16.mxu1 %v4197_v9 }
 0x1bf   :  { %981 = vmatpush1.bf16.msra.mxu1 %v4195_v11 }
 0x1c0   :  { %982 = vmatprep.subr.bf16.mxu1 %v4203_v13 }
 0x1c3   :  { %983 = vmatpush1.bf16.msra.mxu1 %v4201_v15 }
 0x1c4   :  { %984 = vmatprep.subr.bf16.mxu1 %v4209_v17 }
 0x1c7   :  { %985 = vmatpush1.bf16.msra.mxu1 %v4207_v19 }
 0x1c8   :  { %986 = vmatprep.subr.bf16.mxu1 %v4215_v21 }
 0x1cb   :  { %987 = vmatpush1.bf16.msra.mxu1 %v4213_v23 }
 0x1cc   :  { %988 = vmatprep.subr.bf16.mxu1 %v4221_v25 }
 0x1cf   :  { %989 = vmatpush1.bf16.msra.mxu1 %v4219_v27 }
 0x1d0   :  { %990 = vmatprep.subr.bf16.mxu1 %v4227_v29  ;;  %v455_v29 = vunpack.c.l.s4 %v4515_v28  ;;  %v1278_v28 = vld [vmem:[#allocation13 + $0x88] sm:$0xff] }
 0x1d3   :  { %991 = vmatpush1.bf16.msra.mxu1 %v4225_v31  ;;  %v456_v31 = vunpack.c.0.s8 %v455_v29 }
 0x1d4   :  { %992 = vmatprep.subr.bf16.mxu1 %v4233_v34 }
 0x1d5   :  { %v4752_v34 = vsub.s32 %v456_v31, %v4749_v32 }
 0x1d7   :  { %993 = vmatpush1.bf16.msra.mxu1 %v4231_v35 }
 0x26d   :  { %v4723_v37 = vpop.f32.mrb[0].mxu1 }
 0x26e   :  { %v4725_v38 = vpop.f32.mrb[1].mxu1  ;;  %v399_v41 = vmul.f32 %v4721_v36, %v4723_v37 }
 0x26f   :  { %v4729_v40 = vpop.f32.mrb[2].mxu1  ;;  %v400_v44 = vmul.f32 %v4721_v36, %v4725_v38 }
 0x270   :  { %v401_v42 = vmul.f32 %v4727_v39, %v4729_v40  ;;  %v4735_v43 = vpop.f32.mrb[3].mxu1 }
 0x271   :  { %v402_v45 = vmul.f32 %v4727_v39, %v4735_v43 }
 0x272   :  { %v403_v46 = vadd.f32 %v401_v42, %v399_v41 }
 0x273   :  { %v410_v47 = vadd.f32 %v402_v45, %v400_v44  ;;  %v387_v44 = vld [vmem:[#allocation6] sm:$0x3] }
 0x274   :  { %v404_v48 = vrot.slane %v403_v46, 4 }
 0x275   :  { %v411_v49 = vrot.slane %v410_v47, 4 }
 0x276   :  { %v405_v50 = vadd.f32 %v404_v48, %v403_v46  ;;  %v4757_v46 = vsub.s32 0, %v4749_v32 }
 0x277   :  { %v412_v51 = vadd.f32 %v411_v49, %v410_v47  ;;  %v4760_v47 = vsub.s32 1, %v4749_v32 }
 0x278   :  { %v406_v52 = vrot.slane %v405_v50, 2 }
 0x279   :  { %v413_v53 = vrot.slane %v412_v51, 2 }
 0x27a   :  { %v407_v54 = vadd.f32 %v406_v52, %v405_v50 }
 0x27b   :  { %v414_v55 = vadd.f32 %v413_v53, %v412_v51 }
 0x27c   :  { %v408_v56 = vrot.slane %v407_v54, 1 }
 0x27d   :  { %v415_v57 = vrot.slane %v414_v55, 1 }
 0x27e   :  { %v409_v58 = vadd.f32 %v408_v56, %v407_v54 }
 0x27f   :  { %v416_v59 = vadd.f32 %v415_v57, %v414_v55 }
 0x280   :  { %v417_v60 = vmul.f32 0.5, %v409_v58 }
 0x281   :  { %v418_v61 = vmul.f32 0.5, %v416_v59  ;;  %v388_v59 = vld [vmem:[#allocation7] sm:$0x3] }
 0x282   :  { %v419_v62 = vsub.f32 %v4723_v37, %v417_v60  ;;  %v421_v63 = vsub.f32 %v4729_v40, %v417_v60 }
 0x283   :  { %v420_v0 = vsub.f32 %v4725_v38, %v418_v61  ;;  %v422_v1 = vsub.f32 %v4735_v43, %v418_v61 }
 0x284   :  { %v423_v2 = vmul.f32 %v419_v62, %v4721_v36  ;;  %v425_v3 = vmul.f32 %v421_v63, %v4727_v39 }
 0x285   :  { %v424_v4 = vmul.f32 %v420_v0, %v4721_v36  ;;  %v426_v5 = vmul.f32 %v422_v1, %v4727_v39 }
 0x286   :  { %v427_v6 = vmul.f32 %v423_v2, %v423_v2  ;;  %v429_v7 = vmul.f32 %v425_v3, %v425_v3 }
 0x287   :  { %v428_v8 = vmul.f32 %v424_v4, %v424_v4  ;;  %v430_v9 = vmul.f32 %v426_v5, %v426_v5 }
 0x288   :  { %v431_v10 = vadd.f32 %v429_v7, %v427_v6 }
 0x289   :  { %v438_v11 = vadd.f32 %v430_v9, %v428_v8 }
 0x28a   :  { %v432_v12 = vrot.slane %v431_v10, 4 }
 0x28b   :  { %v439_v13 = vrot.slane %v438_v11, 4 }
 0x28c   :  { %v433_v14 = vadd.f32 %v432_v12, %v431_v10  ;;  %v1261_v10 = vld [vmem:[#allocation13] sm:$0xff]  ;;  %v1262_v12 = vld [vmem:[#allocation13 + $0x8] sm:$0xff] }
 0x28d   :  { %v440_v15 = vadd.f32 %v439_v13, %v438_v11  ;;  %v1265_v11 = vld [vmem:[#allocation13 + $0x20] sm:$0xff] }
 0x28e   :  { %v434_v16 = vrot.slane %v433_v14, 2  ;;  %v3790_v13 = vcombine.high %v1261_v10, %v1265_v11 }
 0x28f   :  { %v441_v17 = vrot.slane %v440_v15, 2 }
 0x290   :  { %v435_v18 = vadd.f32 %v434_v16, %v433_v14  ;;  %v1266_v14 = vld [vmem:[#allocation13 + $0x28] sm:$0xff]  ;;  %2797 = vmatprep.subr.bf16.mxu0 %v3790_v13 }
 0x291   :  { %v442_v19 = vadd.f32 %v441_v17, %v440_v15  ;;  %v3789_v15 = vcombine.low %v1261_v10, %v1265_v11  ;;  %v3791_v16 = vcombine.low %v1262_v12, %v1266_v14  ;;  %v3792_v17 = vcombine.high %v1262_v12, %v1266_v14  ;;  %v1318_v10 = vld [vmem:[#allocation13 + $0x1c8] sm:$0xff] }
 0x292   :  { %v436_v20 = vrot.slane %v435_v18, 1  ;;  %v1322_v12 = vld [vmem:[#allocation13 + $0x1e8] sm:$0xff] }
 0x293   :  { %v443_v21 = vrot.slane %v442_v19, 1  ;;  %2883 = vmatprep.subr.bf16.mxu1 %v3792_v17  ;;  %v3847_v14 = vcombine.low %v1318_v10, %v1322_v12  ;;  %v1329_v17 = vld [vmem:[#allocation13 + $0x220] sm:$0xff] }
 0x294   :  { %v437_v22 = vadd.f32 %v436_v20, %v435_v18  ;;  %v1269_v18 = vld [vmem:[#allocation13 + $0x40] sm:$0xff]  ;;  %v1270_v20 = vld [vmem:[#allocation13 + $0x48] sm:$0xff] }
 0x295   :  { %v444_v23 = vadd.f32 %v443_v21, %v442_v19  ;;  %v1273_v19 = vld [vmem:[#allocation13 + $0x60] sm:$0xff] }
 0x296   :  { %v445_v24 = vmul.f32 0.5, %v437_v22  ;;  %v3798_v21 = vcombine.high %v1269_v18, %v1273_v19  ;;  %v1274_v22 = vld [vmem:[#allocation13 + $0x68] sm:$0xff] }
 0x297   :  { %v446_v25 = vmul.f32 0.5, %v444_v23  ;;  %v3797_v23 = vcombine.low %v1269_v18, %v1273_v19  ;;  %v1326_v18 = vld [vmem:[#allocation13 + $0x208] sm:$0xff] }
 0x298   :  { %v447_v26 = vadd.f32 1e-05, %v445_v24  ;;  %v3799_v24 = vcombine.low %v1270_v20, %v1274_v22 }
 0x299   :  { %v448_v27 = vadd.f32 1e-05, %v446_v25  ;;  %v3800_v25 = vcombine.high %v1270_v20, %v1274_v22  ;;  %v1330_v20 = vld [vmem:[#allocation13 + $0x228] sm:$0xff] }
 0x29a   :  { %4234 = vrsqrt.f32 %v447_v26  ;;  %v1277_v26 = vld [vmem:[#allocation13 + $0x80] sm:$0xff]  ;;  %v3855_v22 = vcombine.low %v1326_v18, %v1330_v20 }
 0x29b   :  { %4236 = vrsqrt.f32 %v448_v27  ;;  %v1281_v27 = vld [vmem:[#allocation13 + $0xa0] sm:$0xff] }
 0x29c   :  { %v3806_v29 = vcombine.high %v1277_v26, %v1281_v27  ;;  %v3805_v31 = vcombine.low %v1277_v26, %v1281_v27  ;;  %v1334_v26 = vld [vmem:[#allocation13 + $0x248] sm:$0xff] }
 0x2a4   :  { %v4235_v33 = vpop.eup %4234 }
 0x2a5   :  { %v4237_v35 = vpop.eup %4236 }
 0x2a6   :  { %v453_v41 = vcombine.low %v4235_v33, %v4237_v35  ;;  %v3807_v33 = vcombine.low %v1278_v28, %v1282_v30  ;;  %v3808_v35 = vcombine.high %v1278_v28, %v1282_v30  ;;  %v1338_v28 = vld [vmem:[#allocation13 + $0x268] sm:$0xff] }
 0x2a7   :  { %v3863_v30 = vcombine.low %v1334_v26, %v1338_v28 }
 0x2a8   :  { %v460_v42 = vrot.slane %v453_v41, %v4752_v34  ;;  %v1285_v41 = vld [vmem:[#allocation13 + $0xc0] sm:$0xff] }
 0x2aa   :  { %v467_v45 = vrot.slane %v460_v42, %v4752_v34  ;;  %v1289_v42 = vld [vmem:[#allocation13 + $0xe0] sm:$0xff] }
 0x2ac   :  { %v469_v48 = vmul.f32 %v467_v45, %v387_v44  ;;  %v1286_v44 = vld [vmem:[#allocation13 + $0xc8] sm:$0xff]  ;;  %v3814_v45 = vcombine.high %v1285_v41, %v1289_v42 }
 0x2ae   :  { %v474_v49 = vrot.slane %v469_v48, %v4757_v46  ;;  %v478_v50 = vrot.slane %v469_v48, %v4760_v47  ;;  %v1290_v48 = vld [vmem:[#allocation13 + $0xe8] sm:$0xff] }
 0x2b0   :  { %v481_v51 = vmul.f32 %v474_v49, %v417_v60  ;;  %v482_v52 = vmul.f32 %v478_v50, %v418_v61  ;;  %v505_v53 = vmul.f32 %v478_v50, %v4735_v43  ;;  %v503_v54 = vmul.f32 %v478_v50, %v4725_v38 }
 0x2b1   :  { %v502_v55 = vmul.f32 %v474_v49, %v4723_v37  ;;  %v504_v56 = vmul.f32 %v474_v49, %v4729_v40  ;;  %v3813_v49 = vcombine.low %v1285_v41, %v1289_v42  ;;  %v3815_v50 = vcombine.low %v1286_v44, %v1290_v48  ;;  %v1342_v41 = vld [vmem:[#allocation13 + $0x288] sm:$0xff] }
 0x2b2   :  { %v485_v57 = vcombine.low %v481_v51, %v482_v52  ;;  %v3816_v51 = vcombine.high %v1286_v44, %v1290_v48  ;;  %v1293_v52 = vld [vmem:[#allocation13 + $0x100] sm:$0xff]  ;;  %v1346_v44 = vld [vmem:[#allocation13 + $0x2a8] sm:$0xff] }
 0x2b3   :  { %v3871_v48 = vcombine.low %v1342_v41, %v1346_v44 }
 0x2b4   :  { %v492_v58 = vrot.slane %v485_v57, %v4752_v34 }
 0x2b6   :  { %v499_v62 = vrot.slane %v492_v58, %v4752_v34 }
 0x2b8   :  { %v501_v63 = vsub.f32 %v388_v59, %v499_v62  ;;  %v1301_v62 = vld [vmem:[#allocation13 + $0x140] sm:$0xff] }
 0x2ba   :  { %v510_v0 = vrot.slane %v501_v63, %v4757_v46  ;;  %v514_v60 = vrot.slane %v501_v63, %v4760_v47  ;;  %v1305_v63 = vld [vmem:[#allocation13 + $0x160] sm:$0xff] }
 0x2bc   :  { %v520_v61 = vadd.f32 %v514_v60, %v505_v53  ;;  %v518_v1 = vadd.f32 %v514_v60, %v503_v54  ;;  %v517_v43 = vadd.f32 %v510_v0, %v502_v55  ;;  %v519_v2 = vadd.f32 %v510_v0, %v504_v56  ;;  %v1297_v53 = vld [vmem:[#allocation13 + $0x120] sm:$0xff]  ;;  %v1294_v54 = vld [vmem:[#allocation13 + $0x108] sm:$0xff] }
 0x2bd   :  { %v3822_v55 = vcombine.high %v1293_v52, %v1297_v53  ;;  %v1298_v56 = vld [vmem:[#allocation13 + $0x128] sm:$0xff]  ;;  %v3821_v57 = vcombine.low %v1293_v52, %v1297_v53  ;;  %v3830_v60 = vcombine.high %v1301_v62, %v1305_v63 }
 0x2be   :  { %vm522_vm4 = vcmp.gt.f32.partialorder %v518_v1, 0.0  ;;  %vm524_vm5 = vcmp.gt.f32.partialorder %v520_v61, 0.0  ;;  %v526_v37 = vmul.f32 0.2, %v518_v1  ;;  %v528_v38 = vmul.f32 0.2, %v520_v61 }
 0x2bf   :  { %vm521_vm6 = vcmp.gt.f32.partialorder %v517_v43, 0.0  ;;  %vm523_vm7 = vcmp.gt.f32.partialorder %v519_v2, 0.0  ;;  %v525_v40 = vmul.f32 0.2, %v517_v43  ;;  %v527_v3 = vmul.f32 0.2, %v519_v2 }
 0x2c0   :  { %v530_v4 = vsel %vm522_vm4, %v518_v1, %v526_v37  ;;  %v532_v5 = vsel %vm524_vm5, %v520_v61, %v528_v38  ;;  %v3823_v58 = vcombine.low %v1294_v54, %v1298_v56  ;;  %v3824_v59 = vcombine.high %v1294_v54, %v1298_v56  ;;  %v1302_v0 = vld [vmem:[#allocation13 + $0x148] sm:$0xff]  ;;  %v1309_v37 = vld [vmem:[#allocation13 + $0x180] sm:$0xff] }
 0x2c1   :  { %v534_v6 = vpack.c.bf16 %v532_v5, %v530_v4  ;;  %v529_v7 = vsel %vm521_vm6, %v517_v43, %v525_v40  ;;  %v531_v8 = vsel %vm523_vm7, %v519_v2, %v527_v3  ;;  %v1306_v61 = vld [vmem:[#allocation13 + $0x168] sm:$0xff]  ;;  %v3829_v1 = vcombine.low %v1301_v62, %v1305_v63  ;;  %v1313_v38 = vld [vmem:[#allocation13 + $0x1a0] sm:$0xff] }
 0x2c2   :  { %v533_v9 = vpack.c.bf16 %v531_v8, %v529_v7  ;;  %v3831_v43 = vcombine.low %v1302_v0, %v1306_v61  ;;  %v3832_v2 = vcombine.high %v1302_v0, %v1306_v61  ;;  %v1310_v40 = vld [vmem:[#allocation13 + $0x188] sm:$0xff]  ;;  %v3838_v3 = vcombine.high %v1309_v37, %v1313_v38  ;;  %v1317_v8 = vld [vmem:[#allocation13 + $0x1c0] sm:$0xff] }
 0x2c3   :  { %951 = vmatprep.mubr.bf16.mxu0 %v534_v6  ;;  %994 = vmatprep.mubr.bf16.mxu1 %v534_v6  ;;  %v1314_v4 = vld [vmem:[#allocation13 + $0x1a8] sm:$0xff]  ;;  %v3837_v5 = vcombine.low %v1309_v37, %v1313_v38 }
 0x2c4   :  { %952 = vmatmul.mubr.bf16.vlgmr.msra.gmra.mrb[4].mxu0 %v533_v9  ;;  %995 = vmatmul.mubr.bf16.vlgmr.msra.gmra.mrb[4].mxu1 %v533_v9  ;;  %v3839_v6 = vcombine.low %v1310_v40, %v1314_v4  ;;  %v3840_v7 = vcombine.high %v1310_v40, %v1314_v4  ;;  %v1321_v9 = vld [vmem:[#allocation13 + $0x1e0] sm:$0xff]  ;;  %v1350_v52 = vld [vmem:[#allocation13 + $0x2c8] sm:$0xff] }
 0x2c5   :  { %2798 = vmatpush1.bf16.msra.mxu0 %v3789_v15  ;;  %2884 = vmatpush1.bf16.msra.mxu1 %v3791_v16  ;;  %v3846_v11 = vcombine.high %v1317_v8, %v1321_v9  ;;  %v3845_v13 = vcombine.low %v1317_v8, %v1321_v9  ;;  %v3848_v15 = vcombine.high %v1318_v10, %v1322_v12  ;;  %v1325_v16 = vld [vmem:[#allocation13 + $0x200] sm:$0xff]  ;;  %v1354_v54 = vld [vmem:[#allocation13 + $0x2e8] sm:$0xff] }
 0x2c6   :  { %2799 = vmatprep.subr.bf16.mxu0 %v3798_v21  ;;  %2885 = vmatprep.subr.bf16.mxu1 %v3800_v25  ;;  %v3854_v19 = vcombine.high %v1325_v16, %v1329_v17  ;;  %v3853_v21 = vcombine.low %v1325_v16, %v1329_v17  ;;  %v1337_v25 = vld [vmem:[#allocation13 + $0x260] sm:$0xff]  ;;  %v3879_v56 = vcombine.low %v1350_v52, %v1354_v54  ;;  %v1358_v62 = vld [vmem:[#allocation13 + $0x308] sm:$0xff] }
 0x2c7   :  { %v1362_v0 = vld [vmem:[#allocation13 + $0x328] sm:$0xff] }
 0x2c8   :  { %v3887_v61 = vcombine.low %v1358_v62, %v1362_v0  ;;  %v1366_v37 = vld [vmem:[#allocation13 + $0x348] sm:$0xff] }
 0x2c9   :  { %2800 = vmatpush1.bf16.msra.mxu0 %v3797_v23  ;;  %2886 = vmatpush1.bf16.msra.mxu1 %v3799_v24  ;;  %v3856_v23 = vcombine.high %v1326_v18, %v1330_v20  ;;  %v1333_v24 = vld [vmem:[#allocation13 + $0x240] sm:$0xff]  ;;  %v1370_v40 = vld [vmem:[#allocation13 + $0x368] sm:$0xff] }
 0x2ca   :  { %2801 = vmatprep.subr.bf16.mxu0 %v3806_v29  ;;  %2887 = vmatprep.subr.bf16.mxu1 %v3808_v35  ;;  %v3862_v27 = vcombine.high %v1333_v24, %v1337_v25  ;;  %v3861_v29 = vcombine.low %v1333_v24, %v1337_v25  ;;  %v1345_v35 = vld [vmem:[#allocation13 + $0x2a0] sm:$0xff]  ;;  %v3895_v4 = vcombine.low %v1366_v37, %v1370_v40  ;;  %v1374_v8 = vld [vmem:[#allocation13 + $0x388] sm:$0xff] }
 0x2cb   :  { %v1378_v10 = vld [vmem:[#allocation13 + $0x3a8] sm:$0xff] }
 0x2cc   :  { %v3903_v12 = vcombine.low %v1374_v8, %v1378_v10  ;;  %v1382_v16 = vld [vmem:[#allocation13 + $0x3c8] sm:$0xff] }
 0x2cd   :  { %2802 = vmatpush1.bf16.msra.mxu0 %v3805_v31  ;;  %2888 = vmatpush1.bf16.msra.mxu1 %v3807_v33  ;;  %v3864_v31 = vcombine.high %v1334_v26, %v1338_v28  ;;  %v1341_v33 = vld [vmem:[#allocation13 + $0x280] sm:$0xff]  ;;  %v4776_v24 = vld [vmem:[#allocation13 + $0x408] sm:$0xff] }
 0x2ce   :  { %2803 = vmatprep.subr.bf16.mxu0 %v3814_v45  ;;  %2889 = vmatprep.subr.bf16.mxu1 %v3816_v51  ;;  %v3870_v42 = vcombine.high %v1341_v33, %v1345_v35  ;;  %v3869_v45 = vcombine.low %v1341_v33, %v1345_v35  ;;  %v1353_v51 = vld [vmem:[#allocation13 + $0x2e0] sm:$0xff]  ;;  %v4780_v26 = vld [vmem:[#allocation13 + $0x428] sm:$0xff] }
 0x2cf   :  { %v3919_v28 = vcombine.low %v4776_v24, %v4780_v26 }
 0x2d1   :  { %2804 = vmatpush1.bf16.msra.mxu0 %v3813_v49  ;;  %2890 = vmatpush1.bf16.msra.mxu1 %v3815_v50  ;;  %v3872_v49 = vcombine.high %v1342_v41, %v1346_v44  ;;  %v1349_v50 = vld [vmem:[#allocation13 + $0x2c0] sm:$0xff] }
 0x2d2   :  { %2805 = vmatprep.subr.bf16.mxu0 %v3822_v55  ;;  %2891 = vmatprep.subr.bf16.mxu1 %v3824_v59  ;;  %v3878_v53 = vcombine.high %v1349_v50, %v1353_v51  ;;  %v3877_v55 = vcombine.low %v1349_v50, %v1353_v51  ;;  %v1361_v59 = vld [vmem:[#allocation13 + $0x320] sm:$0xff] }
 0x2d5   :  { %2806 = vmatpush1.bf16.msra.mxu0 %v3821_v57  ;;  %2892 = vmatpush1.bf16.msra.mxu1 %v3823_v58  ;;  %v3880_v57 = vcombine.high %v1350_v52, %v1354_v54  ;;  %v1357_v58 = vld [vmem:[#allocation13 + $0x300] sm:$0xff] }
 0x2d6   :  { %2807 = vmatprep.subr.bf16.mxu0 %v3830_v60  ;;  %2893 = vmatprep.subr.bf16.mxu1 %v3832_v2  ;;  %v3886_v63 = vcombine.high %v1357_v58, %v1361_v59  ;;  %v3885_v60 = vcombine.low %v1357_v58, %v1361_v59  ;;  %v1369_v2 = vld [vmem:[#allocation13 + $0x360] sm:$0xff] }
 0x2d9   :  { %2808 = vmatpush1.bf16.msra.mxu0 %v3829_v1  ;;  %2894 = vmatpush1.bf16.msra.mxu1 %v3831_v43  ;;  %v3888_v1 = vcombine.high %v1358_v62, %v1362_v0  ;;  %v1365_v43 = vld [vmem:[#allocation13 + $0x340] sm:$0xff] }
 0x2da   :  { %2809 = vmatprep.subr.bf16.mxu0 %v3838_v3  ;;  %2895 = vmatprep.subr.bf16.mxu1 %v3840_v7  ;;  %v3894_v38 = vcombine.high %v1365_v43, %v1369_v2  ;;  %v3893_v3 = vcombine.low %v1365_v43, %v1369_v2  ;;  %v1377_v7 = vld [vmem:[#allocation13 + $0x3a0] sm:$0xff] }
 0x2dd   :  { %2810 = vmatpush1.bf16.msra.mxu0 %v3837_v5  ;;  %2896 = vmatpush1.bf16.msra.mxu1 %v3839_v6  ;;  %v3896_v5 = vcombine.high %v1366_v37, %v1370_v40  ;;  %v1373_v6 = vld [vmem:[#allocation13 + $0x380] sm:$0xff] }
 0x2de   :  { %2811 = vmatprep.subr.bf16.mxu0 %v3846_v11  ;;  %2897 = vmatprep.subr.bf16.mxu1 %v3848_v15  ;;  %v3902_v9 = vcombine.high %v1373_v6, %v1377_v7  ;;  %v3901_v11 = vcombine.low %v1373_v6, %v1377_v7  ;;  %v1385_v15 = vld [vmem:[#allocation13 + $0x3e0] sm:$0xff] }
 0x2e1   :  { %2812 = vmatpush1.bf16.msra.mxu0 %v3845_v13  ;;  %2898 = vmatpush1.bf16.msra.mxu1 %v3847_v14  ;;  %v3904_v13 = vcombine.high %v1374_v8, %v1378_v10  ;;  %v1381_v14 = vld [vmem:[#allocation13 + $0x3c0] sm:$0xff] }
 0x2e2   :  { %2813 = vmatprep.subr.bf16.mxu0 %v3854_v19  ;;  %2899 = vmatprep.subr.bf16.mxu1 %v3856_v23  ;;  %v3909_v17 = vcombine.low %v1381_v14, %v1385_v15  ;;  %v3910_v18 = vcombine.high %v1381_v14, %v1385_v15  ;;  %v1386_v19 = vld [vmem:[#allocation13 + $0x3e8] sm:$0xff]  ;;  %v4774_v23 = vld [vmem:[#allocation13 + $0x420] sm:$0xff] }
 0x2e3   :  { %v3911_v20 = vcombine.low %v1382_v16, %v1386_v19 }
 0x2e5   :  { %2814 = vmatpush1.bf16.msra.mxu0 %v3853_v21  ;;  %2900 = vmatpush1.bf16.msra.mxu1 %v3855_v22  ;;  %v3912_v21 = vcombine.high %v1382_v16, %v1386_v19  ;;  %v4772_v22 = vld [vmem:[#allocation13 + $0x400] sm:$0xff] }
 0x2e6   :  { %2815 = vmatprep.subr.bf16.mxu0 %v3862_v27  ;;  %2901 = vmatprep.subr.bf16.mxu1 %v3864_v31  ;;  %v3918_v25 = vcombine.high %v4772_v22, %v4774_v23  ;;  %v3917_v27 = vcombine.low %v4772_v22, %v4774_v23  ;;  %v1414_v22 = vld [vmem:[#allocation13 + $0x4c8] sm:$0xff] }
 0x2e7   :  { %v1418_v23 = vld [vmem:[#allocation13 + $0x4e8] sm:$0xff] }
 0x2e9   :  { %2816 = vmatpush1.bf16.msra.mxu0 %v3861_v29  ;;  %2902 = vmatpush1.bf16.msra.mxu1 %v3863_v30  ;;  %v3920_v29 = vcombine.high %v4776_v24, %v4780_v26 }
 0x2ea   :  { %2817 = vmatprep.subr.bf16.mxu0 %v3870_v42  ;;  %2903 = vmatprep.subr.bf16.mxu1 %v3872_v49 }
 0x2ed   :  { %2818 = vmatpush1.bf16.msra.mxu0 %v3869_v45  ;;  %2904 = vmatpush1.bf16.msra.mxu1 %v3871_v48 }
 0x2ee   :  { %2819 = vmatprep.subr.bf16.mxu0 %v3878_v53  ;;  %2905 = vmatprep.subr.bf16.mxu1 %v3880_v57 }
 0x2f1   :  { %2820 = vmatpush1.bf16.msra.mxu0 %v3877_v55  ;;  %2906 = vmatpush1.bf16.msra.mxu1 %v3879_v56 }
 0x2f2   :  { %2821 = vmatprep.subr.bf16.mxu0 %v3886_v63  ;;  %2907 = vmatprep.subr.bf16.mxu1 %v3888_v1 }
 0x2f5   :  { %2822 = vmatpush1.bf16.msra.mxu0 %v3885_v60  ;;  %2908 = vmatpush1.bf16.msra.mxu1 %v3887_v61 }
 0x2f6   :  { %2823 = vmatprep.subr.bf16.mxu0 %v3894_v38  ;;  %2909 = vmatprep.subr.bf16.mxu1 %v3896_v5 }
 0x2f9   :  { %2824 = vmatpush1.bf16.msra.mxu0 %v3893_v3  ;;  %2910 = vmatpush1.bf16.msra.mxu1 %v3895_v4 }
 0x2fa   :  { %2825 = vmatprep.subr.bf16.mxu0 %v3902_v9  ;;  %2911 = vmatprep.subr.bf16.mxu1 %v3904_v13 }
 0x2fd   :  { %2826 = vmatpush1.bf16.msra.mxu0 %v3901_v11  ;;  %2912 = vmatpush1.bf16.msra.mxu1 %v3903_v12 }
 0x2fe   :  { %2827 = vmatprep.subr.bf16.mxu0 %v3910_v18  ;;  %2913 = vmatprep.subr.bf16.mxu1 %v3912_v21 }
 0x301   :  { %2828 = vmatpush1.bf16.msra.mxu0 %v3909_v17  ;;  %2914 = vmatpush1.bf16.msra.mxu1 %v3911_v20 }
 0x302   :  { %2840 = vmatprep.subr.bf16.mxu0 %v3918_v25  ;;  %2926 = vmatprep.subr.bf16.mxu1 %v3920_v29 }
 0x397   :  { %v4788_v30 = vpop.f32.mrb[4].mxu0  ;;  %v4790_v31 = vpop.f32.mrb[4].mxu1 }
 0x398   :  { %v4792_v33 = vpop.f32.mrb[5].mxu0  ;;  %v4794_v35 = vpop.f32.mrb[5].mxu1  ;;  %v1007_v44 = vmul.f32 %v4788_v30, %v4721_v36  ;;  %v1009_v45 = vmul.f32 %v4790_v31, %v4721_v36 }
 0x399   :  { %v4796_v41 = vpop.f32.mrb[6].mxu0  ;;  %v4798_v42 = vpop.f32.mrb[6].mxu1  ;;  %v1008_v52 = vmul.f32 %v4792_v33, %v4721_v36  ;;  %v1010_v53 = vmul.f32 %v4794_v35, %v4721_v36 }
 0x39a   :  { %v1011_v48 = vmul.f32 %v4796_v41, %v4727_v39  ;;  %v1013_v49 = vmul.f32 %v4798_v42, %v4727_v39  ;;  %v4808_v50 = vpop.f32.mrb[7].mxu0  ;;  %v4810_v51 = vpop.f32.mrb[7].mxu1 }
 0x39b   :  { %v1012_v54 = vmul.f32 %v4808_v50, %v4727_v39  ;;  %v1014_v55 = vmul.f32 %v4810_v51, %v4727_v39 }
 0x39c   :  { %v1015_v56 = vadd.f32 %v1011_v48, %v1007_v44  ;;  %v1029_v57 = vadd.f32 %v1013_v49, %v1009_v45 }
 0x39d   :  { %v1022_v58 = vadd.f32 %v1012_v54, %v1008_v52  ;;  %v1036_v59 = vadd.f32 %v1014_v55, %v1010_v53 }
 0x39e   :  { %v1016_v62 = vrot.slane %v1015_v56, 4  ;;  %v1030_v63 = vrot.slane %v1029_v57, 4 }
 0x39f   :  { %v1023_v0 = vrot.slane %v1022_v58, 4  ;;  %v1037_v60 = vrot.slane %v1036_v59, 4 }
 0x3a0   :  { %v1017_v61 = vadd.f32 %v1016_v62, %v1015_v56  ;;  %v1031_v1 = vadd.f32 %v1030_v63, %v1029_v57 }
 0x3a1   :  { %v1024_v43 = vadd.f32 %v1023_v0, %v1022_v58  ;;  %v1038_v2 = vadd.f32 %v1037_v60, %v1036_v59 }
 0x3a2   :  { %v1018_v37 = vrot.slane %v1017_v61, 2  ;;  %v1032_v38 = vrot.slane %v1031_v1, 2 }
 0x3a3   :  { %v1025_v40 = vrot.slane %v1024_v43, 2  ;;  %v1039_v3 = vrot.slane %v1038_v2, 2 }
 0x3a4   :  { %v1019_v4 = vadd.f32 %v1018_v37, %v1017_v61  ;;  %v1033_v5 = vadd.f32 %v1032_v38, %v1031_v1 }
 0x3a5   :  { %v1026_v6 = vadd.f32 %v1025_v40, %v1024_v43  ;;  %v1040_v7 = vadd.f32 %v1039_v3, %v1038_v2 }
 0x3a6   :  { %v1020_v8 = vrot.slane %v1019_v4, 1  ;;  %v1034_v9 = vrot.slane %v1033_v5, 1 }
 0x3a7   :  { %v1027_v10 = vrot.slane %v1026_v6, 1  ;;  %v1041_v11 = vrot.slane %v1040_v7, 1 }
 0x3a8   :  { %v1021_v12 = vadd.f32 %v1020_v8, %v1019_v4  ;;  %v1035_v13 = vadd.f32 %v1034_v9, %v1033_v5 }
 0x3a9   :  { %v1028_v14 = vadd.f32 %v1027_v10, %v1026_v6  ;;  %v1042_v15 = vadd.f32 %v1041_v11, %v1040_v7 }
 0x3aa   :  { %v4820_v16 = vmul.f32 0.5, %v1021_v12  ;;  %v4822_v17 = vmul.f32 0.5, %v1035_v13 }
 0x3ab   :  { %v4824_v18 = vmul.f32 0.5, %v1028_v14  ;;  %v4826_v19 = vmul.f32 0.5, %v1042_v15 }
 0x3ac   :  { %v1047_v20 = vsub.f32 %v4788_v30, %v4820_v16  ;;  %v1051_v21 = vsub.f32 %v4796_v41, %v4820_v16  ;;  %v1049_v25 = vsub.f32 %v4790_v31, %v4822_v17  ;;  %v1053_v29 = vsub.f32 %v4798_v42, %v4822_v17 }
 0x3ad   :  { %v1048_v44 = vsub.f32 %v4792_v33, %v4824_v18  ;;  %v1052_v45 = vsub.f32 %v4808_v50, %v4824_v18  ;;  %v1050_v48 = vsub.f32 %v4794_v35, %v4826_v19  ;;  %v1054_v49 = vsub.f32 %v4810_v51, %v4826_v19 }
 0x3ae   :  { %v1055_v52 = vmul.f32 %v1047_v20, %v4721_v36  ;;  %v1059_v53 = vmul.f32 %v1051_v21, %v4727_v39  ;;  %v1057_v54 = vmul.f32 %v1049_v25, %v4721_v36  ;;  %v1061_v55 = vmul.f32 %v1053_v29, %v4727_v39 }
 0x3af   :  { %v1056_v56 = vmul.f32 %v1048_v44, %v4721_v36  ;;  %v1060_v57 = vmul.f32 %v1052_v45, %v4727_v39  ;;  %v1058_v58 = vmul.f32 %v1050_v48, %v4721_v36  ;;  %v1062_v59 = vmul.f32 %v1054_v49, %v4727_v39 }
 0x3b0   :  { %v1063_v62 = vmul.f32 %v1055_v52, %v1055_v52  ;;  %v1067_v63 = vmul.f32 %v1059_v53, %v1059_v53  ;;  %v1065_v0 = vmul.f32 %v1057_v54, %v1057_v54  ;;  %v1069_v60 = vmul.f32 %v1061_v55, %v1061_v55 }
 0x3b1   :  { %v1064_v61 = vmul.f32 %v1056_v56, %v1056_v56  ;;  %v1068_v1 = vmul.f32 %v1060_v57, %v1060_v57  ;;  %v1066_v43 = vmul.f32 %v1058_v58, %v1058_v58  ;;  %v1070_v2 = vmul.f32 %v1062_v59, %v1062_v59 }
 0x3b2   :  { %v1071_v37 = vadd.f32 %v1067_v63, %v1063_v62  ;;  %v1085_v38 = vadd.f32 %v1069_v60, %v1065_v0 }
 0x3b3   :  { %v1078_v40 = vadd.f32 %v1068_v1, %v1064_v61  ;;  %v1092_v3 = vadd.f32 %v1070_v2, %v1066_v43 }
 0x3b4   :  { %v1072_v4 = vrot.slane %v1071_v37, 4  ;;  %v1086_v5 = vrot.slane %v1085_v38, 4 }
 0x3b5   :  { %v1079_v6 = vrot.slane %v1078_v40, 4  ;;  %v1093_v7 = vrot.slane %v1092_v3, 4 }
 0x3b6   :  { %v1073_v8 = vadd.f32 %v1072_v4, %v1071_v37  ;;  %v1087_v9 = vadd.f32 %v1086_v5, %v1085_v38  ;;  %v1005_v5 = vld [vmem:[#allocation10] sm:$0xf] }
 0x3b7   :  { %v1080_v10 = vadd.f32 %v1079_v6, %v1078_v40  ;;  %v1094_v11 = vadd.f32 %v1093_v7, %v1092_v3  ;;  %v4856_v7 = vsub.s32 2, %v4749_v32 }
 0x3b8   :  { %v1074_v12 = vrot.slane %v1073_v8, 2  ;;  %v1088_v13 = vrot.slane %v1087_v9, 2 }
 0x3b9   :  { %v1081_v14 = vrot.slane %v1080_v10, 2  ;;  %v1095_v15 = vrot.slane %v1094_v11, 2 }
 0x3ba   :  { %v1075_v20 = vadd.f32 %v1074_v12, %v1073_v8  ;;  %v1089_v21 = vadd.f32 %v1088_v13, %v1087_v9  ;;  %v4859_v8 = vsub.s32 3, %v4749_v32 }
 0x3bb   :  { %v1082_v25 = vadd.f32 %v1081_v14, %v1080_v10  ;;  %v1096_v29 = vadd.f32 %v1095_v15, %v1094_v11 }
 0x3bc   :  { %v1076_v44 = vrot.slane %v1075_v20, 1  ;;  %v1090_v45 = vrot.slane %v1089_v21, 1 }
 0x3bd   :  { %v1083_v48 = vrot.slane %v1082_v25, 1  ;;  %v1097_v49 = vrot.slane %v1096_v29, 1 }
 0x3be   :  { %v1077_v52 = vadd.f32 %v1076_v44, %v1075_v20  ;;  %v1091_v53 = vadd.f32 %v1090_v45, %v1089_v21 }
 0x3bf   :  { %v1084_v54 = vadd.f32 %v1083_v48, %v1082_v25  ;;  %v1098_v55 = vadd.f32 %v1097_v49, %v1096_v29 }
 0x3c0   :  { %v1099_v56 = vmul.f32 0.5, %v1077_v52  ;;  %v1101_v57 = vmul.f32 0.5, %v1091_v53 }
 0x3c1   :  { %v1100_v58 = vmul.f32 0.5, %v1084_v54  ;;  %v1102_v59 = vmul.f32 0.5, %v1098_v55 }
 0x3c2   :  { %v1103_v62 = vadd.f32 1e-05, %v1099_v56  ;;  %v1105_v63 = vadd.f32 1e-05, %v1101_v57 }
 0x3c3   :  { %v1104_v0 = vadd.f32 1e-05, %v1100_v58  ;;  %v1106_v60 = vadd.f32 1e-05, %v1102_v59 }
 0x3c4   :  { %4238 = vrsqrt.f32 %v1103_v62 }
 0x3c5   :  { %4240 = vrsqrt.f32 %v1105_v63 }
 0x3c6   :  { %4242 = vrsqrt.f32 %v1104_v0 }
 0x3c7   :  { %4244 = vrsqrt.f32 %v1106_v60 }
 0x3ce   :  { %v4239_v61 = vpop.eup %4238 }
 0x3cf   :  { %v4241_v1 = vpop.eup %4240 }
 0x3d0   :  { %v4243_v43 = vpop.eup %4242 }
 0x3d1   :  { %v4245_v2 = vpop.eup %4244  ;;  %v1115_v37 = vcombine.low %v4239_v61, %v4243_v43 }
 0x3d2   :  { %v1116_v38 = vcombine.low %v4241_v1, %v4245_v2 }
 0x3d3   :  { %v1123_v40 = vrot.slane %v1115_v37, %v4752_v34  ;;  %v1397_v37 = vld [vmem:[#allocation13 + $0x440] sm:$0xff] }
 0x3d4   :  { %v1130_v3 = vrot.slane %v1116_v38, %v4752_v34 }
 0x3d6   :  { %v1131_v4 = vcombine.low %v1123_v40, %v1130_v3 }
 0x3d8   :  { %v1138_v6 = vrot.slane %v1131_v4, %v4752_v34  ;;  %v1401_v4 = vld [vmem:[#allocation13 + $0x460] sm:$0xff] }
 0x3da   :  { %v1140_v9 = vmul.f32 %v1138_v6, %v1005_v5  ;;  %v1398_v5 = vld [vmem:[#allocation13 + $0x448] sm:$0xff] }
 0x3db   :  { %v1402_v6 = vld [vmem:[#allocation13 + $0x468] sm:$0xff] }
 0x3dc   :  { %v1145_v10 = vrot.slane %v1140_v9, %v4757_v46  ;;  %v1149_v11 = vrot.slane %v1140_v9, %v4760_v47  ;;  %v1153_v12 = vrot.slane %v1140_v9, %v4856_v7  ;;  %v1157_v13 = vrot.slane %v1140_v9, %v4859_v8 }
 0x3de   :  { %v1162_v14 = vmul.f32 %v1145_v10, %v4820_v16  ;;  %v1163_v15 = vmul.f32 %v1149_v11, %v4824_v18  ;;  %v1164_v20 = vmul.f32 %v1153_v12, %v4822_v17  ;;  %v1165_v21 = vmul.f32 %v1157_v13, %v4826_v19 }
 0x3df   :  { %v1199_v25 = vmul.f32 %v1157_v13, %v4794_v35  ;;  %v1203_v29 = vmul.f32 %v1157_v13, %v4810_v51  ;;  %v1197_v44 = vmul.f32 %v1149_v11, %v4792_v33  ;;  %v1201_v45 = vmul.f32 %v1149_v11, %v4808_v50  ;;  %v1006_v51 = vld [vmem:[#allocation12] sm:$0xf] }
 0x3e0   :  { %v1170_v48 = vcombine.low %v1162_v14, %v1163_v15  ;;  %v1171_v49 = vcombine.low %v1164_v20, %v1165_v21  ;;  %v1196_v52 = vmul.f32 %v1145_v10, %v4788_v30  ;;  %v1200_v16 = vmul.f32 %v1145_v10, %v4796_v41  ;;  %v1405_v14 = vld [vmem:[#allocation13 + $0x480] sm:$0xff] }
 0x3e1   :  { %v1198_v18 = vmul.f32 %v1153_v12, %v4790_v31  ;;  %v1202_v17 = vmul.f32 %v1153_v12, %v4798_v42 }
 0x3e2   :  { %v1178_v19 = vrot.slane %v1170_v48, %v4752_v34  ;;  %v1185_v35 = vrot.slane %v1171_v49, %v4752_v34  ;;  %v1410_v48 = vld [vmem:[#allocation13 + $0x4a8] sm:$0xff] }
 0x3e4   :  { %v1186_v53 = vcombine.low %v1178_v19, %v1185_v35 }
 0x3e6   :  { %v1193_v33 = vrot.slane %v1186_v53, %v4752_v34  ;;  %v1413_v53 = vld [vmem:[#allocation13 + $0x4c0] sm:$0xff] }
 0x3e8   :  { %v1195_v54 = vsub.f32 %v1006_v51, %v1193_v33  ;;  %v1417_v51 = vld [vmem:[#allocation13 + $0x4e0] sm:$0xff] }
 0x3e9   :  { %v1421_v33 = vld [vmem:[#allocation13 + $0x500] sm:$0xff] }
 0x3ea   :  { %v1220_v50 = vrot.slane %v1195_v54, %v4859_v8  ;;  %v1212_v55 = vrot.slane %v1195_v54, %v4760_v47  ;;  %v1208_v30 = vrot.slane %v1195_v54, %v4757_v46  ;;  %v1216_v41 = vrot.slane %v1195_v54, %v4856_v7  ;;  %v1425_v54 = vld [vmem:[#allocation13 + $0x520] sm:$0xff] }
 0x3ec   :  { %v1228_v31 = vadd.f32 %v1220_v50, %v1199_v25  ;;  %v1232_v56 = vadd.f32 %v1220_v50, %v1203_v29  ;;  %v1226_v42 = vadd.f32 %v1212_v55, %v1197_v44  ;;  %v1230_v57 = vadd.f32 %v1212_v55, %v1201_v45  ;;  %v1409_v44 = vld [vmem:[#allocation13 + $0x4a0] sm:$0xff]  ;;  %v1406_v45 = vld [vmem:[#allocation13 + $0x488] sm:$0xff] }
 0x3ed   :  { %v1225_v58 = vadd.f32 %v1208_v30, %v1196_v52  ;;  %v1229_v59 = vadd.f32 %v1208_v30, %v1200_v16  ;;  %v1227_v62 = vadd.f32 %v1216_v41, %v1198_v18  ;;  %v1231_v63 = vadd.f32 %v1216_v41, %v1202_v17  ;;  %v1422_v50 = vld [vmem:[#allocation13 + $0x508] sm:$0xff] }
 0x3ee   :  { %vm1240_vm8 = vcmp.gt.f32.partialorder %v1232_v56, 0.0  ;;  %v1248_v0 = vmul.f32 0.2, %v1232_v56  ;;  %vm1234_vm9 = vcmp.gt.f32.partialorder %v1226_v42, 0.0  ;;  %vm1238_vm10 = vcmp.gt.f32.partialorder %v1230_v57, 0.0  ;;  %v1426_v55 = vld [vmem:[#allocation13 + $0x528] sm:$0xff] }
 0x3ef   :  { %v1242_v60 = vmul.f32 0.2, %v1226_v42  ;;  %v1246_v61 = vmul.f32 0.2, %v1230_v57  ;;  %vm1233_vm11 = vcmp.gt.f32.partialorder %v1225_v58, 0.0  ;;  %vm1237_vm12 = vcmp.gt.f32.partialorder %v1229_v59, 0.0 }
 0x3f0   :  { %v1241_v1 = vmul.f32 0.2, %v1225_v58  ;;  %v1245_v43 = vmul.f32 0.2, %v1229_v59  ;;  %vm1236_vm13 = vcmp.gt.f32.partialorder %v1228_v31, 0.0  ;;  %v1256_v2 = vsel %vm1240_vm8, %v1232_v56, %v1248_v0 }
 0x3f1   :  { %v1250_v38 = vsel %vm1234_vm9, %v1226_v42, %v1242_v60  ;;  %v1254_v40 = vsel %vm1238_vm10, %v1230_v57, %v1246_v61  ;;  %v1244_v3 = vmul.f32 0.2, %v1228_v31  ;;  %vm1235_vm14 = vcmp.gt.f32.partialorder %v1227_v62, 0.0  ;;  %v1429_v42 = vld [vmem:[#allocation13 + $0x540] sm:$0xff] }
 0x3f2   :  { %v4884_v9 = vpack.c.bf16 %v1254_v40, %v1250_v38  ;;  %v1249_v10 = vsel %vm1233_vm11, %v1225_v58, %v1241_v1  ;;  %v1253_v11 = vsel %vm1237_vm12, %v1229_v59, %v1245_v43  ;;  %vm1239_vm15 = vcmp.gt.f32.partialorder %v1231_v63, 0.0  ;;  %v1433_v57 = vld [vmem:[#allocation13 + $0x560] sm:$0xff]  ;;  %v1430_v58 = vld [vmem:[#allocation13 + $0x548] sm:$0xff] }
 0x3f3   :  { %v4886_v12 = vpack.c.bf16 %v1253_v11, %v1249_v10  ;;  %v1252_v13 = vsel %vm1236_vm13, %v1228_v31, %v1244_v3  ;;  %v1243_v15 = vmul.f32 0.2, %v1227_v62  ;;  %v1247_v20 = vmul.f32 0.2, %v1231_v63  ;;  %v1434_v59 = vld [vmem:[#allocation13 + $0x568] sm:$0xff]  ;;  %v1437_v61 = vld [vmem:[#allocation13 + $0x580] sm:$0xff] }
 0x3f4   :  { %2829 = vmatprep.mubr.bf16.mxu0 %v4884_v9  ;;  %2915 = vmatprep.mubr.bf16.mxu1 %v4884_v9  ;;  %v4890_v21 = vpack.c.bf16 %v1256_v2, %v1252_v13  ;;  %v3926_v25 = vcombine.high %v1397_v37, %v1401_v4  ;;  %v3928_v29 = vcombine.high %v1398_v5, %v1402_v6  ;;  %v1441_v1 = vld [vmem:[#allocation13 + $0x5a0] sm:$0xff]  ;;  %v1438_v43 = vld [vmem:[#allocation13 + $0x588] sm:$0xff] }
 0x3f5   :  { %2830 = vmatmul.mubr.bf16.vlgmr.msra.gmra.mrb[8].mxu0 %v4886_v12  ;;  %2916 = vmatmul.mubr.bf16.vlgmr.msra.gmra.mrb[8].mxu1 %v4886_v12  ;;  %v1251_v49 = vsel %vm1235_vm14, %v1227_v62, %v1243_v15  ;;  %v1255_v52 = vsel %vm1239_vm15, %v1231_v63, %v1247_v20  ;;  %v3925_v16 = vcombine.low %v1397_v37, %v1401_v4  ;;  %v1442_v2 = vld [vmem:[#allocation13 + $0x5a8] sm:$0xff]  ;;  %v1445_v4 = vld [vmem:[#allocation13 + $0x5c0] sm:$0xff] }
 0x3f6   :  { %2841 = vmatpush1.bf16.msra.mxu0 %v3917_v27  ;;  %2927 = vmatpush1.bf16.msra.mxu1 %v3919_v28  ;;  %v3927_v18 = vcombine.low %v1398_v5, %v1402_v6  ;;  %v4902_v17 = vpack.c.bf16 %v1255_v52, %v1251_v49  ;;  %v3934_v19 = vcombine.high %v1405_v14, %v1409_v44  ;;  %v1449_v5 = vld [vmem:[#allocation13 + $0x5e0] sm:$0xff]  ;;  %v1446_v6 = vld [vmem:[#allocation13 + $0x5c8] sm:$0xff] }
 0x3f7   :  { %2872 = vmatprep.mubr.bf16.mxu0 %v4890_v21  ;;  %2958 = vmatprep.mubr.bf16.mxu1 %v4890_v21  ;;  %v3936_v35 = vcombine.high %v1406_v45, %v1410_v48  ;;  %v3933_v24 = vcombine.low %v1405_v14, %v1409_v44  ;;  %v3935_v26 = vcombine.low %v1406_v45, %v1410_v48  ;;  %v1450_v10 = vld [vmem:[#allocation13 + $0x5e8] sm:$0xff]  ;;  %v1453_v20 = vld [vmem:[#allocation13 + $0x600] sm:$0xff] }
 0x3f8   :  { %2842 = vmatprep.subr.bf16.mxu0 %v3926_v25  ;;  %2928 = vmatprep.subr.bf16.mxu1 %v3928_v29  ;;  %v3942_v27 = vcombine.high %v1413_v53, %v1417_v51  ;;  %v3944_v28 = vcombine.high %v1414_v22, %v1418_v23  ;;  %v3941_v30 = vcombine.low %v1413_v53, %v1417_v51  ;;  %v1457_v25 = vld [vmem:[#allocation13 + $0x620] sm:$0xff]  ;;  %v1454_v29 = vld [vmem:[#allocation13 + $0x608] sm:$0xff] }
 0x3f9   :  { %v3943_v41 = vcombine.low %v1414_v22, %v1418_v23  ;;  %v3950_v31 = vcombine.high %v1421_v33, %v1425_v54  ;;  %v3952_v56 = vcombine.high %v1422_v50, %v1426_v55  ;;  %v3949_v62 = vcombine.low %v1421_v33, %v1425_v54  ;;  %v1458_v44 = vld [vmem:[#allocation13 + $0x628] sm:$0xff] }
 0x3fa   :  { %2843 = vmatpush1.bf16.msra.mxu0 %v3925_v16  ;;  %2929 = vmatpush1.bf16.msra.mxu1 %v3927_v18  ;;  %v3951_v63 = vcombine.low %v1422_v50, %v1426_v55  ;;  %v3958_v0 = vcombine.high %v1429_v42, %v1433_v57  ;;  %v3960_v60 = vcombine.high %v1430_v58, %v1434_v59  ;;  %v1461_v16 = vld [vmem:[#allocation13 + $0x640] sm:$0xff] }
 0x3fb   :  { %2844 = vmatprep.subr.bf16.mxu0 %v3934_v19  ;;  %2930 = vmatprep.subr.bf16.mxu1 %v3936_v35  ;;  %v3957_v37 = vcombine.low %v1429_v42, %v1433_v57  ;;  %v3959_v38 = vcombine.low %v1430_v58, %v1434_v59  ;;  %v3966_v40 = vcombine.high %v1437_v61, %v1441_v1  ;;  %v1465_v18 = vld [vmem:[#allocation13 + $0x660] sm:$0xff]  ;;  %v1462_v19 = vld [vmem:[#allocation13 + $0x648] sm:$0xff] }
 0x3fc   :  { %v3968_v3 = vcombine.high %v1438_v43, %v1442_v2  ;;  %v3965_v11 = vcombine.low %v1437_v61, %v1441_v1  ;;  %v3967_v13 = vcombine.low %v1438_v43, %v1442_v2  ;;  %v3974_v14 = vcombine.high %v1445_v4, %v1449_v5  ;;  %v1466_v35 = vld [vmem:[#allocation13 + $0x668] sm:$0xff] }
 0x3fd   :  { %v3976_v15 = vcombine.high %v1446_v6, %v1450_v10  ;;  %v3973_v45 = vcombine.low %v1445_v4, %v1449_v5  ;;  %v3975_v48 = vcombine.low %v1446_v6, %v1450_v10  ;;  %v3982_v49 = vcombine.high %v1453_v20, %v1457_v25 }
 0x3fe   :  { %2845 = vmatpush1.bf16.msra.mxu0 %v3933_v24  ;;  %2931 = vmatpush1.bf16.msra.mxu1 %v3935_v26  ;;  %v3984_v52 = vcombine.high %v1454_v29, %v1458_v44  ;;  %v3981_v53 = vcombine.low %v1453_v20, %v1457_v25  ;;  %v3983_v51 = vcombine.low %v1454_v29, %v1458_v44  ;;  %v1469_v24 = vld [vmem:[#allocation13 + $0x680] sm:$0xff] }
 0x3ff   :  { %2846 = vmatprep.subr.bf16.mxu0 %v3942_v27  ;;  %2932 = vmatprep.subr.bf16.mxu1 %v3944_v28  ;;  %v3990_v22 = vcombine.high %v1461_v16, %v1465_v18  ;;  %v3992_v23 = vcombine.high %v1462_v19, %v1466_v35  ;;  %v1473_v26 = vld [vmem:[#allocation13 + $0x6a0] sm:$0xff]  ;;  %v1470_v27 = vld [vmem:[#allocation13 + $0x688] sm:$0xff]  ;;  %v3989_v33 = vcombine.low %v1461_v16, %v1465_v18 }
 0x400   :  { %v1474_v28 = vld [vmem:[#allocation13 + $0x6a8] sm:$0xff]  ;;  %v3991_v54 = vcombine.low %v1462_v19, %v1466_v35  ;;  %v3998_v50 = vcombine.high %v1469_v24, %v1473_v26  ;;  %v3997_v42 = vcombine.low %v1469_v24, %v1473_v26 }
 0x401   :  { %v4000_v55 = vcombine.high %v1470_v27, %v1474_v28  ;;  %v3999_v57 = vcombine.low %v1470_v27, %v1474_v28 }
 0x402   :  { %2847 = vmatpush1.bf16.msra.mxu0 %v3941_v30  ;;  %2933 = vmatpush1.bf16.msra.mxu1 %v3943_v41  ;;  %v1477_v30 = vld [vmem:[#allocation13 + $0x6c0] sm:$0xff] }
 0x403   :  { %2848 = vmatprep.subr.bf16.mxu0 %v3950_v31  ;;  %2934 = vmatprep.subr.bf16.mxu1 %v3952_v56  ;;  %v1481_v41 = vld [vmem:[#allocation13 + $0x6e0] sm:$0xff]  ;;  %v1478_v31 = vld [vmem:[#allocation13 + $0x6c8] sm:$0xff] }
 0x404   :  { %v1482_v56 = vld [vmem:[#allocation13 + $0x6e8] sm:$0xff]  ;;  %v4006_v58 = vcombine.high %v1477_v30, %v1481_v41  ;;  %v4005_v61 = vcombine.low %v1477_v30, %v1481_v41 }
 0x405   :  { %v4008_v59 = vcombine.high %v1478_v31, %v1482_v56  ;;  %v4007_v1 = vcombine.low %v1478_v31, %v1482_v56 }
 0x406   :  { %2849 = vmatpush1.bf16.msra.mxu0 %v3949_v62  ;;  %2935 = vmatpush1.bf16.msra.mxu1 %v3951_v63  ;;  %v1485_v62 = vld [vmem:[#allocation13 + $0x700] sm:$0xff] }
 0x407   :  { %2850 = vmatprep.subr.bf16.mxu0 %v3958_v0  ;;  %2936 = vmatprep.subr.bf16.mxu1 %v3960_v60  ;;  %v1489_v63 = vld [vmem:[#allocation13 + $0x720] sm:$0xff]  ;;  %v1486_v0 = vld [vmem:[#allocation13 + $0x708] sm:$0xff] }
 0x408   :  { %v1490_v60 = vld [vmem:[#allocation13 + $0x728] sm:$0xff]  ;;  %v4014_v43 = vcombine.high %v1485_v62, %v1489_v63  ;;  %v4013_v4 = vcombine.low %v1485_v62, %v1489_v63 }
 0x409   :  { %v4016_v2 = vcombine.high %v1486_v0, %v1490_v60  ;;  %v4015_v5 = vcombine.low %v1486_v0, %v1490_v60 }
 0x40a   :  { %2851 = vmatpush1.bf16.msra.mxu0 %v3957_v37  ;;  %2937 = vmatpush1.bf16.msra.mxu1 %v3959_v38  ;;  %v1493_v37 = vld [vmem:[#allocation13 + $0x740] sm:$0xff] }
 0x40b   :  { %2852 = vmatprep.subr.bf16.mxu0 %v3966_v40  ;;  %2938 = vmatprep.subr.bf16.mxu1 %v3968_v3  ;;  %v1497_v38 = vld [vmem:[#allocation13 + $0x760] sm:$0xff]  ;;  %v1494_v40 = vld [vmem:[#allocation13 + $0x748] sm:$0xff] }
 0x40c   :  { %v1498_v3 = vld [vmem:[#allocation13 + $0x768] sm:$0xff]  ;;  %v4022_v6 = vcombine.high %v1493_v37, %v1497_v38  ;;  %v4021_v20 = vcombine.low %v1493_v37, %v1497_v38 }
 0x40d   :  { %v4024_v10 = vcombine.high %v1494_v40, %v1498_v3  ;;  %v4023_v25 = vcombine.low %v1494_v40, %v1498_v3 }
 0x40e   :  { %2853 = vmatpush1.bf16.msra.mxu0 %v3965_v11  ;;  %2939 = vmatpush1.bf16.msra.mxu1 %v3967_v13  ;;  %v1501_v11 = vld [vmem:[#allocation13 + $0x780] sm:$0xff] }
 0x40f   :  { %2854 = vmatprep.subr.bf16.mxu0 %v3974_v14  ;;  %2940 = vmatprep.subr.bf16.mxu1 %v3976_v15  ;;  %v1505_v13 = vld [vmem:[#allocation13 + $0x7a0] sm:$0xff]  ;;  %v1502_v14 = vld [vmem:[#allocation13 + $0x788] sm:$0xff] }
 0x410   :  { %v1506_v15 = vld [vmem:[#allocation13 + $0x7a8] sm:$0xff]  ;;  %v4030_v29 = vcombine.high %v1501_v11, %v1505_v13  ;;  %v4029_v16 = vcombine.low %v1501_v11, %v1505_v13 }
 0x411   :  { %v4032_v44 = vcombine.high %v1502_v14, %v1506_v15  ;;  %v4031_v18 = vcombine.low %v1502_v14, %v1506_v15  ;;  %v1303_v15 = vld [vmem:[#allocation13 + $0x150] sm:$0xff] }
 0x412   :  { %2855 = vmatpush1.bf16.msra.mxu0 %v3973_v45  ;;  %2941 = vmatpush1.bf16.msra.mxu1 %v3975_v48  ;;  %v1509_v45 = vld [vmem:[#allocation13 + $0x7c0] sm:$0xff] }
 0x413   :  { %2856 = vmatprep.subr.bf16.mxu0 %v3982_v49  ;;  %2942 = vmatprep.subr.bf16.mxu1 %v3984_v52  ;;  %v1513_v48 = vld [vmem:[#allocation13 + $0x7e0] sm:$0xff]  ;;  %v1510_v49 = vld [vmem:[#allocation13 + $0x7c8] sm:$0xff] }
 0x414   :  { %v1514_v52 = vld [vmem:[#allocation13 + $0x7e8] sm:$0xff]  ;;  %v4038_v19 = vcombine.high %v1509_v45, %v1513_v48  ;;  %v4037_v24 = vcombine.low %v1509_v45, %v1513_v48 }
 0x415   :  { %v4040_v35 = vcombine.high %v1510_v49, %v1514_v52  ;;  %v4039_v26 = vcombine.low %v1510_v49, %v1514_v52  ;;  %v1311_v52 = vld [vmem:[#allocation13 + $0x190] sm:$0xff] }
 0x416   :  { %2857 = vmatpush1.bf16.msra.mxu0 %v3981_v53  ;;  %2943 = vmatpush1.bf16.msra.mxu1 %v3983_v51  ;;  %v1263_v53 = vld [vmem:[#allocation13 + $0x10] sm:$0xff] }
 0x417   :  { %2858 = vmatprep.subr.bf16.mxu0 %v3990_v22  ;;  %2944 = vmatprep.subr.bf16.mxu1 %v3992_v23  ;;  %v1267_v51 = vld [vmem:[#allocation13 + $0x30] sm:$0xff]  ;;  %v1264_v22 = vld [vmem:[#allocation13 + $0x18] sm:$0xff] }
 0x418   :  { %v1268_v23 = vld [vmem:[#allocation13 + $0x38] sm:$0xff]  ;;  %v3794_v27 = vcombine.high %v1263_v53, %v1267_v51  ;;  %v3793_v30 = vcombine.low %v1263_v53, %v1267_v51 }
 0x419   :  { %v3796_v28 = vcombine.high %v1264_v22, %v1268_v23  ;;  %v3795_v41 = vcombine.low %v1264_v22, %v1268_v23  ;;  %v1319_v23 = vld [vmem:[#allocation13 + $0x1d0] sm:$0xff] }
 0x41a   :  { %2859 = vmatpush1.bf16.msra.mxu0 %v3989_v33  ;;  %2945 = vmatpush1.bf16.msra.mxu1 %v3991_v54  ;;  %v1271_v33 = vld [vmem:[#allocation13 + $0x50] sm:$0xff] }
 0x41b   :  { %2860 = vmatprep.subr.bf16.mxu0 %v3998_v50  ;;  %2946 = vmatprep.subr.bf16.mxu1 %v4000_v55  ;;  %v1275_v54 = vld [vmem:[#allocation13 + $0x70] sm:$0xff]  ;;  %v1272_v50 = vld [vmem:[#allocation13 + $0x58] sm:$0xff] }
 0x41c   :  { %v1276_v55 = vld [vmem:[#allocation13 + $0x78] sm:$0xff]  ;;  %v3802_v31 = vcombine.high %v1271_v33, %v1275_v54  ;;  %v3801_v62 = vcombine.low %v1271_v33, %v1275_v54 }
 0x41d   :  { %v3804_v56 = vcombine.high %v1272_v50, %v1276_v55  ;;  %v3803_v63 = vcombine.low %v1272_v50, %v1276_v55  ;;  %v1327_v55 = vld [vmem:[#allocation13 + $0x210] sm:$0xff] }
 0x41e   :  { %2861 = vmatpush1.bf16.msra.mxu0 %v3997_v42  ;;  %2947 = vmatpush1.bf16.msra.mxu1 %v3999_v57  ;;  %v1279_v42 = vld [vmem:[#allocation13 + $0x90] sm:$0xff] }
 0x41f   :  { %2862 = vmatprep.subr.bf16.mxu0 %v4006_v58  ;;  %2948 = vmatprep.subr.bf16.mxu1 %v4008_v59  ;;  %v1283_v57 = vld [vmem:[#allocation13 + $0xb0] sm:$0xff]  ;;  %v1280_v58 = vld [vmem:[#allocation13 + $0x98] sm:$0xff] }
 0x420   :  { %v1284_v59 = vld [vmem:[#allocation13 + $0xb8] sm:$0xff]  ;;  %v3810_v0 = vcombine.high %v1279_v42, %v1283_v57  ;;  %v3809_v37 = vcombine.low %v1279_v42, %v1283_v57 }
 0x421   :  { %v3812_v60 = vcombine.high %v1280_v58, %v1284_v59  ;;  %v3811_v38 = vcombine.low %v1280_v58, %v1284_v59  ;;  %v1335_v59 = vld [vmem:[#allocation13 + $0x250] sm:$0xff] }
 0x422   :  { %2863 = vmatpush1.bf16.msra.mxu0 %v4005_v61  ;;  %2949 = vmatpush1.bf16.msra.mxu1 %v4007_v1  ;;  %v1287_v61 = vld [vmem:[#allocation13 + $0xd0] sm:$0xff] }
 0x423   :  { %2864 = vmatprep.subr.bf16.mxu0 %v4014_v43  ;;  %2950 = vmatprep.subr.bf16.mxu1 %v4016_v2  ;;  %v1291_v1 = vld [vmem:[#allocation13 + $0xf0] sm:$0xff]  ;;  %v1288_v43 = vld [vmem:[#allocation13 + $0xd8] sm:$0xff] }
 0x424   :  { %v1292_v2 = vld [vmem:[#allocation13 + $0xf8] sm:$0xff]  ;;  %v3818_v40 = vcombine.high %v1287_v61, %v1291_v1 }
 0x425   :  { %v3820_v3 = vcombine.high %v1288_v43, %v1292_v2  ;;  %v3819_v11 = vcombine.low %v1288_v43, %v1292_v2  ;;  %v1343_v2 = vld [vmem:[#allocation13 + $0x290] sm:$0xff] }
 0x426   :  { %2865 = vmatpush1.bf16.msra.mxu0 %v4013_v4  ;;  %2951 = vmatpush1.bf16.msra.mxu1 %v4015_v5  ;;  %v1295_v4 = vld [vmem:[#allocation13 + $0x110] sm:$0xff] }
 0x427   :  { %2866 = vmatprep.subr.bf16.mxu0 %v4022_v6  ;;  %2952 = vmatprep.subr.bf16.mxu1 %v4024_v10  ;;  %v1299_v5 = vld [vmem:[#allocation13 + $0x130] sm:$0xff]  ;;  %v1300_v6 = vld [vmem:[#allocation13 + $0x138] sm:$0xff]  ;;  %v3817_v10 = vcombine.low %v1287_v61, %v1291_v1 }
 0x428   :  { %v3826_v13 = vcombine.high %v1295_v4, %v1299_v5 }
 0x42a   :  { %2867 = vmatpush1.bf16.msra.mxu0 %v4021_v20  ;;  %2953 = vmatpush1.bf16.msra.mxu1 %v4023_v25  ;;  %v1307_v20 = vld [vmem:[#allocation13 + $0x170] sm:$0xff]  ;;  %v1304_v25 = vld [vmem:[#allocation13 + $0x158] sm:$0xff] }
 0x42b   :  { %2868 = vmatprep.subr.bf16.mxu0 %v4030_v29  ;;  %2954 = vmatprep.subr.bf16.mxu1 %v4032_v44  ;;  %v1308_v29 = vld [vmem:[#allocation13 + $0x178] sm:$0xff]  ;;  %v3825_v44 = vcombine.low %v1295_v4, %v1299_v5  ;;  %v3834_v48 = vcombine.high %v1303_v15, %v1307_v20 }
 0x42c   :  { %v3836_v49 = vcombine.high %v1304_v25, %v1308_v29  ;;  %v3835_v53 = vcombine.low %v1304_v25, %v1308_v29  ;;  %v1359_v29 = vld [vmem:[#allocation13 + $0x310] sm:$0xff] }
 0x42e   :  { %2869 = vmatpush1.bf16.msra.mxu0 %v4029_v16  ;;  %2955 = vmatpush1.bf16.msra.mxu1 %v4031_v18  ;;  %v1315_v16 = vld [vmem:[#allocation13 + $0x1b0] sm:$0xff]  ;;  %v1312_v18 = vld [vmem:[#allocation13 + $0x198] sm:$0xff] }
 0x42f   :  { %2870 = vmatprep.subr.bf16.mxu0 %v4038_v19  ;;  %2956 = vmatprep.subr.bf16.mxu1 %v4040_v35  ;;  %v1316_v19 = vld [vmem:[#allocation13 + $0x1b8] sm:$0xff]  ;;  %v3833_v35 = vcombine.low %v1303_v15, %v1307_v20  ;;  %v3842_v51 = vcombine.high %v1311_v52, %v1315_v16 }
 0x430   :  { %v3844_v22 = vcombine.high %v1312_v18, %v1316_v19  ;;  %v3843_v33 = vcombine.low %v1312_v18, %v1316_v19  ;;  %v1367_v19 = vld [vmem:[#allocation13 + $0x350] sm:$0xff] }
 0x432   :  { %2871 = vmatpush1.bf16.msra.mxu0 %v4037_v24  ;;  %2957 = vmatpush1.bf16.msra.mxu1 %v4039_v26  ;;  %v1323_v24 = vld [vmem:[#allocation13 + $0x1f0] sm:$0xff]  ;;  %v1320_v26 = vld [vmem:[#allocation13 + $0x1d8] sm:$0xff] }
 0x433   :  { %2969 = vmatprep.subr.bf16.mxu0 %v3794_v27  ;;  %3055 = vmatprep.subr.bf16.mxu1 %v3796_v28  ;;  %v1324_v27 = vld [vmem:[#allocation13 + $0x1f8] sm:$0xff]  ;;  %v3841_v28 = vcombine.low %v1311_v52, %v1315_v16  ;;  %v3850_v54 = vcombine.high %v1319_v23, %v1323_v24 }
 0x434   :  { %v3852_v50 = vcombine.high %v1320_v26, %v1324_v27  ;;  %v3851_v42 = vcombine.low %v1320_v26, %v1324_v27  ;;  %v1375_v27 = vld [vmem:[#allocation13 + $0x390] sm:$0xff] }
 0x435   :  { %2873 = vmatmul.mubr.bf16.vlgmr.msra.gmra.mrb[8].mxu0 %v4902_v17  ;;  %2959 = vmatmul.mubr.bf16.vlgmr.msra.gmra.mrb[8].mxu1 %v4902_v17 }
 0x436   :  { %2970 = vmatpush1.bf16.msra.mxu0 %v3793_v30  ;;  %3001 = vmatprep.mubr.bf16.mxu0 %v4884_v9  ;;  %v1331_v30 = vld [vmem:[#allocation13 + $0x230] sm:$0xff] }
 0x437   :  { %3056 = vmatpush1.bf16.msra.mxu1 %v3795_v41  ;;  %3087 = vmatprep.mubr.bf16.mxu1 %v4884_v9  ;;  %v1296_v9 = vld [vmem:[#allocation13 + $0x118] sm:$0xff]  ;;  %v3858_v57 = vcombine.high %v1327_v55, %v1331_v30 }
 0x438   :  { %2971 = vmatprep.subr.bf16.mxu0 %v3802_v31  ;;  %3057 = vmatprep.subr.bf16.mxu1 %v3804_v56  ;;  %v3828_v14 = vcombine.high %v1296_v9, %v1300_v6  ;;  %v3827_v45 = vcombine.low %v1296_v9, %v1300_v6  ;;  %v1328_v41 = vld [vmem:[#allocation13 + $0x218] sm:$0xff]  ;;  %v3849_v56 = vcombine.low %v1319_v23, %v1323_v24  ;;  %v1351_v6 = vld [vmem:[#allocation13 + $0x2d0] sm:$0xff] }
 0x439   :  { %v1332_v31 = vld [vmem:[#allocation13 + $0x238] sm:$0xff] }
 0x43a   :  { %2972 = vmatpush1.bf16.msra.mxu0 %v3801_v62  ;;  %v3860_v58 = vcombine.high %v1328_v41, %v1332_v31  ;;  %v1339_v62 = vld [vmem:[#allocation13 + $0x270] sm:$0xff]  ;;  %v3859_v61 = vcombine.low %v1328_v41, %v1332_v31 }
 0x43b   :  { %3058 = vmatpush1.bf16.msra.mxu1 %v3803_v63  ;;  %2973 = vmatprep.subr.bf16.mxu0 %v3810_v0  ;;  %v1336_v63 = vld [vmem:[#allocation13 + $0x258] sm:$0xff]  ;;  %v3866_v1 = vcombine.high %v1335_v59, %v1339_v62  ;;  %v1383_v31 = vld [vmem:[#allocation13 + $0x3d0] sm:$0xff] }
 0x43c   :  { %3059 = vmatprep.subr.bf16.mxu1 %v3812_v60  ;;  %v1340_v0 = vld [vmem:[#allocation13 + $0x278] sm:$0xff]  ;;  %v3857_v60 = vcombine.low %v1327_v55, %v1331_v30 }
 0x43d   :  { %v3868_v43 = vcombine.high %v1336_v63, %v1340_v0  ;;  %v3867_v4 = vcombine.low %v1336_v63, %v1340_v0  ;;  %v1391_v0 = vld [vmem:[#allocation13 + $0x410] sm:$0xff] }
 0x43e   :  { %2974 = vmatpush1.bf16.msra.mxu0 %v3809_v37  ;;  %v1347_v37 = vld [vmem:[#allocation13 + $0x2b0] sm:$0xff] }
 0x43f   :  { %3060 = vmatpush1.bf16.msra.mxu1 %v3811_v38  ;;  %2975 = vmatprep.subr.bf16.mxu0 %v3818_v40  ;;  %v1344_v38 = vld [vmem:[#allocation13 + $0x298] sm:$0xff]  ;;  %v3874_v5 = vcombine.high %v1343_v2, %v1347_v37 }
 0x440   :  { %3061 = vmatprep.subr.bf16.mxu1 %v3820_v3  ;;  %v1348_v40 = vld [vmem:[#allocation13 + $0x2b8] sm:$0xff]  ;;  %v3865_v3 = vcombine.low %v1335_v59, %v1339_v62 }
 0x441   :  { %v3876_v9 = vcombine.high %v1344_v38, %v1348_v40  ;;  %v3875_v15 = vcombine.low %v1344_v38, %v1348_v40  ;;  %v1399_v40 = vld [vmem:[#allocation13 + $0x450] sm:$0xff] }
 0x442   :  { %2976 = vmatpush1.bf16.msra.mxu0 %v3817_v10  ;;  %v1355_v10 = vld [vmem:[#allocation13 + $0x2f0] sm:$0xff] }
 0x443   :  { %3062 = vmatpush1.bf16.msra.mxu1 %v3819_v11  ;;  %2977 = vmatprep.subr.bf16.mxu0 %v3826_v13  ;;  %v1352_v11 = vld [vmem:[#allocation13 + $0x2d8] sm:$0xff]  ;;  %v3882_v20 = vcombine.high %v1351_v6, %v1355_v10 }
 0x444   :  { %3063 = vmatprep.subr.bf16.mxu1 %v3828_v14  ;;  %v1356_v13 = vld [vmem:[#allocation13 + $0x2f8] sm:$0xff]  ;;  %v3873_v14 = vcombine.low %v1343_v2, %v1347_v37 }
 0x445   :  { %v3884_v25 = vcombine.high %v1352_v11, %v1356_v13  ;;  %v3883_v52 = vcombine.low %v1352_v11, %v1356_v13  ;;  %v1407_v11 = vld [vmem:[#allocation13 + $0x490] sm:$0xff] }
 0x446   :  { %2978 = vmatpush1.bf16.msra.mxu0 %v3825_v44  ;;  %v1363_v44 = vld [vmem:[#allocation13 + $0x330] sm:$0xff] }
 0x447   :  { %3064 = vmatpush1.bf16.msra.mxu1 %v3827_v45  ;;  %2979 = vmatprep.subr.bf16.mxu0 %v3834_v48  ;;  %v1360_v45 = vld [vmem:[#allocation13 + $0x318] sm:$0xff]  ;;  %v3890_v16 = vcombine.high %v1359_v29, %v1363_v44  ;;  %v1411_v13 = vld [vmem:[#allocation13 + $0x4b0] sm:$0xff] }
 0x448   :  { %3065 = vmatprep.subr.bf16.mxu1 %v3836_v49  ;;  %v1364_v48 = vld [vmem:[#allocation13 + $0x338] sm:$0xff]  ;;  %v3881_v49 = vcombine.low %v1351_v6, %v1355_v10 }
 0x449   :  { %v3892_v18 = vcombine.high %v1360_v45, %v1364_v48  ;;  %v3891_v23 = vcombine.low %v1360_v45, %v1364_v48  ;;  %v1415_v48 = vld [vmem:[#allocation13 + $0x4d0] sm:$0xff] }
 0x44a   :  { %2980 = vmatpush1.bf16.msra.mxu0 %v3833_v35  ;;  %v1371_v35 = vld [vmem:[#allocation13 + $0x370] sm:$0xff] }
 0x44b   :  { %3066 = vmatpush1.bf16.msra.mxu1 %v3835_v53  ;;  %2981 = vmatprep.subr.bf16.mxu0 %v3842_v51  ;;  %v1368_v53 = vld [vmem:[#allocation13 + $0x358] sm:$0xff]  ;;  %v3898_v24 = vcombine.high %v1367_v19, %v1371_v35 }
 0x44c   :  { %3067 = vmatprep.subr.bf16.mxu1 %v3844_v22  ;;  %v1372_v51 = vld [vmem:[#allocation13 + $0x378] sm:$0xff]  ;;  %v3889_v22 = vcombine.low %v1359_v29, %v1363_v44  ;;  %v3938_v44 = vcombine.high %v1407_v11, %v1411_v13 }
 0x44d   :  { %v3900_v26 = vcombine.high %v1368_v53, %v1372_v51  ;;  %v3899_v55 = vcombine.low %v1368_v53, %v1372_v51  ;;  %v1423_v53 = vld [vmem:[#allocation13 + $0x510] sm:$0xff] }
 0x44e   :  { %2982 = vmatpush1.bf16.msra.mxu0 %v3841_v28  ;;  %v1379_v28 = vld [vmem:[#allocation13 + $0x3b0] sm:$0xff] }
 0x44f   :  { %3068 = vmatpush1.bf16.msra.mxu1 %v3843_v33  ;;  %2983 = vmatprep.subr.bf16.mxu0 %v3850_v54  ;;  %v1376_v33 = vld [vmem:[#allocation13 + $0x398] sm:$0xff]  ;;  %v3906_v30 = vcombine.high %v1375_v27, %v1379_v28  ;;  %v1427_v51 = vld [vmem:[#allocation13 + $0x530] sm:$0xff] }
 0x450   :  { %3069 = vmatprep.subr.bf16.mxu1 %v3852_v50  ;;  %v1380_v54 = vld [vmem:[#allocation13 + $0x3b8] sm:$0xff]  ;;  %v3897_v50 = vcombine.low %v1367_v19, %v1371_v35 }
 0x451   :  { %v3908_v41 = vcombine.high %v1376_v33, %v1380_v54  ;;  %v3907_v59 = vcombine.low %v1376_v33, %v1380_v54  ;;  %v1435_v33 = vld [vmem:[#allocation13 + $0x570] sm:$0xff]  ;;  %v1432_v54 = vld [vmem:[#allocation13 + $0x558] sm:$0xff] }
 0x452   :  { %2984 = vmatpush1.bf16.msra.mxu0 %v3849_v56  ;;  %v1387_v56 = vld [vmem:[#allocation13 + $0x3f0] sm:$0xff] }
 0x453   :  { %3070 = vmatpush1.bf16.msra.mxu1 %v3851_v42  ;;  %2985 = vmatprep.subr.bf16.mxu0 %v3858_v57  ;;  %v1384_v42 = vld [vmem:[#allocation13 + $0x3d8] sm:$0xff]  ;;  %v3914_v62 = vcombine.high %v1383_v31, %v1387_v56 }
 0x454   :  { %3071 = vmatprep.subr.bf16.mxu1 %v3860_v58  ;;  %v1388_v57 = vld [vmem:[#allocation13 + $0x3f8] sm:$0xff]  ;;  %v3905_v58 = vcombine.low %v1375_v27, %v1379_v28  ;;  %v1431_v28 = vld [vmem:[#allocation13 + $0x550] sm:$0xff] }
 0x455   :  { %v3916_v63 = vcombine.high %v1384_v42, %v1388_v57  ;;  %v3915_v2 = vcombine.low %v1384_v42, %v1388_v57  ;;  %v1443_v42 = vld [vmem:[#allocation13 + $0x5b0] sm:$0xff]  ;;  %v1440_v57 = vld [vmem:[#allocation13 + $0x598] sm:$0xff] }
 0x456   :  { %2986 = vmatpush1.bf16.msra.mxu0 %v3857_v60  ;;  %v1395_v60 = vld [vmem:[#allocation13 + $0x430] sm:$0xff] }
 0x457   :  { %3072 = vmatpush1.bf16.msra.mxu1 %v3859_v61  ;;  %2987 = vmatprep.subr.bf16.mxu0 %v3866_v1  ;;  %v1392_v61 = vld [vmem:[#allocation13 + $0x418] sm:$0xff]  ;;  %v3922_v37 = vcombine.high %v1391_v0, %v1395_v60 }
 0x458   :  { %3073 = vmatprep.subr.bf16.mxu1 %v3868_v43  ;;  %v1396_v1 = vld [vmem:[#allocation13 + $0x438] sm:$0xff]  ;;  %v3913_v43 = vcombine.low %v1383_v31, %v1387_v56  ;;  %v1439_v56 = vld [vmem:[#allocation13 + $0x590] sm:$0xff] }
 0x459   :  { %v3924_v38 = vcombine.high %v1392_v61, %v1396_v1  ;;  %v3923_v6 = vcombine.low %v1392_v61, %v1396_v1  ;;  %v1451_v61 = vld [vmem:[#allocation13 + $0x5f0] sm:$0xff]  ;;  %v1448_v1 = vld [vmem:[#allocation13 + $0x5d8] sm:$0xff] }
 0x45a   :  { %2988 = vmatpush1.bf16.msra.mxu0 %v3865_v3  ;;  %v1403_v3 = vld [vmem:[#allocation13 + $0x470] sm:$0xff] }
 0x45b   :  { %3074 = vmatpush1.bf16.msra.mxu1 %v3867_v4  ;;  %2989 = vmatprep.subr.bf16.mxu0 %v3874_v5  ;;  %v3921_v4 = vcombine.low %v1391_v0, %v1395_v60  ;;  %v1400_v5 = vld [vmem:[#allocation13 + $0x458] sm:$0xff]  ;;  %v3930_v10 = vcombine.high %v1399_v40, %v1403_v3  ;;  %v1447_v60 = vld [vmem:[#allocation13 + $0x5d0] sm:$0xff] }
 0x45c   :  { %3075 = vmatprep.subr.bf16.mxu1 %v3876_v9  ;;  %v1404_v9 = vld [vmem:[#allocation13 + $0x478] sm:$0xff] }
 0x45d   :  { %v3931_v29 = vcombine.low %v1400_v5, %v1404_v9 }
 0x45e   :  { %2990 = vmatpush1.bf16.msra.mxu0 %v3873_v14  ;;  %v3932_v14 = vcombine.high %v1400_v5, %v1404_v9  ;;  %v1456_v5 = vld [vmem:[#allocation13 + $0x618] sm:$0xff] }
 0x45f   :  { %3076 = vmatpush1.bf16.msra.mxu1 %v3875_v15  ;;  %2991 = vmatprep.subr.bf16.mxu0 %v3882_v20  ;;  %v1408_v15 = vld [vmem:[#allocation13 + $0x498] sm:$0xff] }
 0x460   :  { %3077 = vmatprep.subr.bf16.mxu1 %v3884_v25  ;;  %v1412_v20 = vld [vmem:[#allocation13 + $0x4b8] sm:$0xff]  ;;  %v3929_v25 = vcombine.low %v1399_v40, %v1403_v3  ;;  %v1455_v3 = vld [vmem:[#allocation13 + $0x610] sm:$0xff] }
 0x461   :  { %v3940_v45 = vcombine.high %v1408_v15, %v1412_v20  ;;  %v1460_v9 = vld [vmem:[#allocation13 + $0x638] sm:$0xff] }
 0x462   :  { %2992 = vmatpush1.bf16.msra.mxu0 %v3881_v49  ;;  %v1419_v49 = vld [vmem:[#allocation13 + $0x4f0] sm:$0xff] }
 0x463   :  { %3078 = vmatpush1.bf16.msra.mxu1 %v3883_v52  ;;  %2993 = vmatprep.subr.bf16.mxu0 %v3890_v16  ;;  %v1416_v52 = vld [vmem:[#allocation13 + $0x4d8] sm:$0xff]  ;;  %v3946_v19 = vcombine.high %v1415_v48, %v1419_v49 }
 0x464   :  { %3079 = vmatprep.subr.bf16.mxu1 %v3892_v18  ;;  %v1420_v16 = vld [vmem:[#allocation13 + $0x4f8] sm:$0xff]  ;;  %v3937_v18 = vcombine.low %v1407_v11, %v1411_v13  ;;  %v3988_v13 = vcombine.high %v1456_v5, %v1460_v9 }
 0x465   :  { %v3948_v35 = vcombine.high %v1416_v52, %v1420_v16 }
 0x466   :  { %2994 = vmatpush1.bf16.msra.mxu0 %v3889_v22  ;;  %v1424_v22 = vld [vmem:[#allocation13 + $0x518] sm:$0xff] }
 0x467   :  { %3080 = vmatpush1.bf16.msra.mxu1 %v3891_v23  ;;  %2995 = vmatprep.subr.bf16.mxu0 %v3898_v24  ;;  %v1428_v23 = vld [vmem:[#allocation13 + $0x538] sm:$0xff]  ;;  %v3947_v24 = vcombine.low %v1416_v52, %v1420_v16  ;;  %v1475_v52 = vld [vmem:[#allocation13 + $0x6b0] sm:$0xff] }
 0x468   :  { %3081 = vmatprep.subr.bf16.mxu1 %v3900_v26  ;;  %v3954_v26 = vcombine.high %v1423_v53, %v1427_v51  ;;  %v3956_v27 = vcombine.high %v1424_v22, %v1428_v23  ;;  %v1472_v16 = vld [vmem:[#allocation13 + $0x698] sm:$0xff] }
 0x46a   :  { %2996 = vmatpush1.bf16.msra.mxu0 %v3897_v50  ;;  %v1436_v50 = vld [vmem:[#allocation13 + $0x578] sm:$0xff] }
 0x46b   :  { %3082 = vmatpush1.bf16.msra.mxu1 %v3899_v55  ;;  %2997 = vmatprep.subr.bf16.mxu0 %v3906_v30  ;;  %v3953_v55 = vcombine.low %v1423_v53, %v1427_v51  ;;  %v3955_v30 = vcombine.low %v1424_v22, %v1428_v23  ;;  %v3964_v31 = vcombine.high %v1432_v54, %v1436_v50  ;;  %v1479_v51 = vld [vmem:[#allocation13 + $0x6d0] sm:$0xff]  ;;  %v1480_v23 = vld [vmem:[#allocation13 + $0x6d8] sm:$0xff] }
 0x46c   :  { %3083 = vmatprep.subr.bf16.mxu1 %v3908_v41  ;;  %v3962_v41 = vcombine.high %v1431_v28, %v1435_v33  ;;  %v1483_v22 = vld [vmem:[#allocation13 + $0x6f0] sm:$0xff] }
 0x46e   :  { %2998 = vmatpush1.bf16.msra.mxu0 %v3905_v58  ;;  %v1444_v58 = vld [vmem:[#allocation13 + $0x5b8] sm:$0xff] }
 0x46f   :  { %3084 = vmatpush1.bf16.msra.mxu1 %v3907_v59  ;;  %2999 = vmatprep.subr.bf16.mxu0 %v3914_v62  ;;  %v3961_v59 = vcombine.low %v1431_v28, %v1435_v33  ;;  %v3963_v62 = vcombine.low %v1432_v54, %v1436_v50  ;;  %v3972_v0 = vcombine.high %v1440_v57, %v1444_v58  ;;  %v1487_v33 = vld [vmem:[#allocation13 + $0x710] sm:$0xff]  ;;  %v1488_v50 = vld [vmem:[#allocation13 + $0x718] sm:$0xff] }
 0x470   :  { %3085 = vmatprep.subr.bf16.mxu1 %v3916_v63  ;;  %v3970_v63 = vcombine.high %v1439_v56, %v1443_v42  ;;  %v1491_v54 = vld [vmem:[#allocation13 + $0x730] sm:$0xff] }
 0x472   :  { %3000 = vmatpush1.bf16.msra.mxu0 %v3913_v43  ;;  %v1452_v43 = vld [vmem:[#allocation13 + $0x5f8] sm:$0xff] }
 0x473   :  { %3086 = vmatpush1.bf16.msra.mxu1 %v3915_v2  ;;  %3012 = vmatprep.subr.bf16.mxu0 %v3922_v37  ;;  %v3969_v2 = vcombine.low %v1439_v56, %v1443_v42  ;;  %v3971_v37 = vcombine.low %v1440_v57, %v1444_v58  ;;  %v3980_v40 = vcombine.high %v1448_v1, %v1452_v43  ;;  %v1495_v42 = vld [vmem:[#allocation13 + $0x750] sm:$0xff]  ;;  %v1496_v58 = vld [vmem:[#allocation13 + $0x758] sm:$0xff] }
 0x474   :  { %3098 = vmatprep.subr.bf16.mxu1 %v3924_v38  ;;  %v3978_v38 = vcombine.high %v1447_v60, %v1451_v61  ;;  %v1499_v57 = vld [vmem:[#allocation13 + $0x770] sm:$0xff] }
 0x475   :  { %3002 = vmatmul.mubr.bf16.vlgmr.msra.gmra.mrb[12].mxu0 %v4886_v12 }
 0x476   :  { %3088 = vmatmul.mubr.bf16.vlgmr.msra.gmra.mrb[12].mxu1 %v4886_v12  ;;  %3013 = vmatpush1.bf16.msra.mxu0 %v3921_v4  ;;  %v3939_v12 = vcombine.low %v1408_v15, %v1412_v20  ;;  %v1459_v4 = vld [vmem:[#allocation13 + $0x630] sm:$0xff]  ;;  %v1464_v20 = vld [vmem:[#allocation13 + $0x658] sm:$0xff] }
 0x477   :  { %3044 = vmatprep.mubr.bf16.mxu0 %v4890_v21  ;;  %3099 = vmatpush1.bf16.msra.mxu1 %v3923_v6  ;;  %v3977_v6 = vcombine.low %v1447_v60, %v1451_v61  ;;  %v3986_v11 = vcombine.high %v1455_v3, %v1459_v4  ;;  %v1467_v15 = vld [vmem:[#allocation13 + $0x670] sm:$0xff] }
 0x478   :  { %3130 = vmatprep.mubr.bf16.mxu1 %v4890_v21  ;;  %3014 = vmatprep.subr.bf16.mxu0 %v3930_v10  ;;  %v3945_v21 = vcombine.low %v1415_v48, %v1419_v49  ;;  %v3979_v10 = vcombine.low %v1448_v1, %v1452_v43  ;;  %v1471_v49 = vld [vmem:[#allocation13 + $0x690] sm:$0xff]  ;;  %v1504_v43 = vld [vmem:[#allocation13 + $0x798] sm:$0xff] }
 0x479   :  { %3100 = vmatprep.subr.bf16.mxu1 %v3932_v14  ;;  %v1463_v14 = vld [vmem:[#allocation13 + $0x650] sm:$0xff] }
 0x47a   :  { %3015 = vmatpush1.bf16.msra.mxu0 %v3929_v25  ;;  %v1468_v25 = vld [vmem:[#allocation13 + $0x678] sm:$0xff]  ;;  %v1503_v61 = vld [vmem:[#allocation13 + $0x790] sm:$0xff] }
 0x47b   :  { %3101 = vmatpush1.bf16.msra.mxu1 %v3931_v29  ;;  %3016 = vmatprep.subr.bf16.mxu0 %v3938_v44  ;;  %v3985_v29 = vcombine.low %v1455_v3, %v1459_v4  ;;  %v3987_v44 = vcombine.low %v1456_v5, %v1460_v9  ;;  %v3996_v48 = vcombine.high %v1464_v20, %v1468_v25  ;;  %v1507_v1 = vld [vmem:[#allocation13 + $0x7b0] sm:$0xff]  ;;  %v1512_v9 = vld [vmem:[#allocation13 + $0x7d8] sm:$0xff] }
 0x47c   :  { %3102 = vmatprep.subr.bf16.mxu1 %v3940_v45  ;;  %v3994_v45 = vcombine.high %v1463_v14, %v1467_v15  ;;  %v1511_v4 = vld [vmem:[#allocation13 + $0x7d0] sm:$0xff] }
 0x47d   :  { %v1515_v5 = vld [vmem:[#allocation13 + $0x7f0] sm:$0xff] }
 0x47e   :  { %3017 = vmatpush1.bf16.msra.mxu0 %v3937_v18  ;;  %v1476_v18 = vld [vmem:[#allocation13 + $0x6b8] sm:$0xff] }
 0x47f   :  { %3103 = vmatpush1.bf16.msra.mxu1 %v3939_v12  ;;  %3018 = vmatprep.subr.bf16.mxu0 %v3946_v19  ;;  %v3993_v12 = vcombine.low %v1463_v14, %v1467_v15  ;;  %v3995_v19 = vcombine.low %v1464_v20, %v1468_v25  ;;  %v4004_v53 = vcombine.high %v1472_v16, %v1476_v18 }
 0x480   :  { %3104 = vmatprep.subr.bf16.mxu1 %v3948_v35  ;;  %v4002_v35 = vcombine.high %v1471_v49, %v1475_v52  ;;  %v4041_v15 = vcombine.low %v1511_v4, %v1515_v5 }
 0x482   :  { %3019 = vmatpush1.bf16.msra.mxu0 %v3945_v21  ;;  %v1484_v21 = vld [vmem:[#allocation13 + $0x6f8] sm:$0xff] }
 0x483   :  { %3105 = vmatpush1.bf16.msra.mxu1 %v3947_v24  ;;  %3020 = vmatprep.subr.bf16.mxu0 %v3954_v26  ;;  %v4001_v24 = vcombine.low %v1471_v49, %v1475_v52  ;;  %v4003_v26 = vcombine.low %v1472_v16, %v1476_v18  ;;  %v4012_v28 = vcombine.high %v1480_v23, %v1484_v21 }
 0x484   :  { %3106 = vmatprep.subr.bf16.mxu1 %v3956_v27  ;;  %v4010_v27 = vcombine.high %v1479_v51, %v1483_v22 }
 0x486   :  { %3021 = vmatpush1.bf16.msra.mxu0 %v3953_v55  ;;  %v1492_v55 = vld [vmem:[#allocation13 + $0x738] sm:$0xff] }
 0x487   :  { %3107 = vmatpush1.bf16.msra.mxu1 %v3955_v30  ;;  %3022 = vmatprep.subr.bf16.mxu0 %v3962_v41  ;;  %v4009_v30 = vcombine.low %v1479_v51, %v1483_v22  ;;  %v4011_v41 = vcombine.low %v1480_v23, %v1484_v21  ;;  %v4020_v56 = vcombine.high %v1488_v50, %v1492_v55 }
 0x488   :  { %3108 = vmatprep.subr.bf16.mxu1 %v3964_v31  ;;  %v4018_v31 = vcombine.high %v1487_v33, %v1491_v54 }
 0x48a   :  { %3023 = vmatpush1.bf16.msra.mxu0 %v3961_v59  ;;  %v1500_v59 = vld [vmem:[#allocation13 + $0x778] sm:$0xff] }
 0x48b   :  { %3109 = vmatpush1.bf16.msra.mxu1 %v3963_v62  ;;  %3024 = vmatprep.subr.bf16.mxu0 %v3970_v63  ;;  %v4017_v62 = vcombine.low %v1487_v33, %v1491_v54  ;;  %v4019_v63 = vcombine.low %v1488_v50, %v1492_v55  ;;  %v4028_v60 = vcombine.high %v1496_v58, %v1500_v59 }
 0x48c   :  { %3110 = vmatprep.subr.bf16.mxu1 %v3972_v0  ;;  %v4026_v0 = vcombine.high %v1495_v42, %v1499_v57 }
 0x48e   :  { %3025 = vmatpush1.bf16.msra.mxu0 %v3969_v2  ;;  %v1508_v2 = vld [vmem:[#allocation13 + $0x7b8] sm:$0xff] }
 0x48f   :  { %3111 = vmatpush1.bf16.msra.mxu1 %v3971_v37  ;;  %3026 = vmatprep.subr.bf16.mxu0 %v3978_v38  ;;  %v4025_v37 = vcombine.low %v1495_v42, %v1499_v57  ;;  %v4027_v38 = vcombine.low %v1496_v58, %v1500_v59  ;;  %v4036_v3 = vcombine.high %v1504_v43, %v1508_v2 }
 0x490   :  { %3112 = vmatprep.subr.bf16.mxu1 %v3980_v40  ;;  %v4034_v40 = vcombine.high %v1503_v61, %v1507_v1 }
 0x492   :  { %3027 = vmatpush1.bf16.msra.mxu0 %v3977_v6  ;;  %v1516_v6 = vld [vmem:[#allocation13 + $0x7f8] sm:$0xff] }
 0x493   :  { %3113 = vmatpush1.bf16.msra.mxu1 %v3979_v10  ;;  %3028 = vmatprep.subr.bf16.mxu0 %v3986_v11  ;;  %v4033_v10 = vcombine.low %v1503_v61, %v1507_v1  ;;  %v4035_v11 = vcombine.low %v1504_v43, %v1508_v2  ;;  %v4044_v14 = vcombine.high %v1512_v9, %v1516_v6 }
 0x494   :  { %3114 = vmatprep.subr.bf16.mxu1 %v3988_v13  ;;  %v4042_v13 = vcombine.high %v1511_v4, %v1515_v5  ;;  %v4043_v20 = vcombine.low %v1512_v9, %v1516_v6 }
 0x496   :  { %3029 = vmatpush1.bf16.msra.mxu0 %v3985_v29 }
 0x497   :  { %3115 = vmatpush1.bf16.msra.mxu1 %v3987_v44  ;;  %3030 = vmatprep.subr.bf16.mxu0 %v3994_v45 }
 0x498   :  { %3116 = vmatprep.subr.bf16.mxu1 %v3996_v48 }
 0x49a   :  { %3031 = vmatpush1.bf16.msra.mxu0 %v3993_v12 }
 0x49b   :  { %3117 = vmatpush1.bf16.msra.mxu1 %v3995_v19  ;;  %3032 = vmatprep.subr.bf16.mxu0 %v4002_v35 }
 0x49c   :  { %3118 = vmatprep.subr.bf16.mxu1 %v4004_v53 }
 0x49e   :  { %3033 = vmatpush1.bf16.msra.mxu0 %v4001_v24 }
 0x49f   :  { %3119 = vmatpush1.bf16.msra.mxu1 %v4003_v26  ;;  %3034 = vmatprep.subr.bf16.mxu0 %v4010_v27 }
 0x4a0   :  { %3120 = vmatprep.subr.bf16.mxu1 %v4012_v28 }
 0x4a2   :  { %3035 = vmatpush1.bf16.msra.mxu0 %v4009_v30 }
 0x4a3   :  { %3121 = vmatpush1.bf16.msra.mxu1 %v4011_v41  ;;  %3036 = vmatprep.subr.bf16.mxu0 %v4018_v31 }
 0x4a4   :  { %3122 = vmatprep.subr.bf16.mxu1 %v4020_v56 }
 0x4a6   :  { %3037 = vmatpush1.bf16.msra.mxu0 %v4017_v62 }
 0x4a7   :  { %3123 = vmatpush1.bf16.msra.mxu1 %v4019_v63  ;;  %3038 = vmatprep.subr.bf16.mxu0 %v4026_v0 }
 0x4a8   :  { %3124 = vmatprep.subr.bf16.mxu1 %v4028_v60 }
 0x4aa   :  { %3039 = vmatpush1.bf16.msra.mxu0 %v4025_v37 }
 0x4ab   :  { %3125 = vmatpush1.bf16.msra.mxu1 %v4027_v38  ;;  %3040 = vmatprep.subr.bf16.mxu0 %v4034_v40 }
 0x4ac   :  { %3126 = vmatprep.subr.bf16.mxu1 %v4036_v3 }
 0x4ae   :  { %3041 = vmatpush1.bf16.msra.mxu0 %v4033_v10 }
 0x4af   :  { %3127 = vmatpush1.bf16.msra.mxu1 %v4035_v11  ;;  %3042 = vmatprep.subr.bf16.mxu0 %v4042_v13 }
 0x4b0   :  { %3128 = vmatprep.subr.bf16.mxu1 %v4044_v14 }
 0x4b2   :  { %3043 = vmatpush1.bf16.msra.mxu0 %v4041_v15 }
 0x4b3   :  { %3129 = vmatpush1.bf16.msra.mxu1 %v4043_v20 }
 0x4b5   :  { %3045 = vmatmul.mubr.bf16.vlgmr.msra.gmra.mrb[12].mxu0 %v4902_v17 }
 0x4b6   :  { %3131 = vmatmul.mubr.bf16.vlgmr.msra.gmra.mrb[12].mxu1 %v4902_v17 }
 0x508   :  { %v4916_v25 = vpop.f32.mrb[8].mxu0  ;;  %v4918_v29 = vpop.f32.mrb[8].mxu1 }
 0x509   :  { %v4920_v44 = vpop.f32.mrb[9].mxu0  ;;  %v4922_v45 = vpop.f32.mrb[9].mxu1  ;;  %v3143_v52 = vmul.f32 %v4916_v25, %v4721_v36  ;;  %v3145_v16 = vmul.f32 %v4918_v29, %v4721_v36 }
 0x50a   :  { %v4924_v48 = vpop.f32.mrb[10].mxu0  ;;  %v4926_v49 = vpop.f32.mrb[10].mxu1  ;;  %v3144_v35 = vmul.f32 %v4920_v44, %v4721_v36  ;;  %v3146_v53 = vmul.f32 %v4922_v45, %v4721_v36 }
 0x50b   :  { %v3151_v17 = vmul.f32 %v4924_v48, %v4727_v39  ;;  %v3153_v18 = vmul.f32 %v4926_v49, %v4727_v39  ;;  %v4936_v12 = vpop.f32.mrb[11].mxu0  ;;  %v4938_v19 = vpop.f32.mrb[11].mxu1 }
 0x50c   :  { %v3152_v51 = vmul.f32 %v4936_v12, %v4727_v39  ;;  %v3154_v22 = vmul.f32 %v4938_v19, %v4727_v39 }
 0x50d   :  { %v3159_v23 = vadd.f32 %v3151_v17, %v3143_v52  ;;  %v3173_v21 = vadd.f32 %v3153_v18, %v3145_v16 }
 0x50e   :  { %v3166_v24 = vadd.f32 %v3152_v51, %v3144_v35  ;;  %v3180_v26 = vadd.f32 %v3154_v22, %v3146_v53 }
 0x50f   :  { %v3160_v27 = vrot.slane %v3159_v23, 4  ;;  %v3174_v28 = vrot.slane %v3173_v21, 4 }
 0x510   :  { %v3167_v33 = vrot.slane %v3166_v24, 4  ;;  %v3181_v54 = vrot.slane %v3180_v26, 4 }
 0x511   :  { %v3161_v50 = vadd.f32 %v3160_v27, %v3159_v23  ;;  %v3175_v55 = vadd.f32 %v3174_v28, %v3173_v21 }
 0x512   :  { %v3168_v30 = vadd.f32 %v3167_v33, %v3166_v24  ;;  %v3182_v41 = vadd.f32 %v3181_v54, %v3180_v26 }
 0x513   :  { %v3162_v31 = vrot.slane %v3161_v50, 2  ;;  %v3176_v56 = vrot.slane %v3175_v55, 2 }
 0x514   :  { %v3169_v42 = vrot.slane %v3168_v30, 2  ;;  %v3183_v57 = vrot.slane %v3182_v41, 2 }
 0x515   :  { %v3163_v58 = vadd.f32 %v3162_v31, %v3161_v50  ;;  %v3177_v59 = vadd.f32 %v3176_v56, %v3175_v55 }
 0x516   :  { %v3170_v62 = vadd.f32 %v3169_v42, %v3168_v30  ;;  %v3184_v63 = vadd.f32 %v3183_v57, %v3182_v41 }
 0x517   :  { %v3164_v0 = vrot.slane %v3163_v58, 1  ;;  %v3178_v60 = vrot.slane %v3177_v59, 1 }
 0x518   :  { %v3171_v61 = vrot.slane %v3170_v62, 1  ;;  %v3185_v1 = vrot.slane %v3184_v63, 1 }
 0x519   :  { %v3165_v43 = vadd.f32 %v3164_v0, %v3163_v58  ;;  %v3179_v2 = vadd.f32 %v3178_v60, %v3177_v59 }
 0x51a   :  { %v3172_v37 = vadd.f32 %v3171_v61, %v3170_v62  ;;  %v3186_v38 = vadd.f32 %v3185_v1, %v3184_v63 }
 0x51b   :  { %v4948_v40 = vmul.f32 0.5, %v3165_v43  ;;  %v4950_v3 = vmul.f32 0.5, %v3179_v2 }
 0x51c   :  { %v4952_v4 = vmul.f32 0.5, %v3172_v37  ;;  %v4954_v5 = vmul.f32 0.5, %v3186_v38 }
 0x51d   :  { %v3223_v9 = vsub.f32 %v4916_v25, %v4948_v40  ;;  %v3231_v6 = vsub.f32 %v4924_v48, %v4948_v40  ;;  %v3225_v10 = vsub.f32 %v4918_v29, %v4950_v3  ;;  %v3233_v11 = vsub.f32 %v4926_v49, %v4950_v3 }
 0x51e   :  { %v3224_v13 = vsub.f32 %v4920_v44, %v4952_v4  ;;  %v3232_v14 = vsub.f32 %v4936_v12, %v4952_v4  ;;  %v3226_v15 = vsub.f32 %v4922_v45, %v4954_v5  ;;  %v3234_v20 = vsub.f32 %v4938_v19, %v4954_v5 }
 0x51f   :  { %v3239_v52 = vmul.f32 %v3223_v9, %v4721_v36  ;;  %v3247_v16 = vmul.f32 %v3231_v6, %v4727_v39  ;;  %v3241_v17 = vmul.f32 %v3225_v10, %v4721_v36  ;;  %v3249_v18 = vmul.f32 %v3233_v11, %v4727_v39 }
 0x520   :  { %v3240_v35 = vmul.f32 %v3224_v13, %v4721_v36  ;;  %v3248_v53 = vmul.f32 %v3232_v14, %v4727_v39  ;;  %v3242_v51 = vmul.f32 %v3226_v15, %v4721_v36  ;;  %v3250_v22 = vmul.f32 %v3234_v20, %v4727_v39 }
 0x521   :  { %v3255_v23 = vmul.f32 %v3239_v52, %v3239_v52  ;;  %v3263_v21 = vmul.f32 %v3247_v16, %v3247_v16  ;;  %v3257_v24 = vmul.f32 %v3241_v17, %v3241_v17  ;;  %v3265_v26 = vmul.f32 %v3249_v18, %v3249_v18 }
 0x522   :  { %v3256_v27 = vmul.f32 %v3240_v35, %v3240_v35  ;;  %v3264_v28 = vmul.f32 %v3248_v53, %v3248_v53  ;;  %v3258_v33 = vmul.f32 %v3242_v51, %v3242_v51  ;;  %v3266_v54 = vmul.f32 %v3250_v22, %v3250_v22 }
 0x523   :  { %v3271_v50 = vadd.f32 %v3263_v21, %v3255_v23  ;;  %v3285_v55 = vadd.f32 %v3265_v26, %v3257_v24 }
 0x524   :  { %v3278_v30 = vadd.f32 %v3264_v28, %v3256_v27  ;;  %v3292_v41 = vadd.f32 %v3266_v54, %v3258_v33 }
 0x525   :  { %v3272_v31 = vrot.slane %v3271_v50, 4  ;;  %v3286_v56 = vrot.slane %v3285_v55, 4 }
 0x526   :  { %v3279_v42 = vrot.slane %v3278_v30, 4  ;;  %v3293_v57 = vrot.slane %v3292_v41, 4 }
 0x527   :  { %v3273_v58 = vadd.f32 %v3272_v31, %v3271_v50  ;;  %v3287_v59 = vadd.f32 %v3286_v56, %v3285_v55 }
 0x528   :  { %v3280_v62 = vadd.f32 %v3279_v42, %v3278_v30  ;;  %v3294_v63 = vadd.f32 %v3293_v57, %v3292_v41 }
 0x529   :  { %v3274_v0 = vrot.slane %v3273_v58, 2  ;;  %v3288_v60 = vrot.slane %v3287_v59, 2 }
 0x52a   :  { %v3281_v61 = vrot.slane %v3280_v62, 2  ;;  %v3295_v1 = vrot.slane %v3294_v63, 2 }
 0x52b   :  { %v3275_v43 = vadd.f32 %v3274_v0, %v3273_v58  ;;  %v3289_v2 = vadd.f32 %v3288_v60, %v3287_v59 }
 0x52c   :  { %v3282_v37 = vadd.f32 %v3281_v61, %v3280_v62  ;;  %v3296_v38 = vadd.f32 %v3295_v1, %v3294_v63 }
 0x52d   :  { %v3276_v9 = vrot.slane %v3275_v43, 1  ;;  %v3290_v6 = vrot.slane %v3289_v2, 1 }
 0x52e   :  { %v3283_v10 = vrot.slane %v3282_v37, 1  ;;  %v3297_v11 = vrot.slane %v3296_v38, 1 }
 0x52f   :  { %v3277_v13 = vadd.f32 %v3276_v9, %v3275_v43  ;;  %v3291_v14 = vadd.f32 %v3290_v6, %v3289_v2 }
 0x530   :  { %v3284_v15 = vadd.f32 %v3283_v10, %v3282_v37  ;;  %v3298_v20 = vadd.f32 %v3297_v11, %v3296_v38 }
 0x531   :  { %v3327_v52 = vmul.f32 0.5, %v3277_v13  ;;  %v3329_v16 = vmul.f32 0.5, %v3291_v14 }
 0x532   :  { %v3328_v17 = vmul.f32 0.5, %v3284_v15  ;;  %v3330_v18 = vmul.f32 0.5, %v3298_v20 }
 0x533   :  { %v3335_v35 = vadd.f32 1e-05, %v3327_v52  ;;  %v3337_v53 = vadd.f32 1e-05, %v3329_v16 }
 0x534   :  { %v3336_v51 = vadd.f32 1e-05, %v3328_v17  ;;  %v3338_v22 = vadd.f32 1e-05, %v3330_v18 }
 0x535   :  { %4246 = vrsqrt.f32 %v3335_v35 }
 0x536   :  { %4248 = vrsqrt.f32 %v3337_v53 }
 0x537   :  { %4250 = vrsqrt.f32 %v3336_v51 }
 0x538   :  { %4252 = vrsqrt.f32 %v3338_v22 }
 0x53f   :  { %v4247_v23 = vpop.eup %4246 }
 0x540   :  { %v4249_v21 = vpop.eup %4248 }
 0x541   :  { %v4251_v24 = vpop.eup %4250 }
 0x542   :  { %v4253_v26 = vpop.eup %4252  ;;  %v3359_v27 = vcombine.low %v4247_v23, %v4251_v24 }
 0x543   :  { %v3360_v28 = vcombine.low %v4249_v21, %v4253_v26 }
 0x544   :  { %v4981_v33 = vrot.slane %v3359_v27, %v4752_v34 }
 0x545   :  { %v4984_v54 = vrot.slane %v3360_v28, %v4752_v34 }
 0x547   :  { %v3391_v50 = vcombine.low %v4981_v33, %v4984_v54 }
 0x588   :  { %v4988_v55 = vpop.f32.mrb[12].mxu0 }
 0x589   :  { %v4990_v30 = vpop.f32.mrb[12].mxu1  ;;  %v4992_v41 = vpop.f32.mrb[13].mxu0  ;;  %v3147_v42 = vmul.f32 %v4988_v55, %v4721_v36 }
 0x58a   :  { %v4994_v31 = vpop.f32.mrb[13].mxu1  ;;  %v4996_v56 = vpop.f32.mrb[14].mxu0  ;;  %v3149_v62 = vmul.f32 %v4990_v30, %v4721_v36  ;;  %v3148_v63 = vmul.f32 %v4992_v41, %v4721_v36 }
 0x58b   :  { %v3155_v57 = vmul.f32 %v4996_v56, %v4727_v39  ;;  %v5002_v58 = vpop.f32.mrb[14].mxu1  ;;  %v5004_v59 = vpop.f32.mrb[15].mxu0  ;;  %v3150_v1 = vmul.f32 %v4994_v31, %v4721_v36 }
 0x58c   :  { %v3157_v0 = vmul.f32 %v5002_v58, %v4727_v39  ;;  %v3156_v60 = vmul.f32 %v5004_v59, %v4727_v39  ;;  %v5014_v61 = vpop.f32.mrb[15].mxu1 }
 0x58d   :  { %v3187_v43 = vadd.f32 %v3155_v57, %v3147_v42  ;;  %v3158_v2 = vmul.f32 %v5014_v61, %v4727_v39 }
 0x58e   :  { %v3201_v37 = vadd.f32 %v3157_v0, %v3149_v62  ;;  %v3194_v38 = vadd.f32 %v3156_v60, %v3148_v63 }
 0x58f   :  { %v3188_v9 = vrot.slane %v3187_v43, 4  ;;  %v3208_v6 = vadd.f32 %v3158_v2, %v3150_v1 }
 0x590   :  { %v3202_v10 = vrot.slane %v3201_v37, 4  ;;  %v3195_v11 = vrot.slane %v3194_v38, 4 }
 0x591   :  { %v3189_v13 = vadd.f32 %v3188_v9, %v3187_v43  ;;  %v3209_v14 = vrot.slane %v3208_v6, 4 }
 0x592   :  { %v3203_v15 = vadd.f32 %v3202_v10, %v3201_v37  ;;  %v3196_v20 = vadd.f32 %v3195_v11, %v3194_v38 }
 0x593   :  { %v3190_v52 = vrot.slane %v3189_v13, 2  ;;  %v3210_v16 = vadd.f32 %v3209_v14, %v3208_v6 }
 0x594   :  { %v3204_v17 = vrot.slane %v3203_v15, 2  ;;  %v3197_v18 = vrot.slane %v3196_v20, 2 }
 0x595   :  { %v3191_v35 = vadd.f32 %v3190_v52, %v3189_v13  ;;  %v3211_v53 = vrot.slane %v3210_v16, 2 }
 0x596   :  { %v3205_v51 = vadd.f32 %v3204_v17, %v3203_v15  ;;  %v3198_v22 = vadd.f32 %v3197_v18, %v3196_v20 }
 0x597   :  { %v3192_v23 = vrot.slane %v3191_v35, 1  ;;  %v3212_v21 = vadd.f32 %v3211_v53, %v3210_v16 }
 0x598   :  { %v3206_v24 = vrot.slane %v3205_v51, 1  ;;  %v3199_v26 = vrot.slane %v3198_v22, 1 }
 0x599   :  { %v3193_v27 = vadd.f32 %v3192_v23, %v3191_v35  ;;  %v3213_v28 = vrot.slane %v3212_v21, 1 }
 0x59a   :  { %v3207_v42 = vadd.f32 %v3206_v24, %v3205_v51  ;;  %v3200_v57 = vadd.f32 %v3199_v26, %v3198_v22 }
 0x59b   :  { %v5020_v62 = vmul.f32 0.5, %v3193_v27  ;;  %v3214_v63 = vadd.f32 %v3213_v28, %v3212_v21 }
 0x59c   :  { %v5022_v0 = vmul.f32 0.5, %v3207_v42  ;;  %v5024_v60 = vmul.f32 0.5, %v3200_v57 }
 0x59d   :  { %v3227_v1 = vsub.f32 %v4988_v55, %v5020_v62  ;;  %v3235_v43 = vsub.f32 %v4996_v56, %v5020_v62  ;;  %v5030_v2 = vmul.f32 0.5, %v3214_v63 }
 0x59e   :  { %v3229_v37 = vsub.f32 %v4990_v30, %v5022_v0  ;;  %v3237_v38 = vsub.f32 %v5002_v58, %v5022_v0  ;;  %v3228_v9 = vsub.f32 %v4992_v41, %v5024_v60  ;;  %v3236_v6 = vsub.f32 %v5004_v59, %v5024_v60 }
 0x59f   :  { %v3243_v10 = vmul.f32 %v3227_v1, %v4721_v36  ;;  %v3251_v11 = vmul.f32 %v3235_v43, %v4727_v39  ;;  %v3230_v13 = vsub.f32 %v4994_v31, %v5030_v2  ;;  %v3238_v14 = vsub.f32 %v5014_v61, %v5030_v2 }
 0x5a0   :  { %v3245_v15 = vmul.f32 %v3229_v37, %v4721_v36  ;;  %v3253_v20 = vmul.f32 %v3237_v38, %v4727_v39  ;;  %v3244_v52 = vmul.f32 %v3228_v9, %v4721_v36  ;;  %v3252_v16 = vmul.f32 %v3236_v6, %v4727_v39 }
 0x5a1   :  { %v3259_v17 = vmul.f32 %v3243_v10, %v3243_v10  ;;  %v3267_v18 = vmul.f32 %v3251_v11, %v3251_v11  ;;  %v3246_v35 = vmul.f32 %v3230_v13, %v4721_v36  ;;  %v3254_v53 = vmul.f32 %v3238_v14, %v4727_v39 }
 0x5a2   :  { %v3261_v51 = vmul.f32 %v3245_v15, %v3245_v15  ;;  %v3269_v22 = vmul.f32 %v3253_v20, %v3253_v20  ;;  %v3260_v23 = vmul.f32 %v3244_v52, %v3244_v52  ;;  %v3268_v21 = vmul.f32 %v3252_v16, %v3252_v16 }
 0x5a3   :  { %v3299_v24 = vadd.f32 %v3267_v18, %v3259_v17  ;;  %v3262_v26 = vmul.f32 %v3246_v35, %v3246_v35  ;;  %v3270_v27 = vmul.f32 %v3254_v53, %v3254_v53 }
 0x5a4   :  { %v3313_v28 = vadd.f32 %v3269_v22, %v3261_v51  ;;  %v3306_v42 = vadd.f32 %v3268_v21, %v3260_v23 }
 0x5a5   :  { %v3300_v57 = vrot.slane %v3299_v24, 4  ;;  %v3320_v63 = vadd.f32 %v3270_v27, %v3262_v26 }
 0x5a6   :  { %v3314_v1 = vrot.slane %v3313_v28, 4  ;;  %v3307_v43 = vrot.slane %v3306_v42, 4 }
 0x5a7   :  { %v3301_v37 = vadd.f32 %v3300_v57, %v3299_v24  ;;  %v3321_v38 = vrot.slane %v3320_v63, 4 }
 0x5a8   :  { %v3315_v9 = vadd.f32 %v3314_v1, %v3313_v28  ;;  %v3308_v6 = vadd.f32 %v3307_v43, %v3306_v42 }
 0x5a9   :  { %v3302_v36 = vrot.slane %v3301_v37, 2  ;;  %v3322_v10 = vadd.f32 %v3321_v38, %v3320_v63 }
 0x5aa   :  { %v3316_v39 = vrot.slane %v3315_v9, 2  ;;  %v3309_v11 = vrot.slane %v3308_v6, 2 }
 0x5ab   :  { %v3303_v13 = vadd.f32 %v3302_v36, %v3301_v37  ;;  %v3323_v14 = vrot.slane %v3322_v10, 2 }
 0x5ac   :  { %v3317_v15 = vadd.f32 %v3316_v39, %v3315_v9  ;;  %v3310_v20 = vadd.f32 %v3309_v11, %v3308_v6  ;;  %v3399_v11 = vrot.slane %v3391_v50, %v4752_v34 }
 0x5ad   :  { %v3304_v52 = vrot.slane %v3303_v13, 1  ;;  %v3324_v16 = vadd.f32 %v3323_v14, %v3322_v10  ;;  %v3141_v14 = vld [vmem:[#allocation15] sm:$0xff] }
 0x5ae   :  { %v3318_v17 = vrot.slane %v3317_v15, 1  ;;  %v3311_v18 = vrot.slane %v3310_v20, 1 }
 0x5af   :  { %v3305_v35 = vadd.f32 %v3304_v52, %v3303_v13  ;;  %v3325_v53 = vrot.slane %v3324_v16, 1  ;;  %v3433_v52 = vsub.s32 5, %v4749_v32 }
 0x5b0   :  { %v3319_v51 = vadd.f32 %v3318_v17, %v3317_v15  ;;  %v3312_v22 = vadd.f32 %v3311_v18, %v3310_v20  ;;  %v3429_v20 = vsub.s32 4, %v4749_v32  ;;  %v3441_v17 = vsub.s32 7, %v4749_v32 }
 0x5b1   :  { %v3331_v23 = vmul.f32 0.5, %v3305_v35  ;;  %v3326_v21 = vadd.f32 %v3325_v53, %v3324_v16  ;;  %v3437_v16 = vsub.s32 6, %v4749_v32 }
 0x5b2   :  { %v3333_v24 = vmul.f32 0.5, %v3319_v51  ;;  %v3332_v26 = vmul.f32 0.5, %v3312_v22 }
 0x5b3   :  { %v3339_v27 = vadd.f32 1e-05, %v3331_v23  ;;  %v3334_v28 = vmul.f32 0.5, %v3326_v21 }
 0x5b4   :  { %v3341_v42 = vadd.f32 1e-05, %v3333_v24  ;;  %v3340_v57 = vadd.f32 1e-05, %v3332_v26 }
 0x5b5   :  { %4254 = vrsqrt.f32 %v3339_v27  ;;  %v3342_v63 = vadd.f32 1e-05, %v3334_v28 }
 0x5b6   :  { %4256 = vrsqrt.f32 %v3341_v42 }
 0x5b7   :  { %4258 = vrsqrt.f32 %v3340_v57 }
 0x5b8   :  { %4260 = vrsqrt.f32 %v3342_v63 }
 0x5bf   :  { %v4255_v1 = vpop.eup %4254 }
 0x5c0   :  { %v4257_v43 = vpop.eup %4256 }
 0x5c1   :  { %v4259_v37 = vpop.eup %4258 }
 0x5c2   :  { %v4261_v38 = vpop.eup %4260  ;;  %v3361_v9 = vcombine.low %v4255_v1, %v4259_v37 }
 0x5c3   :  { %v3362_v6 = vcombine.low %v4257_v43, %v4261_v38 }
 0x5c4   :  { %v3383_v36 = vrot.slane %v3361_v9, %v4752_v34 }
 0x5c5   :  { %v3390_v10 = vrot.slane %v3362_v6, %v4752_v34 }
 0x5c7   :  { %v3392_v39 = vcombine.low %v3383_v36, %v3390_v10 }
 0x5c9   :  { %v3406_v13 = vrot.slane %v3392_v39, %v4752_v34 }
 0x5cb   :  { %v3407_v15 = vcombine.low %v3399_v11, %v3406_v13 }
 0x5cd   :  { %v3409_v18 = vmul.f32 %v3407_v15, %v3141_v14 }
 0x5cf   :  { %v3414_v35 = vrot.slane %v3409_v18, %v4757_v46  ;;  %v3418_v53 = vrot.slane %v3409_v18, %v4760_v47  ;;  %v3422_v33 = vrot.slane %v3409_v18, %v4856_v7  ;;  %v3426_v54 = vrot.slane %v3409_v18, %v4859_v8 }
 0x5d0   :  { %v3430_v50 = vrot.slane %v3409_v18, %v3429_v20  ;;  %v3434_v51 = vrot.slane %v3409_v18, %v3433_v52  ;;  %v3438_v22 = vrot.slane %v3409_v18, %v3437_v16  ;;  %v3442_v23 = vrot.slane %v3409_v18, %v3441_v17 }
 0x5d1   :  { %v3451_v21 = vmul.f32 %v3414_v35, %v4948_v40  ;;  %v3452_v24 = vmul.f32 %v3418_v53, %v4952_v4  ;;  %v3453_v26 = vmul.f32 %v3422_v33, %v4950_v3  ;;  %v3454_v32 = vmul.f32 %v3426_v54, %v4954_v5 }
 0x5d2   :  { %v3455_v27 = vmul.f32 %v3430_v50, %v5020_v62  ;;  %v3456_v28 = vmul.f32 %v3434_v51, %v5024_v60  ;;  %v3457_v42 = vmul.f32 %v3438_v22, %v5022_v0  ;;  %v3458_v57 = vmul.f32 %v3442_v23, %v5030_v2 }
 0x5d3   :  { %v3467_v63 = vcombine.low %v3451_v21, %v3452_v24  ;;  %v3468_v1 = vcombine.low %v3453_v26, %v3454_v32  ;;  %v3518_v43 = vmul.f32 %v3414_v35, %v4916_v25  ;;  %v3519_v40 = vmul.f32 %v3418_v53, %v4920_v44 }
 0x5d4   :  { %v3469_v37 = vcombine.low %v3455_v27, %v3456_v28  ;;  %v3470_v4 = vcombine.low %v3457_v42, %v3458_v57  ;;  %v3520_v3 = vmul.f32 %v3422_v33, %v4918_v29  ;;  %v3521_v5 = vmul.f32 %v3426_v54, %v4922_v45 }
 0x5d5   :  { %v3477_v62 = vrot.slane %v3467_v63, %v4752_v34  ;;  %v3484_v60 = vrot.slane %v3468_v1, %v4752_v34  ;;  %v3522_v0 = vmul.f32 %v3430_v50, %v4988_v55  ;;  %v3523_v2 = vmul.f32 %v3434_v51, %v4992_v41 }
 0x5d6   :  { %v3491_v38 = vrot.slane %v3469_v37, %v4752_v34  ;;  %v3498_v25 = vrot.slane %v3470_v4, %v4752_v34  ;;  %v3524_v44 = vmul.f32 %v3438_v22, %v4990_v30  ;;  %v3525_v9 = vmul.f32 %v3442_v23, %v4994_v31 }
 0x5d7   :  { %v3499_v6 = vcombine.low %v3477_v62, %v3484_v60  ;;  %v3526_v29 = vmul.f32 %v3414_v35, %v4924_v48  ;;  %v3527_v45 = vmul.f32 %v3418_v53, %v4936_v12  ;;  %v3528_v36 = vmul.f32 %v3422_v33, %v4926_v49  ;;  %v3142_v48 = vld [vmem:[#allocation16] sm:$0xff] }
 0x5d8   :  { %v3500_v10 = vcombine.low %v3491_v38, %v3498_v25  ;;  %v3529_v55 = vmul.f32 %v3426_v54, %v4938_v19  ;;  %v3530_v41 = vmul.f32 %v3430_v50, %v4996_v56  ;;  %v3531_v39 = vmul.f32 %v3434_v51, %v5004_v59 }
 0x5d9   :  { %v3507_v11 = vrot.slane %v3499_v6, %v4752_v34  ;;  %v3532_v30 = vmul.f32 %v3438_v22, %v5002_v58  ;;  %v3533_v31 = vmul.f32 %v3442_v23, %v5014_v61 }
 0x5da   :  { %v3514_v13 = vrot.slane %v3500_v10, %v4752_v34 }
 0x5dc   :  { %v3515_v14 = vcombine.low %v3507_v11, %v3514_v13 }
 0x5de   :  { %v3517_v12 = vsub.f32 %v3142_v48, %v3515_v14 }
 0x5e0   :  { %v3538_v49 = vrot.slane %v3517_v12, %v4757_v46  ;;  %v3542_v15 = vrot.slane %v3517_v12, %v4760_v47  ;;  %v3546_v19 = vrot.slane %v3517_v12, %v4856_v7  ;;  %v3550_v56 = vrot.slane %v3517_v12, %v4859_v8 }
 0x5e1   :  { %v3554_v59 = vrot.slane %v3517_v12, %v3429_v20  ;;  %v3558_v18 = vrot.slane %v3517_v12, %v3433_v52  ;;  %v3562_v35 = vrot.slane %v3517_v12, %v3437_v16  ;;  %v3566_v53 = vrot.slane %v3517_v12, %v3441_v17 }
 0x5e2   :  { %v3575_v58 = vadd.f32 %v3538_v49, %v3518_v43  ;;  %v3576_v33 = vadd.f32 %v3542_v15, %v3519_v40  ;;  %v3577_v61 = vadd.f32 %v3546_v19, %v3520_v3  ;;  %v3578_v54 = vadd.f32 %v3550_v56, %v3521_v5 }
 0x5e3   :  { %v3579_v34 = vadd.f32 %v3554_v59, %v3522_v0  ;;  %v3580_v50 = vadd.f32 %v3558_v18, %v3523_v2  ;;  %v3581_v51 = vadd.f32 %v3562_v35, %v3524_v44  ;;  %v3582_v22 = vadd.f32 %v3566_v53, %v3525_v9 }
 0x5e4   :  { %v3583_v23 = vadd.f32 %v3538_v49, %v3526_v29  ;;  %v3584_v46 = vadd.f32 %v3542_v15, %v3527_v45  ;;  %v3585_v21 = vadd.f32 %v3546_v19, %v3528_v36  ;;  %v3586_v47 = vadd.f32 %v3550_v56, %v3529_v55 }
 0x5e5   :  { %v3587_v24 = vadd.f32 %v3554_v59, %v3530_v41  ;;  %v3588_v7 = vadd.f32 %v3558_v18, %v3531_v39  ;;  %v3589_v26 = vadd.f32 %v3562_v35, %v3532_v30  ;;  %v3590_v8 = vadd.f32 %v3566_v53, %v3533_v31 }
 0x5e6   :  { %vm3591_vm0 = vcmp.gt.f32.partialorder %v3575_v58, 0.0  ;;  %vm3592_vm1 = vcmp.gt.f32.partialorder %v3576_v33, 0.0  ;;  %vm3593_vm2 = vcmp.gt.f32.partialorder %v3577_v61, 0.0  ;;  %vm3594_vm3 = vcmp.gt.f32.partialorder %v3578_v54, 0.0 }
 0x5e7   :  { %vm3595_vm4 = vcmp.gt.f32.partialorder %v3579_v34, 0.0  ;;  %vm3596_vm5 = vcmp.gt.f32.partialorder %v3580_v50, 0.0  ;;  %vm3597_vm6 = vcmp.gt.f32.partialorder %v3581_v51, 0.0  ;;  %vm3598_vm7 = vcmp.gt.f32.partialorder %v3582_v22, 0.0 }
 0x5e8   :  { %vm3599_vm8 = vcmp.gt.f32.partialorder %v3583_v23, 0.0  ;;  %vm3600_vm9 = vcmp.gt.f32.partialorder %v3584_v46, 0.0  ;;  %vm3601_vm10 = vcmp.gt.f32.partialorder %v3585_v21, 0.0  ;;  %vm3602_vm11 = vcmp.gt.f32.partialorder %v3586_v47, 0.0 }
 0x5e9   :  { %vm3603_vm12 = vcmp.gt.f32.partialorder %v3587_v24, 0.0  ;;  %vm3604_vm13 = vcmp.gt.f32.partialorder %v3588_v7, 0.0  ;;  %vm3605_vm14 = vcmp.gt.f32.partialorder %v3589_v26, 0.0  ;;  %vm3606_vm15 = vcmp.gt.f32.partialorder %v3590_v8, 0.0 }
 0x5ea   :  { %v3607_v20 = vmul.f32 0.2, %v3575_v58  ;;  %v3608_v52 = vmul.f32 0.2, %v3576_v33  ;;  %v3609_v16 = vmul.f32 0.2, %v3577_v61 }
 0x5eb   :  { %v3610_v17 = vmul.f32 0.2, %v3578_v54  ;;  %v3611_v32 = vmul.f32 0.2, %v3579_v34  ;;  %v3612_v27 = vmul.f32 0.2, %v3580_v50 }
 0x5ec   :  { %v3613_v28 = vmul.f32 0.2, %v3581_v51  ;;  %v3614_v42 = vmul.f32 0.2, %v3582_v22  ;;  %v3615_v57 = vmul.f32 0.2, %v3583_v23  ;;  %v3623_v63 = vsel %vm3591_vm0, %v3575_v58, %v3607_v20 }
 0x5ed   :  { %v3616_v1 = vmul.f32 0.2, %v3584_v46  ;;  %v3617_v43 = vmul.f32 0.2, %v3585_v21  ;;  %v3618_v40 = vmul.f32 0.2, %v3586_v47  ;;  %v3624_v37 = vsel %vm3592_vm1, %v3576_v33, %v3608_v52 }
 0x5ee   :  { %v3619_v4 = vmul.f32 0.2, %v3587_v24  ;;  %v3620_v3 = vmul.f32 0.2, %v3588_v7  ;;  %v3621_v5 = vmul.f32 0.2, %v3589_v26  ;;  %v3625_v62 = vsel %vm3593_vm2, %v3577_v61, %v3609_v16 }
 0x5ef   :  { %v3622_v60 = vmul.f32 0.2, %v3590_v8  ;;  %v3626_v0 = vsel %vm3594_vm3, %v3578_v54, %v3610_v17  ;;  %v3627_v2 = vsel %vm3595_vm4, %v3579_v34, %v3611_v32  ;;  %v3628_v38 = vsel %vm3596_vm5, %v3580_v50, %v3612_v27 }
 0x5f0   :  { %v3629_v25 = vsel %vm3597_vm6, %v3581_v51, %v3613_v28  ;;  %v3630_v44 = vsel %vm3598_vm7, %v3582_v22, %v3614_v42  ;;  %v3631_v9 = vsel %vm3599_vm8, %v3583_v23, %v3615_v57  ;;  %v3632_v6 = vsel %vm3600_vm9, %v3584_v46, %v3616_v1 }
 0x5f1   :  { %v3633_v29 = vsel %vm3601_vm10, %v3585_v21, %v3617_v43  ;;  %v3634_v45 = vsel %vm3602_vm11, %v3586_v47, %v3618_v40  ;;  %v3635_v36 = vsel %vm3603_vm12, %v3587_v24, %v3619_v4  ;;  %v3636_v10 = vsel %vm3604_vm13, %v3588_v7, %v3620_v3 }
 0x5f2   :  { %v3637_v55 = vsel %vm3605_vm14, %v3589_v26, %v3621_v5  ;;  %v3638_v41 = vsel %vm3606_vm15, %v3590_v8, %v3622_v60  ;;  %v4053_v39 = vpack.c.bf16 %v3624_v37, %v3623_v63  ;;  %v4054_v11 = vpack.c.bf16 %v3626_v0, %v3625_v62 }
 0x5f3   :  { %v4055_v30 = vpack.c.bf16 %v3628_v38, %v3627_v2  ;;  %v4056_v31 = vpack.c.bf16 %v3630_v44, %v3629_v25  ;;  %v4057_v13 = vpack.c.bf16 %v3632_v6, %v3631_v9  ;;  %v4058_v48 = vpack.c.bf16 %v3634_v45, %v3633_v29 }
 0x5f4   :  { %v4059_v14 = vpack.c.bf16 %v3636_v10, %v3635_v36  ;;  %v4060_v12 = vpack.c.bf16 %v3638_v41, %v3637_v55  ;;  %3687 = vst [vmem:[%s5154_s13] sm:$0xff] %v4053_v39  ;;  %3688 = vst [vmem:[%s5154_s13 + $0x8] sm:$0xff] %v4054_v11 }
 0x5f5   :  { %3689 = vst [vmem:[%s5154_s13 + $0x10] sm:$0xff] %v4055_v30  ;;  %3690 = vst [vmem:[%s5154_s13 + $0x18] sm:$0xff] %v4056_v31 }
 0x5f6   :  { %3691 = vst [vmem:[%s5154_s13 + $0x20] sm:$0xff] %v4057_v13  ;;  %3692 = vst [vmem:[%s5154_s13 + $0x28] sm:$0xff] %v4058_v48 }
 0x5f7   :  { %3693 = vst [vmem:[%s5154_s13 + $0x30] sm:$0xff] %v4059_v14  ;;  %3694 = vst [vmem:[%s5154_s13 + $0x38] sm:$0xff] %v4060_v12 }
 0x5f8   :  { %3699 = vsyncpa [#allocation3], 1 }
 0x5f9   :  { %3700 = vsyncpa [#allocation5], 1 }
 0x5fa   :  { %3701 = vsyncpa [#allocation8], 1 }
 0x5fb   :  { %3702 = vsyncpa [#allocation11], 1 }
 0x5fc   :  { %3703 = vsyncpa [#allocation14], 1 }
 0x5fd   :  { %3704 = vsyncpa [#allocation17], 1 }

</bundles_post_ra>
